<compile_context>
chip_gen: v7x
topology: tpu7x:2x2x1
jax: 0.10.0
libtpu: 0.0.40
codegen_flags: <defaults>
</compile_context>

<pallas_src>
import jax
import jax.numpy as jnp
from jax import lax
from jax.experimental import pallas as pl
from jax.experimental.pallas import tpu as pltpu


# ----------------------------- fused forward kernel ---------------------------------
def _make_lstm_asr_kernel(T, BP, H):
    H2 = 2 * H          # width of the packed [h_fwd | h_bwd] state
    G = 8 * H           # gate lanes: [i_f i_b | f_f f_b | g_f g_b | o_f o_b]

    def kernel(patches_ref, taps_ref, keep_ref, valid_ref,
               wih0_ref, whh0_ref, b0_ref,
               wih1_ref, whh1_ref, b1_ref,
               fcw_ref, fcb_ref,
               logp_ref,
               feat_ref, xp_ref, hbuf0_ref, hbuf1_ref):
        # ---- Conv2d(1,1,3,stride=2) + BN(eval, folded into taps) + ReLU ------------
        acc = patches_ref[0] * taps_ref[0]
        for k in range(1, 9):
            acc = acc + patches_ref[k] * taps_ref[k]
        feat_ref[...] = jnp.maximum(acc + taps_ref[9], 0.0)      # (T*BP, 128) time-major

        # ---- loop-invariant lane masks (hoisted) ------------------------------------
        lane_g = lax.broadcasted_iota(jnp.int32, (BP, G), 1)
        fwd_cols = (lane_g % H2) < H             # fwd-direction half of every gate block
        lane_hi = lax.broadcasted_iota(jnp.int32, (BP, 2 * H2), 1)
        g_cols_hi = lane_hi < H2                 # 'g' block inside the hi (g|o) vreg

        def run_layer(in_ref, wih_ref, whh_ref, b_ref, out_ref):
            # Hoisted input projection: ONE (T*BP, Din) x (Din, 8H) MXU matmul for all
            # timesteps and both directions; only h @ Whh stays in the serial loop.
            xp_ref[...] = (jnp.dot(in_ref[...], wih_ref[...],
                                   preferred_element_type=jnp.float32) + b_ref[...])

            def step(s, carry):
                h, c = carry                                   # (BP, 2H), vreg-resident
                row_f = pl.multiple_of(s * BP, BP)             # fwd reads time s
                row_b = pl.multiple_of((T - 1 - s) * BP, BP)   # bwd reads time T-1-s
                pre = jnp.where(fwd_cols,
                                xp_ref[pl.ds(row_f, BP), :],
                                xp_ref[pl.ds(row_b, BP), :])   # (BP, 8H)
                gates = pre + jnp.dot(h, whh_ref[...],         # whh load left in-step
                                      preferred_element_type=jnp.float32)
                # one full-width tanh per step (double-angle identity):
                #   sigma(x) = 0.5*(tanh(x/2)+1);  tanh(x) = 2t/(1+t^2), t = tanh(x/2).
                # The tanh reconstruction is confined to the hi vreg (lanes of g|o).
                t = jnp.tanh(0.5 * gates)
                sig = 0.5 * (t + 1.0)
                t_hi = t[:, 2 * H2:]
                tanh_hi = (2.0 * t_hi) * pl.reciprocal(1.0 + t_hi * t_hi, approx=True)
                go = jnp.where(g_cols_hi, tanh_hi, sig[:, 2 * H2:])
                i_g = sig[:, 0:H2]                             # [i_f | i_b]
                f_g = sig[:, H2:2 * H2]                        # [f_f | f_b]
                g_g = go[:, 0:H2]                              # [g_f | g_b]
                o_g = go[:, H2:2 * H2]                         # [o_f | o_b]
                c_new = f_g * c + i_g * g_g
                h_new = o_g * jnp.tanh(c_new)
                # packed-sequence semantics: zero the *backward* state at padded
                # timesteps (keep = [1 | valid(T-1-s)]) so it is exactly zero when
                # entering each sequence's last valid step; fwd half never masked.
                keep = keep_ref[pl.ds(row_b, BP), :]           # (BP, 2H), precomputed
                hm = h_new * keep
                out_ref[pl.ds(row_f, BP), 0:H] = h_new[:, 0:H]    # fwd out @ time s
                out_ref[pl.ds(row_b, BP), H:H2] = hm[:, H:H2]     # bwd out @ time T-1-s
                return hm, c_new * keep

            zero = jnp.zeros((BP, H2), jnp.float32)
            _ = lax.fori_loop(0, T, step, (zero, zero), unroll=True)

        run_layer(feat_ref, wih0_ref, whh0_ref, b0_ref, hbuf0_ref)
        run_layer(hbuf0_ref, wih1_ref, whh1_ref, b1_ref, hbuf1_ref)

        # pad_packed_sequence(padding_value=0) + Linear(2H->C, lane-padded) + log_softmax
        y = hbuf1_ref[...] * valid_ref[...]                    # (T*BP, 2H)
        logits = (jnp.dot(y, fcw_ref[...], preferred_element_type=jnp.float32)
                  + fcb_ref[...])
        m = jnp.max(logits, axis=-1, keepdims=True)
        z = jnp.sum(jnp.exp(logits - m), axis=-1, keepdims=True)
        logp_ref[...] = logits - m - jnp.log(z)

    return kernel


# ------------------------------ weight packing (glue) --------------------------------
def _pack_bidir(wih_f, whh_f, b_f, wih_b, whh_b, b_b, H):
    """Pack fwd+bwd weights into gate layout [i_f i_b | f_f f_b | g_f g_b | o_f o_b]
    (8H columns). Hidden-state layout is [h_f | h_b]; Whh is block-diagonal per dir."""
    din = wih_f.shape[0]
    G = 8 * H
    wih = jnp.zeros((din, G), jnp.float32)
    whh = jnp.zeros((2 * H, G), jnp.float32)
    b = jnp.zeros((G,), jnp.float32)
    for gi in range(4):
        c = gi * 2 * H
        wih = wih.at[:, c:c + H].set(wih_f[:, gi * H:(gi + 1) * H])
        wih = wih.at[:, c + H:c + 2 * H].set(wih_b[:, gi * H:(gi + 1) * H])
        whh = whh.at[:H, c:c + H].set(whh_f[:, gi * H:(gi + 1) * H])
        whh = whh.at[H:, c + H:c + 2 * H].set(whh_b[:, gi * H:(gi + 1) * H])
        b = b.at[c:c + H].set(b_f[gi * H:(gi + 1) * H])
        b = b.at[c + H:c + 2 * H].set(b_b[gi * H:(gi + 1) * H])
    return wih, whh, b.reshape(1, G)


# ------------------------------------ forward ----------------------------------------
def lstm_asr_forward(params, batch_features, input_lengths):
    B, T_in, F_in = batch_features.shape
    H = params["hidden_size"]
    L_out, C_out = params["output_size"]
    Tp = (T_in - 3) // 2 + 1                  # post-conv time length
    W = (F_in - 3) // 2 + 1                   # post-conv feature length (127 for F_in=256)
    WP = 128                                  # lane-dense feature width
    assert W <= WP
    assert Tp <= L_out, "post-conv length must not exceed output_size[0]"
    assert len(params["lstm"]) == 2, "fused kernel is written for num_layers == 2"
    BP = max(8, ((B + 7) // 8) * 8)           # pad batch to f32 sublane multiple
    TB = Tp * BP

    x = jnp.zeros((BP, T_in, F_in), jnp.float32).at[:B].set(batch_features.astype(jnp.float32))
    lens = jnp.zeros((BP,), jnp.int32).at[:B].set(input_lengths.astype(jnp.int32))

    # conv patches, TIME-MAJOR (row order (t, b)) so nothing downstream transposes.
    xt = jnp.transpose(x, (1, 0, 2))                            # (T_in, BP, F_in)
    pats = [xt[di:di + 2 * Tp - 1:2, :, dj:dj + 2 * W - 1:2]    # each (Tp, BP, W)
            for di in range(3) for dj in range(3)]
    patches = jnp.stack(pats, axis=0).reshape(9, TB, W)
    patches = jnp.pad(patches, ((0, 0), (0, 0), (0, WP - W)))   # lane-pad 127 -> 128

    # fold BatchNorm(eval) into the conv: y = relu((conv(x)+b)*scale + shift)
    w_fold = (params["conv_w"].reshape(-1) * params["bn_scale"]).astype(jnp.float32)
    shift = (params["conv_b"] * params["bn_scale"] + params["bn_shift"]).astype(jnp.float32)
    taps = jnp.concatenate([w_fold, shift.reshape(1)])          # (10,) SMEM scalars

    # validity masks, rows ordered (t, b) like feat/xp
    valid = (jnp.arange(Tp, dtype=jnp.int32)[:, None] < lens[None, :]).astype(jnp.float32)
    vcol = jnp.broadcast_to(valid.reshape(TB, 1), (TB, H))
    keep2h = jnp.concatenate([jnp.ones((TB, H), jnp.float32), vcol], axis=1)  # fwd=1 | bwd=valid
    valid2h = jnp.concatenate([vcol, vcol], axis=1)                           # both halves = valid

    packed = []
    for li, layer in enumerate(params["lstm"]):
        wih_f, whh_f, b_f = layer["fwd"]
        wih_b, whh_b, b_b = layer["bwd"]
        wih, whh, b = _pack_bidir(wih_f, whh_f, b_f, wih_b, whh_b, b_b, H)
        if li == 0 and wih.shape[0] < WP:      # lane-dense K=128 for the hoisted x @ Wih0
            wih = jnp.zeros((WP, 8 * H), jnp.float32).at[:wih.shape[0]].set(wih)
        packed.append((wih, whh, b))

    # lane-dense FC: pad to 128 classes; padded bias = -1e30 so padded classes drop out
    fcw_pad = jnp.zeros((2 * H, 128), jnp.float32).at[:, :C_out].set(params["fc_w"])
    fcb_pad = jnp.full((1, 128), -1e30, jnp.float32).at[0, :C_out].set(params["fc_b"])

    kernel = _make_lstm_asr_kernel(Tp, BP, H)
    vmem = pl.BlockSpec(memory_space=pltpu.MemorySpace.VMEM)
    smem = pl.BlockSpec(memory_space=pltpu.MemorySpace.SMEM)
    logp = pl.pallas_call(
        kernel,
        out_shape=jax.ShapeDtypeStruct((TB, 128), jnp.float32),
        in_specs=[vmem, smem, vmem, vmem,
                  vmem, vmem, vmem, vmem, vmem, vmem, vmem, vmem],
        out_specs=vmem,
        scratch_shapes=[
            pltpu.VMEM((TB, WP), jnp.float32),        # feat: conv output, time-major
            pltpu.VMEM((TB, 8 * H), jnp.float32),     # xp: hoisted input projection
            pltpu.VMEM((TB, 2 * H), jnp.float32),     # hbuf0: layer-0 output
            pltpu.VMEM((TB, 2 * H), jnp.float32),     # hbuf1: layer-1 output
        ],
    )(patches, taps, keep2h, valid2h,
      packed[0][0], packed[0][1], packed[0][2],
      packed[1][0], packed[1][1], packed[1][2],
      fcw_pad, fcb_pad)

    # reassemble (B, L_out, C_out): real time steps from the kernel; padded time steps
    # are exactly log_softmax(fc_b) (zero LSTM output -> fc -> log_softmax), matching
    # the reference's zero-padding + fc + log_softmax.
    valid_out = jnp.transpose(logp[:, :C_out].reshape(Tp, BP, C_out), (1, 0, 2))[:B]
    pad_row = jax.nn.log_softmax(params["fc_b"].astype(jnp.float32))
    tail = jnp.broadcast_to(pad_row, (B, L_out - Tp, C_out))
    return jnp.concatenate([valid_out, tail], axis=1)


# --------------------------------- parameter init ------------------------------------
def init_params(key, lstm_in=127, hidden_size=32, num_layers=2, output_size=(62, 26)):
    n_keys = 4 + num_layers * 2 * 4 + 4
    keys = iter(jax.random.split(key, n_keys))

    def uni(shape, scale):
        return jax.random.uniform(next(keys), shape, jnp.float32, -scale, scale)

    params = {"hidden_size": hidden_size, "output_size": output_size}
    # Conv2d(1, 1, 3): fan_in = 9
    params["conv_w"] = uni((3, 3), 1.0 / 3.0)
    params["conv_b"] = uni((), 1.0 / 3.0)
    # BatchNorm2d(1), eval mode, folded into scale/shift
    gamma, beta, r_mean, r_var, eps = 1.1, 0.05, 0.02, 0.9, 1e-5
    bn_scale = gamma / float(jnp.sqrt(jnp.float32(r_var + eps)))
    params["bn_scale"] = jnp.float32(bn_scale)
    params["bn_shift"] = jnp.float32(beta - r_mean * bn_scale)
    # bidirectional multi-layer LSTM (PyTorch gate order i, f, g, o; weights stored
    # transposed so gates = x @ W_ih + h @ W_hh + (b_ih + b_hh))
    k = hidden_size ** -0.5
    layers = []
    for l in range(num_layers):
        din = lstm_in if l == 0 else 2 * hidden_size
        layer = {}
        for d in ("fwd", "bwd"):
            w_ih = uni((din, 4 * hidden_size), k)
            w_hh = uni((hidden_size, 4 * hidden_size), k)
            b = uni((4 * hidden_size,), k) + uni((4 * hidden_size,), k)
            layer[d] = (w_ih, w_hh, b)
        layers.append(layer)
    params["lstm"] = layers
    # Linear(2H -> 26)
    kf = (2 * hidden_size) ** -0.5
    params["fc_w"] = uni((2 * hidden_size, output_size[1]), kf)
    params["fc_b"] = uni((output_size[1],), kf)
    return params


if __name__ == "__main__":
    key = jax.random.PRNGKey(0)
    kp, kx = jax.random.split(key)

    B, T_in, F_in = 2, 16, 256               # feature dim 256 -> 127 after stride-2 conv
    hidden_size, num_layers = 32, 2
    output_size = (62, 26)

    params = init_params(kp, lstm_in=(F_in - 3) // 2 + 1,
                         hidden_size=hidden_size, num_layers=num_layers,
                         output_size=output_size)

    x = jax.random.normal(kx, (B, T_in, F_in), jnp.float32)
    Tp = (T_in - 3) // 2 + 1                  # post-conv time length = 7
    input_lengths = jnp.array([Tp, Tp - 2], dtype=jnp.int32)

    out = lstm_asr_forward(params, x, input_lengths)
    out = jax.block_until_ready(out)
    assert out.shape == (B, output_size[0], output_size[1])
    assert bool(jnp.all(jnp.isfinite(out)))
    # log-probabilities should normalize over the class axis
    assert bool(jnp.allclose(jnp.sum(jnp.exp(out), axis=-1), 1.0, atol=1e-2))
    print("KERNEL_OK")
</pallas_src>

<mosaic_0001>
module attributes {stable_mosaic.version = 11 : i64} {
  func.func @kernel(%arg0: memref<9x56x128xf32, #tpu.memory_space<vmem>>, %arg1: memref<10xf32, #tpu.memory_space<smem>>, %arg2: memref<56x64xf32, #tpu.memory_space<vmem>>, %arg3: memref<56x64xf32, #tpu.memory_space<vmem>>, %arg4: memref<128x256xf32, #tpu.memory_space<vmem>>, %arg5: memref<64x256xf32, #tpu.memory_space<vmem>>, %arg6: memref<1x256xf32, #tpu.memory_space<vmem>>, %arg7: memref<64x256xf32, #tpu.memory_space<vmem>>, %arg8: memref<64x256xf32, #tpu.memory_space<vmem>>, %arg9: memref<1x256xf32, #tpu.memory_space<vmem>>, %arg10: memref<64x128xf32, #tpu.memory_space<vmem>>, %arg11: memref<1x128xf32, #tpu.memory_space<vmem>>, %arg12: memref<56x128xf32, #tpu.memory_space<vmem>>, %arg13: memref<56x128xf32, #tpu.memory_space<vmem>>, %arg14: memref<56x256xf32, #tpu.memory_space<vmem>>, %arg15: memref<56x64xf32, #tpu.memory_space<vmem>>, %arg16: memref<56x64xf32, #tpu.memory_space<vmem>>) attributes {dimension_semantics = [], scalar_prefetch = 0 : i64, scratch_operands = 4 : i64, tpu.core_type = #tpu.core_type<tc>} {
    %c0 = arith.constant 0 : index
    %c0_0 = arith.constant 0 : index
    %c0_1 = arith.constant 0 : index
    %0 = vector.load %arg0[%c0, %c0_0, %c0_1] : memref<9x56x128xf32, #tpu.memory_space<vmem>>, vector<1x56x128xf32>
    %1 = vector.shape_cast %0 : vector<1x56x128xf32> to vector<56x128xf32>
    %c0_2 = arith.constant 0 : index
    %2 = memref.load %arg1[%c0_2] : memref<10xf32, #tpu.memory_space<smem>>
    %3 = vector.broadcast %2 : f32 to vector<56x128xf32>
    %4 = arith.mulf %1, %3 : vector<56x128xf32>
    %c1 = arith.constant 1 : index
    %c0_3 = arith.constant 0 : index
    %c0_4 = arith.constant 0 : index
    %5 = vector.load %arg0[%c1, %c0_3, %c0_4] : memref<9x56x128xf32, #tpu.memory_space<vmem>>, vector<1x56x128xf32>
    %6 = vector.shape_cast %5 : vector<1x56x128xf32> to vector<56x128xf32>
    %c1_5 = arith.constant 1 : index
    %7 = memref.load %arg1[%c1_5] : memref<10xf32, #tpu.memory_space<smem>>
    %8 = vector.broadcast %7 : f32 to vector<56x128xf32>
    %9 = arith.mulf %6, %8 : vector<56x128xf32>
    %10 = arith.addf %4, %9 : vector<56x128xf32>
    %c2 = arith.constant 2 : index
    %c0_6 = arith.constant 0 : index
    %c0_7 = arith.constant 0 : index
    %11 = vector.load %arg0[%c2, %c0_6, %c0_7] : memref<9x56x128xf32, #tpu.memory_space<vmem>>, vector<1x56x128xf32>
    %12 = vector.shape_cast %11 : vector<1x56x128xf32> to vector<56x128xf32>
    %c2_8 = arith.constant 2 : index
    %13 = memref.load %arg1[%c2_8] : memref<10xf32, #tpu.memory_space<smem>>
    %14 = vector.broadcast %13 : f32 to vector<56x128xf32>
    %15 = arith.mulf %12, %14 : vector<56x128xf32>
    %16 = arith.addf %10, %15 : vector<56x128xf32>
    %c3 = arith.constant 3 : index
    %c0_9 = arith.constant 0 : index
    %c0_10 = arith.constant 0 : index
    %17 = vector.load %arg0[%c3, %c0_9, %c0_10] : memref<9x56x128xf32, #tpu.memory_space<vmem>>, vector<1x56x128xf32>
    %18 = vector.shape_cast %17 : vector<1x56x128xf32> to vector<56x128xf32>
    %c3_11 = arith.constant 3 : index
    %19 = memref.load %arg1[%c3_11] : memref<10xf32, #tpu.memory_space<smem>>
    %20 = vector.broadcast %19 : f32 to vector<56x128xf32>
    %21 = arith.mulf %18, %20 : vector<56x128xf32>
    %22 = arith.addf %16, %21 : vector<56x128xf32>
    %c4 = arith.constant 4 : index
    %c0_12 = arith.constant 0 : index
    %c0_13 = arith.constant 0 : index
    %23 = vector.load %arg0[%c4, %c0_12, %c0_13] : memref<9x56x128xf32, #tpu.memory_space<vmem>>, vector<1x56x128xf32>
    %24 = vector.shape_cast %23 : vector<1x56x128xf32> to vector<56x128xf32>
    %c4_14 = arith.constant 4 : index
    %25 = memref.load %arg1[%c4_14] : memref<10xf32, #tpu.memory_space<smem>>
    %26 = vector.broadcast %25 : f32 to vector<56x128xf32>
    %27 = arith.mulf %24, %26 : vector<56x128xf32>
    %28 = arith.addf %22, %27 : vector<56x128xf32>
    %c5 = arith.constant 5 : index
    %c0_15 = arith.constant 0 : index
    %c0_16 = arith.constant 0 : index
    %29 = vector.load %arg0[%c5, %c0_15, %c0_16] : memref<9x56x128xf32, #tpu.memory_space<vmem>>, vector<1x56x128xf32>
    %30 = vector.shape_cast %29 : vector<1x56x128xf32> to vector<56x128xf32>
    %c5_17 = arith.constant 5 : index
    %31 = memref.load %arg1[%c5_17] : memref<10xf32, #tpu.memory_space<smem>>
    %32 = vector.broadcast %31 : f32 to vector<56x128xf32>
    %33 = arith.mulf %30, %32 : vector<56x128xf32>
    %34 = arith.addf %28, %33 : vector<56x128xf32>
    %c6 = arith.constant 6 : index
    %c0_18 = arith.constant 0 : index
    %c0_19 = arith.constant 0 : index
    %35 = vector.load %arg0[%c6, %c0_18, %c0_19] : memref<9x56x128xf32, #tpu.memory_space<vmem>>, vector<1x56x128xf32>
    %36 = vector.shape_cast %35 : vector<1x56x128xf32> to vector<56x128xf32>
    %c6_20 = arith.constant 6 : index
    %37 = memref.load %arg1[%c6_20] : memref<10xf32, #tpu.memory_space<smem>>
    %38 = vector.broadcast %37 : f32 to vector<56x128xf32>
    %39 = arith.mulf %36, %38 : vector<56x128xf32>
    %40 = arith.addf %34, %39 : vector<56x128xf32>
    %c7 = arith.constant 7 : index
    %c0_21 = arith.constant 0 : index
    %c0_22 = arith.constant 0 : index
    %41 = vector.load %arg0[%c7, %c0_21, %c0_22] : memref<9x56x128xf32, #tpu.memory_space<vmem>>, vector<1x56x128xf32>
    %42 = vector.shape_cast %41 : vector<1x56x128xf32> to vector<56x128xf32>
    %c7_23 = arith.constant 7 : index
    %43 = memref.load %arg1[%c7_23] : memref<10xf32, #tpu.memory_space<smem>>
    %44 = vector.broadcast %43 : f32 to vector<56x128xf32>
    %45 = arith.mulf %42, %44 : vector<56x128xf32>
    %46 = arith.addf %40, %45 : vector<56x128xf32>
    %c8 = arith.constant 8 : index
    %c0_24 = arith.constant 0 : index
    %c0_25 = arith.constant 0 : index
    %47 = vector.load %arg0[%c8, %c0_24, %c0_25] : memref<9x56x128xf32, #tpu.memory_space<vmem>>, vector<1x56x128xf32>
    %48 = vector.shape_cast %47 : vector<1x56x128xf32> to vector<56x128xf32>
    %c8_26 = arith.constant 8 : index
    %49 = memref.load %arg1[%c8_26] : memref<10xf32, #tpu.memory_space<smem>>
    %50 = vector.broadcast %49 : f32 to vector<56x128xf32>
    %51 = arith.mulf %48, %50 : vector<56x128xf32>
    %52 = arith.addf %46, %51 : vector<56x128xf32>
    %c9 = arith.constant 9 : index
    %53 = memref.load %arg1[%c9] : memref<10xf32, #tpu.memory_space<smem>>
    %54 = vector.broadcast %53 : f32 to vector<56x128xf32>
    %55 = arith.addf %52, %54 : vector<56x128xf32>
    %cst = arith.constant 0.000000e+00 : f32
    %56 = vector.broadcast %cst : f32 to vector<56x128xf32>
    %57 = arith.maximumf %55, %56 : vector<56x128xf32>
    %c0_27 = arith.constant 0 : index
    %c0_28 = arith.constant 0 : index
    %58 = vector.load %arg13[%c0_27, %c0_28] : memref<56x128xf32, #tpu.memory_space<vmem>>, vector<56x128xf32>
    tpu.vector_store %arg13[%c0_27, %c0_28], %57 {strides = array<i32>} : memref<56x128xf32, #tpu.memory_space<vmem>>, vector<56x128xf32>,
    %59 = tpu.iota {dimensions = array<i32: 1>} : vector<8x256xi32>
    %c64_i32 = arith.constant 64 : i32
    %c0_i32 = arith.constant 0 : i32
    %60 = arith.cmpi eq, %c64_i32, %c0_i32 : i32
    %c1_i32 = arith.constant 1 : i32
    %61 = arith.select %60, %c1_i32, %c64_i32 : i32
    %62 = vector.broadcast %61 : i32 to vector<8x256xi32>
    %63 = arith.remsi %59, %62 : vector<8x256xi32>
    %c0_i32_29 = arith.constant 0 : i32
    %64 = vector.broadcast %c0_i32_29 : i32 to vector<8x256xi32>
    %65 = arith.cmpi ne, %63, %64 : vector<8x256xi32>
    %c0_i32_30 = arith.constant 0 : i32
    %66 = vector.broadcast %c0_i32_30 : i32 to vector<8x256xi32>
    %67 = arith.cmpi slt, %63, %66 : vector<8x256xi32>
    %c0_i32_31 = arith.constant 0 : i32
    %68 = arith.cmpi slt, %61, %c0_i32_31 : i32
    %69 = vector.broadcast %68 : i1 to vector<8x256xi1>
    %70 = vector.broadcast %69 : vector<8x256xi1> to vector<8x256xi1>
    %71 = arith.xori %67, %70 : vector<8x256xi1>
    %72 = arith.andi %71, %65 : vector<8x256xi1>
    %73 = vector.broadcast %61 : i32 to vector<8x256xi32>
    %74 = arith.addi %63, %73 : vector<8x256xi32>
    %75 = arith.select %72, %74, %63 : vector<8x256xi1>, vector<8x256xi32>
    %c32_i32 = arith.constant 32 : i32
    %76 = vector.broadcast %c32_i32 : i32 to vector<8x256xi32>
    %77 = arith.cmpi slt, %75, %76 : vector<8x256xi32>
    %78 = tpu.iota {dimensions = array<i32: 1>} : vector<8x128xi32>
    %c64_i32_32 = arith.constant 64 : i32
    %79 = vector.broadcast %c64_i32_32 : i32 to vector<8x128xi32>
    %80 = arith.cmpi slt, %78, %79 : vector<8x128xi32>
    %c0_33 = arith.constant 0 : index
    %c0_34 = arith.constant 0 : index
    %81 = vector.load %arg13[%c0_33, %c0_34] : memref<56x128xf32, #tpu.memory_space<vmem>>, vector<56x128xf32>
    %c0_35 = arith.constant 0 : index
    %c0_36 = arith.constant 0 : index
    %82 = vector.load %arg4[%c0_35, %c0_36] : memref<128x256xf32, #tpu.memory_space<vmem>>, vector<128x256xf32>
    %cst_37 = arith.constant dense<0.000000e+00> : vector<56x256xf32>
    %83 = tpu.matmul %81, %82, %cst_37 {dimension_numbers = #tpu.dot_dimension_numbers<[1], [0], [0], [1], [0, 0, 1, 1], [], []>} : vector<56x128xf32>, vector<128x256xf32>, vector<56x256xf32> -> vector<56x256xf32>
    %c0_38 = arith.constant 0 : index
    %c0_39 = arith.constant 0 : index
    %84 = vector.load %arg6[%c0_38, %c0_39] : memref<1x256xf32, #tpu.memory_space<vmem>>, vector<1x256xf32>
    %85 = vector.broadcast %84 : vector<1x256xf32> to vector<56x256xf32>
    %86 = arith.addf %83, %85 : vector<56x256xf32>
    %c0_40 = arith.constant 0 : index
    %c0_41 = arith.constant 0 : index
    %87 = vector.load %arg14[%c0_40, %c0_41] : memref<56x256xf32, #tpu.memory_space<vmem>>, vector<56x256xf32>
    tpu.vector_store %arg14[%c0_40, %c0_41], %86 {strides = array<i32>} : memref<56x256xf32, #tpu.memory_space<vmem>>, vector<56x256xf32>,
    %cst_42 = arith.constant 0.000000e+00 : f32
    %88 = vector.broadcast %cst_42 : f32 to vector<8x64xf32>
    %c0_i32_43 = arith.constant 0 : i32
    %c8_i32 = arith.constant 8 : i32
    %89 = arith.muli %c0_i32_43, %c8_i32 : i32
    %90 = tpu.assume_multiple %89, 8 : i32
    %c6_i32 = arith.constant 6 : i32
    %91 = arith.subi %c6_i32, %c0_i32_43 : i32
    %c8_i32_44 = arith.constant 8 : i32
    %92 = arith.muli %91, %c8_i32_44 : i32
    %93 = tpu.assume_multiple %92, 8 : i32
    %94 = arith.index_cast %90 : i32 to index
    %c0_45 = arith.constant 0 : index
    %95 = vector.load %arg14[%94, %c0_45] : memref<56x256xf32, #tpu.memory_space<vmem>>, vector<8x256xf32>
    %96 = arith.index_cast %93 : i32 to index
    %c0_46 = arith.constant 0 : index
    %97 = vector.load %arg14[%96, %c0_46] : memref<56x256xf32, #tpu.memory_space<vmem>>, vector<8x256xf32>
    %98 = arith.select %77, %95, %97 : vector<8x256xi1>, vector<8x256xf32>
    %c0_47 = arith.constant 0 : index
    %c0_48 = arith.constant 0 : index
    %99 = vector.load %arg5[%c0_47, %c0_48] : memref<64x256xf32, #tpu.memory_space<vmem>>, vector<64x256xf32>
    %cst_49 = arith.constant dense<0.000000e+00> : vector<8x256xf32>
    %100 = tpu.matmul %88, %99, %cst_49 {dimension_numbers = #tpu.dot_dimension_numbers<[1], [0], [0], [1], [0, 0, 1, 1], [], []>} : vector<8x64xf32>, vector<64x256xf32>, vector<8x256xf32> -> vector<8x256xf32>
    %101 = arith.addf %98, %100 : vector<8x256xf32>
    %cst_50 = arith.constant 5.000000e-01 : f32
    %102 = vector.broadcast %cst_50 : f32 to vector<8x256xf32>
    %103 = arith.mulf %102, %101 : vector<8x256xf32>
    %104 = math.tanh %103 : vector<8x256xf32>
    %cst_51 = arith.constant 1.000000e+00 : f32
    %105 = vector.broadcast %cst_51 : f32 to vector<8x256xf32>
    %106 = arith.addf %104, %105 : vector<8x256xf32>
    %cst_52 = arith.constant 5.000000e-01 : f32
    %107 = vector.broadcast %cst_52 : f32 to vector<8x256xf32>
    %108 = arith.mulf %107, %106 : vector<8x256xf32>
    %109 = vector.extract_strided_slice %104 {offsets = [0, 128], sizes = [8, 128], strides = [1, 1]} : vector<8x256xf32> to vector<8x128xf32>
    %cst_53 = arith.constant 2.000000e+00 : f32
    %110 = vector.broadcast %cst_53 : f32 to vector<8x128xf32>
    %111 = arith.mulf %110, %109 : vector<8x128xf32>
    %112 = arith.mulf %109, %109 : vector<8x128xf32>
    %cst_54 = arith.constant 1.000000e+00 : f32
    %113 = vector.broadcast %cst_54 : f32 to vector<8x128xf32>
    %114 = arith.addf %113, %112 : vector<8x128xf32>
    %115 = tpu.reciprocal %114 {approx = true} : vector<8x128xf32> -> vector<8x128xf32>
    %116 = arith.mulf %111, %115 : vector<8x128xf32>
    %117 = vector.extract_strided_slice %108 {offsets = [0, 128], sizes = [8, 128], strides = [1, 1]} : vector<8x256xf32> to vector<8x128xf32>
    %118 = arith.select %80, %116, %117 : vector<8x128xi1>, vector<8x128xf32>
    %119 = vector.extract_strided_slice %108 {offsets = [0, 0], sizes = [8, 64], strides = [1, 1]} : vector<8x256xf32> to vector<8x64xf32>
    %120 = vector.extract_strided_slice %108 {offsets = [0, 64], sizes = [8, 64], strides = [1, 1]} : vector<8x256xf32> to vector<8x64xf32>
    %121 = vector.extract_strided_slice %118 {offsets = [0, 0], sizes = [8, 64], strides = [1, 1]} : vector<8x128xf32> to vector<8x64xf32>
    %122 = vector.extract_strided_slice %118 {offsets = [0, 64], sizes = [8, 64], strides = [1, 1]} : vector<8x128xf32> to vector<8x64xf32>
    %123 = arith.mulf %120, %88 : vector<8x64xf32>
    %124 = arith.mulf %119, %121 : vector<8x64xf32>
    %125 = arith.addf %123, %124 : vector<8x64xf32>
    %126 = math.tanh %125 : vector<8x64xf32>
    %127 = arith.mulf %122, %126 : vector<8x64xf32>
    %128 = arith.index_cast %93 : i32 to index
    %c0_55 = arith.constant 0 : index
    %129 = vector.load %arg2[%128, %c0_55] : memref<56x64xf32, #tpu.memory_space<vmem>>, vector<8x64xf32>
    %130 = arith.mulf %127, %129 : vector<8x64xf32>
    %131 = vector.extract_strided_slice %127 {offsets = [0, 0], sizes = [8, 32], strides = [1, 1]} : vector<8x64xf32> to vector<8x32xf32>
    %132 = arith.index_cast %90 : i32 to index
    %c0_56 = arith.constant 0 : index
    %133 = vector.load %arg15[%132, %c0_56] : memref<56x64xf32, #tpu.memory_space<vmem>>, vector<8x32xf32>
    tpu.vector_store %arg15[%132, %c0_56], %131 {strides = array<i32>} : memref<56x64xf32, #tpu.memory_space<vmem>>, vector<8x32xf32>,
    %134 = vector.extract_strided_slice %130 {offsets = [0, 32], sizes = [8, 32], strides = [1, 1]} : vector<8x64xf32> to vector<8x32xf32>
    %135 = arith.index_cast %93 : i32 to index
    %c32 = arith.constant 32 : index
    %136 = vector.load %arg15[%135, %c32] : memref<56x64xf32, #tpu.memory_space<vmem>>, vector<8x32xf32>
    tpu.vector_store %arg15[%135, %c32], %134 {strides = array<i32>} : memref<56x64xf32, #tpu.memory_space<vmem>>, vector<8x32xf32>,
    %137 = arith.mulf %125, %129 : vector<8x64xf32>
    %c1_i32_57 = arith.constant 1 : i32
    %c8_i32_58 = arith.constant 8 : i32
    %138 = arith.muli %c1_i32_57, %c8_i32_58 : i32
    %139 = tpu.assume_multiple %138, 8 : i32
    %c6_i32_59 = arith.constant 6 : i32
    %140 = arith.subi %c6_i32_59, %c1_i32_57 : i32
    %c8_i32_60 = arith.constant 8 : i32
    %141 = arith.muli %140, %c8_i32_60 : i32
    %142 = tpu.assume_multiple %141, 8 : i32
    %143 = arith.index_cast %139 : i32 to index
    %c0_61 = arith.constant 0 : index
    %144 = vector.load %arg14[%143, %c0_61] : memref<56x256xf32, #tpu.memory_space<vmem>>, vector<8x256xf32>
    %145 = arith.index_cast %142 : i32 to index
    %c0_62 = arith.constant 0 : index
    %146 = vector.load %arg14[%145, %c0_62] : memref<56x256xf32, #tpu.memory_space<vmem>>, vector<8x256xf32>
    %147 = arith.select %77, %144, %146 : vector<8x256xi1>, vector<8x256xf32>
    %c0_63 = arith.constant 0 : index
    %c0_64 = arith.constant 0 : index
    %148 = vector.load %arg5[%c0_63, %c0_64] : memref<64x256xf32, #tpu.memory_space<vmem>>, vector<64x256xf32>
    %cst_65 = arith.constant dense<0.000000e+00> : vector<8x256xf32>
    %149 = tpu.matmul %130, %148, %cst_65 {dimension_numbers = #tpu.dot_dimension_numbers<[1], [0], [0], [1], [0, 0, 1, 1], [], []>} : vector<8x64xf32>, vector<64x256xf32>, vector<8x256xf32> -> vector<8x256xf32>
    %150 = arith.addf %147, %149 : vector<8x256xf32>
    %cst_66 = arith.constant 5.000000e-01 : f32
    %151 = vector.broadcast %cst_66 : f32 to vector<8x256xf32>
    %152 = arith.mulf %151, %150 : vector<8x256xf32>
    %153 = math.tanh %152 : vector<8x256xf32>
    %cst_67 = arith.constant 1.000000e+00 : f32
    %154 = vector.broadcast %cst_67 : f32 to vector<8x256xf32>
    %155 = arith.addf %153, %154 : vector<8x256xf32>
    %cst_68 = arith.constant 5.000000e-01 : f32
    %156 = vector.broadcast %cst_68 : f32 to vector<8x256xf32>
    %157 = arith.mulf %156, %155 : vector<8x256xf32>
    %158 = vector.extract_strided_slice %153 {offsets = [0, 128], sizes = [8, 128], strides = [1, 1]} : vector<8x256xf32> to vector<8x128xf32>
    %cst_69 = arith.constant 2.000000e+00 : f32
    %159 = vector.broadcast %cst_69 : f32 to vector<8x128xf32>
    %160 = arith.mulf %159, %158 : vector<8x128xf32>
    %161 = arith.mulf %158, %158 : vector<8x128xf32>
    %cst_70 = arith.constant 1.000000e+00 : f32
    %162 = vector.broadcast %cst_70 : f32 to vector<8x128xf32>
    %163 = arith.addf %162, %161 : vector<8x128xf32>
    %164 = tpu.reciprocal %163 {approx = true} : vector<8x128xf32> -> vector<8x128xf32>
    %165 = arith.mulf %160, %164 : vector<8x128xf32>
    %166 = vector.extract_strided_slice %157 {offsets = [0, 128], sizes = [8, 128], strides = [1, 1]} : vector<8x256xf32> to vector<8x128xf32>
    %167 = arith.select %80, %165, %166 : vector<8x128xi1>, vector<8x128xf32>
    %168 = vector.extract_strided_slice %157 {offsets = [0, 0], sizes = [8, 64], strides = [1, 1]} : vector<8x256xf32> to vector<8x64xf32>
    %169 = vector.extract_strided_slice %157 {offsets = [0, 64], sizes = [8, 64], strides = [1, 1]} : vector<8x256xf32> to vector<8x64xf32>
    %170 = vector.extract_strided_slice %167 {offsets = [0, 0], sizes = [8, 64], strides = [1, 1]} : vector<8x128xf32> to vector<8x64xf32>
    %171 = vector.extract_strided_slice %167 {offsets = [0, 64], sizes = [8, 64], strides = [1, 1]} : vector<8x128xf32> to vector<8x64xf32>
    %172 = arith.mulf %169, %137 : vector<8x64xf32>
    %173 = arith.mulf %168, %170 : vector<8x64xf32>
    %174 = arith.addf %172, %173 : vector<8x64xf32>
    %175 = math.tanh %174 : vector<8x64xf32>
    %176 = arith.mulf %171, %175 : vector<8x64xf32>
    %177 = arith.index_cast %142 : i32 to index
    %c0_71 = arith.constant 0 : index
    %178 = vector.load %arg2[%177, %c0_71] : memref<56x64xf32, #tpu.memory_space<vmem>>, vector<8x64xf32>
    %179 = arith.mulf %176, %178 : vector<8x64xf32>
    %180 = vector.extract_strided_slice %176 {offsets = [0, 0], sizes = [8, 32], strides = [1, 1]} : vector<8x64xf32> to vector<8x32xf32>
    %181 = arith.index_cast %139 : i32 to index
    %c0_72 = arith.constant 0 : index
    %182 = vector.load %arg15[%181, %c0_72] : memref<56x64xf32, #tpu.memory_space<vmem>>, vector<8x32xf32>
    tpu.vector_store %arg15[%181, %c0_72], %180 {strides = array<i32>} : memref<56x64xf32, #tpu.memory_space<vmem>>, vector<8x32xf32>,
    %183 = vector.extract_strided_slice %179 {offsets = [0, 32], sizes = [8, 32], strides = [1, 1]} : vector<8x64xf32> to vector<8x32xf32>
    %184 = arith.index_cast %142 : i32 to index
    %c32_73 = arith.constant 32 : index
    %185 = vector.load %arg15[%184, %c32_73] : memref<56x64xf32, #tpu.memory_space<vmem>>, vector<8x32xf32>
    tpu.vector_store %arg15[%184, %c32_73], %183 {strides = array<i32>} : memref<56x64xf32, #tpu.memory_space<vmem>>, vector<8x32xf32>,
    %186 = arith.mulf %174, %178 : vector<8x64xf32>
    %c2_i32 = arith.constant 2 : i32
    %c8_i32_74 = arith.constant 8 : i32
    %187 = arith.muli %c2_i32, %c8_i32_74 : i32
    %188 = tpu.assume_multiple %187, 8 : i32
    %c6_i32_75 = arith.constant 6 : i32
    %189 = arith.subi %c6_i32_75, %c2_i32 : i32
    %c8_i32_76 = arith.constant 8 : i32
    %190 = arith.muli %189, %c8_i32_76 : i32
    %191 = tpu.assume_multiple %190, 8 : i32
    %192 = arith.index_cast %188 : i32 to index
    %c0_77 = arith.constant 0 : index
    %193 = vector.load %arg14[%192, %c0_77] : memref<56x256xf32, #tpu.memory_space<vmem>>, vector<8x256xf32>
    %194 = arith.index_cast %191 : i32 to index
    %c0_78 = arith.constant 0 : index
    %195 = vector.load %arg14[%194, %c0_78] : memref<56x256xf32, #tpu.memory_space<vmem>>, vector<8x256xf32>
    %196 = arith.select %77, %193, %195 : vector<8x256xi1>, vector<8x256xf32>
    %c0_79 = arith.constant 0 : index
    %c0_80 = arith.constant 0 : index
    %197 = vector.load %arg5[%c0_79, %c0_80] : memref<64x256xf32, #tpu.memory_space<vmem>>, vector<64x256xf32>
    %cst_81 = arith.constant dense<0.000000e+00> : vector<8x256xf32>
    %198 = tpu.matmul %179, %197, %cst_81 {dimension_numbers = #tpu.dot_dimension_numbers<[1], [0], [0], [1], [0, 0, 1, 1], [], []>} : vector<8x64xf32>, vector<64x256xf32>, vector<8x256xf32> -> vector<8x256xf32>
    %199 = arith.addf %196, %198 : vector<8x256xf32>
    %cst_82 = arith.constant 5.000000e-01 : f32
    %200 = vector.broadcast %cst_82 : f32 to vector<8x256xf32>
    %201 = arith.mulf %200, %199 : vector<8x256xf32>
    %202 = math.tanh %201 : vector<8x256xf32>
    %cst_83 = arith.constant 1.000000e+00 : f32
    %203 = vector.broadcast %cst_83 : f32 to vector<8x256xf32>
    %204 = arith.addf %202, %203 : vector<8x256xf32>
    %cst_84 = arith.constant 5.000000e-01 : f32
    %205 = vector.broadcast %cst_84 : f32 to vector<8x256xf32>
    %206 = arith.mulf %205, %204 : vector<8x256xf32>
    %207 = vector.extract_strided_slice %202 {offsets = [0, 128], sizes = [8, 128], strides = [1, 1]} : vector<8x256xf32> to vector<8x128xf32>
    %cst_85 = arith.constant 2.000000e+00 : f32
    %208 = vector.broadcast %cst_85 : f32 to vector<8x128xf32>
    %209 = arith.mulf %208, %207 : vector<8x128xf32>
    %210 = arith.mulf %207, %207 : vector<8x128xf32>
    %cst_86 = arith.constant 1.000000e+00 : f32
    %211 = vector.broadcast %cst_86 : f32 to vector<8x128xf32>
    %212 = arith.addf %211, %210 : vector<8x128xf32>
    %213 = tpu.reciprocal %212 {approx = true} : vector<8x128xf32> -> vector<8x128xf32>
    %214 = arith.mulf %209, %213 : vector<8x128xf32>
    %215 = vector.extract_strided_slice %206 {offsets = [0, 128], sizes = [8, 128], strides = [1, 1]} : vector<8x256xf32> to vector<8x128xf32>
    %216 = arith.select %80, %214, %215 : vector<8x128xi1>, vector<8x128xf32>
    %217 = vector.extract_strided_slice %206 {offsets = [0, 0], sizes = [8, 64], strides = [1, 1]} : vector<8x256xf32> to vector<8x64xf32>
    %218 = vector.extract_strided_slice %206 {offsets = [0, 64], sizes = [8, 64], strides = [1, 1]} : vector<8x256xf32> to vector<8x64xf32>
    %219 = vector.extract_strided_slice %216 {offsets = [0, 0], sizes = [8, 64], strides = [1, 1]} : vector<8x128xf32> to vector<8x64xf32>
    %220 = vector.extract_strided_slice %216 {offsets = [0, 64], sizes = [8, 64], strides = [1, 1]} : vector<8x128xf32> to vector<8x64xf32>
    %221 = arith.mulf %218, %186 : vector<8x64xf32>
    %222 = arith.mulf %217, %219 : vector<8x64xf32>
    %223 = arith.addf %221, %222 : vector<8x64xf32>
    %224 = math.tanh %223 : vector<8x64xf32>
    %225 = arith.mulf %220, %224 : vector<8x64xf32>
    %226 = arith.index_cast %191 : i32 to index
    %c0_87 = arith.constant 0 : index
    %227 = vector.load %arg2[%226, %c0_87] : memref<56x64xf32, #tpu.memory_space<vmem>>, vector<8x64xf32>
    %228 = arith.mulf %225, %227 : vector<8x64xf32>
    %229 = vector.extract_strided_slice %225 {offsets = [0, 0], sizes = [8, 32], strides = [1, 1]} : vector<8x64xf32> to vector<8x32xf32>
    %230 = arith.index_cast %188 : i32 to index
    %c0_88 = arith.constant 0 : index
    %231 = vector.load %arg15[%230, %c0_88] : memref<56x64xf32, #tpu.memory_space<vmem>>, vector<8x32xf32>
    tpu.vector_store %arg15[%230, %c0_88], %229 {strides = array<i32>} : memref<56x64xf32, #tpu.memory_space<vmem>>, vector<8x32xf32>,
    %232 = vector.extract_strided_slice %228 {offsets = [0, 32], sizes = [8, 32], strides = [1, 1]} : vector<8x64xf32> to vector<8x32xf32>
    %233 = arith.index_cast %191 : i32 to index
    %c32_89 = arith.constant 32 : index
    %234 = vector.load %arg15[%233, %c32_89] : memref<56x64xf32, #tpu.memory_space<vmem>>, vector<8x32xf32>
    tpu.vector_store %arg15[%233, %c32_89], %232 {strides = array<i32>} : memref<56x64xf32, #tpu.memory_space<vmem>>, vector<8x32xf32>,
    %235 = arith.mulf %223, %227 : vector<8x64xf32>
    %c3_i32 = arith.constant 3 : i32
    %c8_i32_90 = arith.constant 8 : i32
    %236 = arith.muli %c3_i32, %c8_i32_90 : i32
    %237 = tpu.assume_multiple %236, 8 : i32
    %c6_i32_91 = arith.constant 6 : i32
    %238 = arith.subi %c6_i32_91, %c3_i32 : i32
    %c8_i32_92 = arith.constant 8 : i32
    %239 = arith.muli %238, %c8_i32_92 : i32
    %240 = tpu.assume_multiple %239, 8 : i32
    %241 = arith.index_cast %237 : i32 to index
    %c0_93 = arith.constant 0 : index
    %242 = vector.load %arg14[%241, %c0_93] : memref<56x256xf32, #tpu.memory_space<vmem>>, vector<8x256xf32>
    %243 = arith.index_cast %240 : i32 to index
    %c0_94 = arith.constant 0 : index
    %244 = vector.load %arg14[%243, %c0_94] : memref<56x256xf32, #tpu.memory_space<vmem>>, vector<8x256xf32>
    %245 = arith.select %77, %242, %244 : vector<8x256xi1>, vector<8x256xf32>
    %c0_95 = arith.constant 0 : index
    %c0_96 = arith.constant 0 : index
    %246 = vector.load %arg5[%c0_95, %c0_96] : memref<64x256xf32, #tpu.memory_space<vmem>>, vector<64x256xf32>
    %cst_97 = arith.constant dense<0.000000e+00> : vector<8x256xf32>
    %247 = tpu.matmul %228, %246, %cst_97 {dimension_numbers = #tpu.dot_dimension_numbers<[1], [0], [0], [1], [0, 0, 1, 1], [], []>} : vector<8x64xf32>, vector<64x256xf32>, vector<8x256xf32> -> vector<8x256xf32>
    %248 = arith.addf %245, %247 : vector<8x256xf32>
    %cst_98 = arith.constant 5.000000e-01 : f32
    %249 = vector.broadcast %cst_98 : f32 to vector<8x256xf32>
    %250 = arith.mulf %249, %248 : vector<8x256xf32>
    %251 = math.tanh %250 : vector<8x256xf32>
    %cst_99 = arith.constant 1.000000e+00 : f32
    %252 = vector.broadcast %cst_99 : f32 to vector<8x256xf32>
    %253 = arith.addf %251, %252 : vector<8x256xf32>
    %cst_100 = arith.constant 5.000000e-01 : f32
    %254 = vector.broadcast %cst_100 : f32 to vector<8x256xf32>
    %255 = arith.mulf %254, %253 : vector<8x256xf32>
    %256 = vector.extract_strided_slice %251 {offsets = [0, 128], sizes = [8, 128], strides = [1, 1]} : vector<8x256xf32> to vector<8x128xf32>
    %cst_101 = arith.constant 2.000000e+00 : f32
    %257 = vector.broadcast %cst_101 : f32 to vector<8x128xf32>
    %258 = arith.mulf %257, %256 : vector<8x128xf32>
    %259 = arith.mulf %256, %256 : vector<8x128xf32>
    %cst_102 = arith.constant 1.000000e+00 : f32
    %260 = vector.broadcast %cst_102 : f32 to vector<8x128xf32>
    %261 = arith.addf %260, %259 : vector<8x128xf32>
    %262 = tpu.reciprocal %261 {approx = true} : vector<8x128xf32> -> vector<8x128xf32>
    %263 = arith.mulf %258, %262 : vector<8x128xf32>
    %264 = vector.extract_strided_slice %255 {offsets = [0, 128], sizes = [8, 128], strides = [1, 1]} : vector<8x256xf32> to vector<8x128xf32>
    %265 = arith.select %80, %263, %264 : vector<8x128xi1>, vector<8x128xf32>
    %266 = vector.extract_strided_slice %255 {offsets = [0, 0], sizes = [8, 64], strides = [1, 1]} : vector<8x256xf32> to vector<8x64xf32>
    %267 = vector.extract_strided_slice %255 {offsets = [0, 64], sizes = [8, 64], strides = [1, 1]} : vector<8x256xf32> to vector<8x64xf32>
    %268 = vector.extract_strided_slice %265 {offsets = [0, 0], sizes = [8, 64], strides = [1, 1]} : vector<8x128xf32> to vector<8x64xf32>
    %269 = vector.extract_strided_slice %265 {offsets = [0, 64], sizes = [8, 64], strides = [1, 1]} : vector<8x128xf32> to vector<8x64xf32>
    %270 = arith.mulf %267, %235 : vector<8x64xf32>
    %271 = arith.mulf %266, %268 : vector<8x64xf32>
    %272 = arith.addf %270, %271 : vector<8x64xf32>
    %273 = math.tanh %272 : vector<8x64xf32>
    %274 = arith.mulf %269, %273 : vector<8x64xf32>
    %275 = arith.index_cast %240 : i32 to index
    %c0_103 = arith.constant 0 : index
    %276 = vector.load %arg2[%275, %c0_103] : memref<56x64xf32, #tpu.memory_space<vmem>>, vector<8x64xf32>
    %277 = arith.mulf %274, %276 : vector<8x64xf32>
    %278 = vector.extract_strided_slice %274 {offsets = [0, 0], sizes = [8, 32], strides = [1, 1]} : vector<8x64xf32> to vector<8x32xf32>
    %279 = arith.index_cast %237 : i32 to index
    %c0_104 = arith.constant 0 : index
    %280 = vector.load %arg15[%279, %c0_104] : memref<56x64xf32, #tpu.memory_space<vmem>>, vector<8x32xf32>
    tpu.vector_store %arg15[%279, %c0_104], %278 {strides = array<i32>} : memref<56x64xf32, #tpu.memory_space<vmem>>, vector<8x32xf32>,
    %281 = vector.extract_strided_slice %277 {offsets = [0, 32], sizes = [8, 32], strides = [1, 1]} : vector<8x64xf32> to vector<8x32xf32>
    %282 = arith.index_cast %240 : i32 to index
    %c32_105 = arith.constant 32 : index
    %283 = vector.load %arg15[%282, %c32_105] : memref<56x64xf32, #tpu.memory_space<vmem>>, vector<8x32xf32>
    tpu.vector_store %arg15[%282, %c32_105], %281 {strides = array<i32>} : memref<56x64xf32, #tpu.memory_space<vmem>>, vector<8x32xf32>,
    %284 = arith.mulf %272, %276 : vector<8x64xf32>
    %c4_i32 = arith.constant 4 : i32
    %c8_i32_106 = arith.constant 8 : i32
    %285 = arith.muli %c4_i32, %c8_i32_106 : i32
    %286 = tpu.assume_multiple %285, 8 : i32
    %c6_i32_107 = arith.constant 6 : i32
    %287 = arith.subi %c6_i32_107, %c4_i32 : i32
    %c8_i32_108 = arith.constant 8 : i32
    %288 = arith.muli %287, %c8_i32_108 : i32
    %289 = tpu.assume_multiple %288, 8 : i32
    %290 = arith.index_cast %286 : i32 to index
    %c0_109 = arith.constant 0 : index
    %291 = vector.load %arg14[%290, %c0_109] : memref<56x256xf32, #tpu.memory_space<vmem>>, vector<8x256xf32>
    %292 = arith.index_cast %289 : i32 to index
    %c0_110 = arith.constant 0 : index
    %293 = vector.load %arg14[%292, %c0_110] : memref<56x256xf32, #tpu.memory_space<vmem>>, vector<8x256xf32>
    %294 = arith.select %77, %291, %293 : vector<8x256xi1>, vector<8x256xf32>
    %c0_111 = arith.constant 0 : index
    %c0_112 = arith.constant 0 : index
    %295 = vector.load %arg5[%c0_111, %c0_112] : memref<64x256xf32, #tpu.memory_space<vmem>>, vector<64x256xf32>
    %cst_113 = arith.constant dense<0.000000e+00> : vector<8x256xf32>
    %296 = tpu.matmul %277, %295, %cst_113 {dimension_numbers = #tpu.dot_dimension_numbers<[1], [0], [0], [1], [0, 0, 1, 1], [], []>} : vector<8x64xf32>, vector<64x256xf32>, vector<8x256xf32> -> vector<8x256xf32>
    %297 = arith.addf %294, %296 : vector<8x256xf32>
    %cst_114 = arith.constant 5.000000e-01 : f32
    %298 = vector.broadcast %cst_114 : f32 to vector<8x256xf32>
    %299 = arith.mulf %298, %297 : vector<8x256xf32>
    %300 = math.tanh %299 : vector<8x256xf32>
    %cst_115 = arith.constant 1.000000e+00 : f32
    %301 = vector.broadcast %cst_115 : f32 to vector<8x256xf32>
    %302 = arith.addf %300, %301 : vector<8x256xf32>
    %cst_116 = arith.constant 5.000000e-01 : f32
    %303 = vector.broadcast %cst_116 : f32 to vector<8x256xf32>
    %304 = arith.mulf %303, %302 : vector<8x256xf32>
    %305 = vector.extract_strided_slice %300 {offsets = [0, 128], sizes = [8, 128], strides = [1, 1]} : vector<8x256xf32> to vector<8x128xf32>
    %cst_117 = arith.constant 2.000000e+00 : f32
    %306 = vector.broadcast %cst_117 : f32 to vector<8x128xf32>
    %307 = arith.mulf %306, %305 : vector<8x128xf32>
    %308 = arith.mulf %305, %305 : vector<8x128xf32>
    %cst_118 = arith.constant 1.000000e+00 : f32
    %309 = vector.broadcast %cst_118 : f32 to vector<8x128xf32>
    %310 = arith.addf %309, %308 : vector<8x128xf32>
    %311 = tpu.reciprocal %310 {approx = true} : vector<8x128xf32> -> vector<8x128xf32>
    %312 = arith.mulf %307, %311 : vector<8x128xf32>
    %313 = vector.extract_strided_slice %304 {offsets = [0, 128], sizes = [8, 128], strides = [1, 1]} : vector<8x256xf32> to vector<8x128xf32>
    %314 = arith.select %80, %312, %313 : vector<8x128xi1>, vector<8x128xf32>
    %315 = vector.extract_strided_slice %304 {offsets = [0, 0], sizes = [8, 64], strides = [1, 1]} : vector<8x256xf32> to vector<8x64xf32>
    %316 = vector.extract_strided_slice %304 {offsets = [0, 64], sizes = [8, 64], strides = [1, 1]} : vector<8x256xf32> to vector<8x64xf32>
    %317 = vector.extract_strided_slice %314 {offsets = [0, 0], sizes = [8, 64], strides = [1, 1]} : vector<8x128xf32> to vector<8x64xf32>
    %318 = vector.extract_strided_slice %314 {offsets = [0, 64], sizes = [8, 64], strides = [1, 1]} : vector<8x128xf32> to vector<8x64xf32>
    %319 = arith.mulf %316, %284 : vector<8x64xf32>
    %320 = arith.mulf %315, %317 : vector<8x64xf32>
    %321 = arith.addf %319, %320 : vector<8x64xf32>
    %322 = math.tanh %321 : vector<8x64xf32>
    %323 = arith.mulf %318, %322 : vector<8x64xf32>
    %324 = arith.index_cast %289 : i32 to index
    %c0_119 = arith.constant 0 : index
    %325 = vector.load %arg2[%324, %c0_119] : memref<56x64xf32, #tpu.memory_space<vmem>>, vector<8x64xf32>
    %326 = arith.mulf %323, %325 : vector<8x64xf32>
    %327 = vector.extract_strided_slice %323 {offsets = [0, 0], sizes = [8, 32], strides = [1, 1]} : vector<8x64xf32> to vector<8x32xf32>
    %328 = arith.index_cast %286 : i32 to index
    %c0_120 = arith.constant 0 : index
    %329 = vector.load %arg15[%328, %c0_120] : memref<56x64xf32, #tpu.memory_space<vmem>>, vector<8x32xf32>
    tpu.vector_store %arg15[%328, %c0_120], %327 {strides = array<i32>} : memref<56x64xf32, #tpu.memory_space<vmem>>, vector<8x32xf32>,
    %330 = vector.extract_strided_slice %326 {offsets = [0, 32], sizes = [8, 32], strides = [1, 1]} : vector<8x64xf32> to vector<8x32xf32>
    %331 = arith.index_cast %289 : i32 to index
    %c32_121 = arith.constant 32 : index
    %332 = vector.load %arg15[%331, %c32_121] : memref<56x64xf32, #tpu.memory_space<vmem>>, vector<8x32xf32>
    tpu.vector_store %arg15[%331, %c32_121], %330 {strides = array<i32>} : memref<56x64xf32, #tpu.memory_space<vmem>>, vector<8x32xf32>,
    %333 = arith.mulf %321, %325 : vector<8x64xf32>
    %c5_i32 = arith.constant 5 : i32
    %c8_i32_122 = arith.constant 8 : i32
    %334 = arith.muli %c5_i32, %c8_i32_122 : i32
    %335 = tpu.assume_multiple %334, 8 : i32
    %c6_i32_123 = arith.constant 6 : i32
    %336 = arith.subi %c6_i32_123, %c5_i32 : i32
    %c8_i32_124 = arith.constant 8 : i32
    %337 = arith.muli %336, %c8_i32_124 : i32
    %338 = tpu.assume_multiple %337, 8 : i32
    %339 = arith.index_cast %335 : i32 to index
    %c0_125 = arith.constant 0 : index
    %340 = vector.load %arg14[%339, %c0_125] : memref<56x256xf32, #tpu.memory_space<vmem>>, vector<8x256xf32>
    %341 = arith.index_cast %338 : i32 to index
    %c0_126 = arith.constant 0 : index
    %342 = vector.load %arg14[%341, %c0_126] : memref<56x256xf32, #tpu.memory_space<vmem>>, vector<8x256xf32>
    %343 = arith.select %77, %340, %342 : vector<8x256xi1>, vector<8x256xf32>
    %c0_127 = arith.constant 0 : index
    %c0_128 = arith.constant 0 : index
    %344 = vector.load %arg5[%c0_127, %c0_128] : memref<64x256xf32, #tpu.memory_space<vmem>>, vector<64x256xf32>
    %cst_129 = arith.constant dense<0.000000e+00> : vector<8x256xf32>
    %345 = tpu.matmul %326, %344, %cst_129 {dimension_numbers = #tpu.dot_dimension_numbers<[1], [0], [0], [1], [0, 0, 1, 1], [], []>} : vector<8x64xf32>, vector<64x256xf32>, vector<8x256xf32> -> vector<8x256xf32>
    %346 = arith.addf %343, %345 : vector<8x256xf32>
    %cst_130 = arith.constant 5.000000e-01 : f32
    %347 = vector.broadcast %cst_130 : f32 to vector<8x256xf32>
    %348 = arith.mulf %347, %346 : vector<8x256xf32>
    %349 = math.tanh %348 : vector<8x256xf32>
    %cst_131 = arith.constant 1.000000e+00 : f32
    %350 = vector.broadcast %cst_131 : f32 to vector<8x256xf32>
    %351 = arith.addf %349, %350 : vector<8x256xf32>
    %cst_132 = arith.constant 5.000000e-01 : f32
    %352 = vector.broadcast %cst_132 : f32 to vector<8x256xf32>
    %353 = arith.mulf %352, %351 : vector<8x256xf32>
    %354 = vector.extract_strided_slice %349 {offsets = [0, 128], sizes = [8, 128], strides = [1, 1]} : vector<8x256xf32> to vector<8x128xf32>
    %cst_133 = arith.constant 2.000000e+00 : f32
    %355 = vector.broadcast %cst_133 : f32 to vector<8x128xf32>
    %356 = arith.mulf %355, %354 : vector<8x128xf32>
    %357 = arith.mulf %354, %354 : vector<8x128xf32>
    %cst_134 = arith.constant 1.000000e+00 : f32
    %358 = vector.broadcast %cst_134 : f32 to vector<8x128xf32>
    %359 = arith.addf %358, %357 : vector<8x128xf32>
    %360 = tpu.reciprocal %359 {approx = true} : vector<8x128xf32> -> vector<8x128xf32>
    %361 = arith.mulf %356, %360 : vector<8x128xf32>
    %362 = vector.extract_strided_slice %353 {offsets = [0, 128], sizes = [8, 128], strides = [1, 1]} : vector<8x256xf32> to vector<8x128xf32>
    %363 = arith.select %80, %361, %362 : vector<8x128xi1>, vector<8x128xf32>
    %364 = vector.extract_strided_slice %353 {offsets = [0, 0], sizes = [8, 64], strides = [1, 1]} : vector<8x256xf32> to vector<8x64xf32>
    %365 = vector.extract_strided_slice %353 {offsets = [0, 64], sizes = [8, 64], strides = [1, 1]} : vector<8x256xf32> to vector<8x64xf32>
    %366 = vector.extract_strided_slice %363 {offsets = [0, 0], sizes = [8, 64], strides = [1, 1]} : vector<8x128xf32> to vector<8x64xf32>
    %367 = vector.extract_strided_slice %363 {offsets = [0, 64], sizes = [8, 64], strides = [1, 1]} : vector<8x128xf32> to vector<8x64xf32>
    %368 = arith.mulf %365, %333 : vector<8x64xf32>
    %369 = arith.mulf %364, %366 : vector<8x64xf32>
    %370 = arith.addf %368, %369 : vector<8x64xf32>
    %371 = math.tanh %370 : vector<8x64xf32>
    %372 = arith.mulf %367, %371 : vector<8x64xf32>
    %373 = arith.index_cast %338 : i32 to index
    %c0_135 = arith.constant 0 : index
    %374 = vector.load %arg2[%373, %c0_135] : memref<56x64xf32, #tpu.memory_space<vmem>>, vector<8x64xf32>
    %375 = arith.mulf %372, %374 : vector<8x64xf32>
    %376 = vector.extract_strided_slice %372 {offsets = [0, 0], sizes = [8, 32], strides = [1, 1]} : vector<8x64xf32> to vector<8x32xf32>
    %377 = arith.index_cast %335 : i32 to index
    %c0_136 = arith.constant 0 : index
    %378 = vector.load %arg15[%377, %c0_136] : memref<56x64xf32, #tpu.memory_space<vmem>>, vector<8x32xf32>
    tpu.vector_store %arg15[%377, %c0_136], %376 {strides = array<i32>} : memref<56x64xf32, #tpu.memory_space<vmem>>, vector<8x32xf32>,
    %379 = vector.extract_strided_slice %375 {offsets = [0, 32], sizes = [8, 32], strides = [1, 1]} : vector<8x64xf32> to vector<8x32xf32>
    %380 = arith.index_cast %338 : i32 to index
    %c32_137 = arith.constant 32 : index
    %381 = vector.load %arg15[%380, %c32_137] : memref<56x64xf32, #tpu.memory_space<vmem>>, vector<8x32xf32>
    tpu.vector_store %arg15[%380, %c32_137], %379 {strides = array<i32>} : memref<56x64xf32, #tpu.memory_space<vmem>>, vector<8x32xf32>,
    %382 = arith.mulf %370, %374 : vector<8x64xf32>
    %c6_i32_138 = arith.constant 6 : i32
    %c8_i32_139 = arith.constant 8 : i32
    %383 = arith.muli %c6_i32_138, %c8_i32_139 : i32
    %384 = tpu.assume_multiple %383, 8 : i32
    %c6_i32_140 = arith.constant 6 : i32
    %385 = arith.subi %c6_i32_140, %c6_i32_138 : i32
    %c8_i32_141 = arith.constant 8 : i32
    %386 = arith.muli %385, %c8_i32_141 : i32
    %387 = tpu.assume_multiple %386, 8 : i32
    %388 = arith.index_cast %384 : i32 to index
    %c0_142 = arith.constant 0 : index
    %389 = vector.load %arg14[%388, %c0_142] : memref<56x256xf32, #tpu.memory_space<vmem>>, vector<8x256xf32>
    %390 = arith.index_cast %387 : i32 to index
    %c0_143 = arith.constant 0 : index
    %391 = vector.load %arg14[%390, %c0_143] : memref<56x256xf32, #tpu.memory_space<vmem>>, vector<8x256xf32>
    %392 = arith.select %77, %389, %391 : vector<8x256xi1>, vector<8x256xf32>
    %c0_144 = arith.constant 0 : index
    %c0_145 = arith.constant 0 : index
    %393 = vector.load %arg5[%c0_144, %c0_145] : memref<64x256xf32, #tpu.memory_space<vmem>>, vector<64x256xf32>
    %cst_146 = arith.constant dense<0.000000e+00> : vector<8x256xf32>
    %394 = tpu.matmul %375, %393, %cst_146 {dimension_numbers = #tpu.dot_dimension_numbers<[1], [0], [0], [1], [0, 0, 1, 1], [], []>} : vector<8x64xf32>, vector<64x256xf32>, vector<8x256xf32> -> vector<8x256xf32>
    %395 = arith.addf %392, %394 : vector<8x256xf32>
    %cst_147 = arith.constant 5.000000e-01 : f32
    %396 = vector.broadcast %cst_147 : f32 to vector<8x256xf32>
    %397 = arith.mulf %396, %395 : vector<8x256xf32>
    %398 = math.tanh %397 : vector<8x256xf32>
    %cst_148 = arith.constant 1.000000e+00 : f32
    %399 = vector.broadcast %cst_148 : f32 to vector<8x256xf32>
    %400 = arith.addf %398, %399 : vector<8x256xf32>
    %cst_149 = arith.constant 5.000000e-01 : f32
    %401 = vector.broadcast %cst_149 : f32 to vector<8x256xf32>
    %402 = arith.mulf %401, %400 : vector<8x256xf32>
    %403 = vector.extract_strided_slice %398 {offsets = [0, 128], sizes = [8, 128], strides = [1, 1]} : vector<8x256xf32> to vector<8x128xf32>
    %cst_150 = arith.constant 2.000000e+00 : f32
    %404 = vector.broadcast %cst_150 : f32 to vector<8x128xf32>
    %405 = arith.mulf %404, %403 : vector<8x128xf32>
    %406 = arith.mulf %403, %403 : vector<8x128xf32>
    %cst_151 = arith.constant 1.000000e+00 : f32
    %407 = vector.broadcast %cst_151 : f32 to vector<8x128xf32>
    %408 = arith.addf %407, %406 : vector<8x128xf32>
    %409 = tpu.reciprocal %408 {approx = true} : vector<8x128xf32> -> vector<8x128xf32>
    %410 = arith.mulf %405, %409 : vector<8x128xf32>
    %411 = vector.extract_strided_slice %402 {offsets = [0, 128], sizes = [8, 128], strides = [1, 1]} : vector<8x256xf32> to vector<8x128xf32>
    %412 = arith.select %80, %410, %411 : vector<8x128xi1>, vector<8x128xf32>
    %413 = vector.extract_strided_slice %402 {offsets = [0, 0], sizes = [8, 64], strides = [1, 1]} : vector<8x256xf32> to vector<8x64xf32>
    %414 = vector.extract_strided_slice %402 {offsets = [0, 64], sizes = [8, 64], strides = [1, 1]} : vector<8x256xf32> to vector<8x64xf32>
    %415 = vector.extract_strided_slice %412 {offsets = [0, 0], sizes = [8, 64], strides = [1, 1]} : vector<8x128xf32> to vector<8x64xf32>
    %416 = vector.extract_strided_slice %412 {offsets = [0, 64], sizes = [8, 64], strides = [1, 1]} : vector<8x128xf32> to vector<8x64xf32>
    %417 = arith.mulf %414, %382 : vector<8x64xf32>
    %418 = arith.mulf %413, %415 : vector<8x64xf32>
    %419 = arith.addf %417, %418 : vector<8x64xf32>
    %420 = math.tanh %419 : vector<8x64xf32>
    %421 = arith.mulf %416, %420 : vector<8x64xf32>
    %422 = arith.index_cast %387 : i32 to index
    %c0_152 = arith.constant 0 : index
    %423 = vector.load %arg2[%422, %c0_152] : memref<56x64xf32, #tpu.memory_space<vmem>>, vector<8x64xf32>
    %424 = arith.mulf %421, %423 : vector<8x64xf32>
    %425 = vector.extract_strided_slice %421 {offsets = [0, 0], sizes = [8, 32], strides = [1, 1]} : vector<8x64xf32> to vector<8x32xf32>
    %426 = arith.index_cast %384 : i32 to index
    %c0_153 = arith.constant 0 : index
    %427 = vector.load %arg15[%426, %c0_153] : memref<56x64xf32, #tpu.memory_space<vmem>>, vector<8x32xf32>
    tpu.vector_store %arg15[%426, %c0_153], %425 {strides = array<i32>} : memref<56x64xf32, #tpu.memory_space<vmem>>, vector<8x32xf32>,
    %428 = vector.extract_strided_slice %424 {offsets = [0, 32], sizes = [8, 32], strides = [1, 1]} : vector<8x64xf32> to vector<8x32xf32>
    %429 = arith.index_cast %387 : i32 to index
    %c32_154 = arith.constant 32 : index
    %430 = vector.load %arg15[%429, %c32_154] : memref<56x64xf32, #tpu.memory_space<vmem>>, vector<8x32xf32>
    tpu.vector_store %arg15[%429, %c32_154], %428 {strides = array<i32>} : memref<56x64xf32, #tpu.memory_space<vmem>>, vector<8x32xf32>,
    %431 = arith.mulf %419, %423 : vector<8x64xf32>
    %c7_i32 = arith.constant 7 : i32
    %c0_155 = arith.constant 0 : index
    %c0_156 = arith.constant 0 : index
    %432 = vector.load %arg15[%c0_155, %c0_156] : memref<56x64xf32, #tpu.memory_space<vmem>>, vector<56x64xf32>
    %c0_157 = arith.constant 0 : index
    %c0_158 = arith.constant 0 : index
    %433 = vector.load %arg7[%c0_157, %c0_158] : memref<64x256xf32, #tpu.memory_space<vmem>>, vector<64x256xf32>
    %cst_159 = arith.constant dense<0.000000e+00> : vector<56x256xf32>
    %434 = tpu.matmul %432, %433, %cst_159 {dimension_numbers = #tpu.dot_dimension_numbers<[1], [0], [0], [1], [0, 0, 1, 1], [], []>} : vector<56x64xf32>, vector<64x256xf32>, vector<56x256xf32> -> vector<56x256xf32>
    %c0_160 = arith.constant 0 : index
    %c0_161 = arith.constant 0 : index
    %435 = vector.load %arg9[%c0_160, %c0_161] : memref<1x256xf32, #tpu.memory_space<vmem>>, vector<1x256xf32>
    %436 = vector.broadcast %435 : vector<1x256xf32> to vector<56x256xf32>
    %437 = arith.addf %434, %436 : vector<56x256xf32>
    %c0_162 = arith.constant 0 : index
    %c0_163 = arith.constant 0 : index
    %438 = vector.load %arg14[%c0_162, %c0_163] : memref<56x256xf32, #tpu.memory_space<vmem>>, vector<56x256xf32>
    tpu.vector_store %arg14[%c0_162, %c0_163], %437 {strides = array<i32>} : memref<56x256xf32, #tpu.memory_space<vmem>>, vector<56x256xf32>,
    %cst_164 = arith.constant 0.000000e+00 : f32
    %439 = vector.broadcast %cst_164 : f32 to vector<8x64xf32>
    %c0_i32_165 = arith.constant 0 : i32
    %c8_i32_166 = arith.constant 8 : i32
    %440 = arith.muli %c0_i32_165, %c8_i32_166 : i32
    %441 = tpu.assume_multiple %440, 8 : i32
    %c6_i32_167 = arith.constant 6 : i32
    %442 = arith.subi %c6_i32_167, %c0_i32_165 : i32
    %c8_i32_168 = arith.constant 8 : i32
    %443 = arith.muli %442, %c8_i32_168 : i32
    %444 = tpu.assume_multiple %443, 8 : i32
    %445 = arith.index_cast %441 : i32 to index
    %c0_169 = arith.constant 0 : index
    %446 = vector.load %arg14[%445, %c0_169] : memref<56x256xf32, #tpu.memory_space<vmem>>, vector<8x256xf32>
    %447 = arith.index_cast %444 : i32 to index
    %c0_170 = arith.constant 0 : index
    %448 = vector.load %arg14[%447, %c0_170] : memref<56x256xf32, #tpu.memory_space<vmem>>, vector<8x256xf32>
    %449 = arith.select %77, %446, %448 : vector<8x256xi1>, vector<8x256xf32>
    %c0_171 = arith.constant 0 : index
    %c0_172 = arith.constant 0 : index
    %450 = vector.load %arg8[%c0_171, %c0_172] : memref<64x256xf32, #tpu.memory_space<vmem>>, vector<64x256xf32>
    %cst_173 = arith.constant dense<0.000000e+00> : vector<8x256xf32>
    %451 = tpu.matmul %439, %450, %cst_173 {dimension_numbers = #tpu.dot_dimension_numbers<[1], [0], [0], [1], [0, 0, 1, 1], [], []>} : vector<8x64xf32>, vector<64x256xf32>, vector<8x256xf32> -> vector<8x256xf32>
    %452 = arith.addf %449, %451 : vector<8x256xf32>
    %cst_174 = arith.constant 5.000000e-01 : f32
    %453 = vector.broadcast %cst_174 : f32 to vector<8x256xf32>
    %454 = arith.mulf %453, %452 : vector<8x256xf32>
    %455 = math.tanh %454 : vector<8x256xf32>
    %cst_175 = arith.constant 1.000000e+00 : f32
    %456 = vector.broadcast %cst_175 : f32 to vector<8x256xf32>
    %457 = arith.addf %455, %456 : vector<8x256xf32>
    %cst_176 = arith.constant 5.000000e-01 : f32
    %458 = vector.broadcast %cst_176 : f32 to vector<8x256xf32>
    %459 = arith.mulf %458, %457 : vector<8x256xf32>
    %460 = vector.extract_strided_slice %455 {offsets = [0, 128], sizes = [8, 128], strides = [1, 1]} : vector<8x256xf32> to vector<8x128xf32>
    %cst_177 = arith.constant 2.000000e+00 : f32
    %461 = vector.broadcast %cst_177 : f32 to vector<8x128xf32>
    %462 = arith.mulf %461, %460 : vector<8x128xf32>
    %463 = arith.mulf %460, %460 : vector<8x128xf32>
    %cst_178 = arith.constant 1.000000e+00 : f32
    %464 = vector.broadcast %cst_178 : f32 to vector<8x128xf32>
    %465 = arith.addf %464, %463 : vector<8x128xf32>
    %466 = tpu.reciprocal %465 {approx = true} : vector<8x128xf32> -> vector<8x128xf32>
    %467 = arith.mulf %462, %466 : vector<8x128xf32>
    %468 = vector.extract_strided_slice %459 {offsets = [0, 128], sizes = [8, 128], strides = [1, 1]} : vector<8x256xf32> to vector<8x128xf32>
    %469 = arith.select %80, %467, %468 : vector<8x128xi1>, vector<8x128xf32>
    %470 = vector.extract_strided_slice %459 {offsets = [0, 0], sizes = [8, 64], strides = [1, 1]} : vector<8x256xf32> to vector<8x64xf32>
    %471 = vector.extract_strided_slice %459 {offsets = [0, 64], sizes = [8, 64], strides = [1, 1]} : vector<8x256xf32> to vector<8x64xf32>
    %472 = vector.extract_strided_slice %469 {offsets = [0, 0], sizes = [8, 64], strides = [1, 1]} : vector<8x128xf32> to vector<8x64xf32>
    %473 = vector.extract_strided_slice %469 {offsets = [0, 64], sizes = [8, 64], strides = [1, 1]} : vector<8x128xf32> to vector<8x64xf32>
    %474 = arith.mulf %471, %439 : vector<8x64xf32>
    %475 = arith.mulf %470, %472 : vector<8x64xf32>
    %476 = arith.addf %474, %475 : vector<8x64xf32>
    %477 = math.tanh %476 : vector<8x64xf32>
    %478 = arith.mulf %473, %477 : vector<8x64xf32>
    %479 = arith.index_cast %444 : i32 to index
    %c0_179 = arith.constant 0 : index
    %480 = vector.load %arg2[%479, %c0_179] : memref<56x64xf32, #tpu.memory_space<vmem>>, vector<8x64xf32>
    %481 = arith.mulf %478, %480 : vector<8x64xf32>
    %482 = vector.extract_strided_slice %478 {offsets = [0, 0], sizes = [8, 32], strides = [1, 1]} : vector<8x64xf32> to vector<8x32xf32>
    %483 = arith.index_cast %441 : i32 to index
    %c0_180 = arith.constant 0 : index
    %484 = vector.load %arg16[%483, %c0_180] : memref<56x64xf32, #tpu.memory_space<vmem>>, vector<8x32xf32>
    tpu.vector_store %arg16[%483, %c0_180], %482 {strides = array<i32>} : memref<56x64xf32, #tpu.memory_space<vmem>>, vector<8x32xf32>,
    %485 = vector.extract_strided_slice %481 {offsets = [0, 32], sizes = [8, 32], strides = [1, 1]} : vector<8x64xf32> to vector<8x32xf32>
    %486 = arith.index_cast %444 : i32 to index
    %c32_181 = arith.constant 32 : index
    %487 = vector.load %arg16[%486, %c32_181] : memref<56x64xf32, #tpu.memory_space<vmem>>, vector<8x32xf32>
    tpu.vector_store %arg16[%486, %c32_181], %485 {strides = array<i32>} : memref<56x64xf32, #tpu.memory_space<vmem>>, vector<8x32xf32>,
    %488 = arith.mulf %476, %480 : vector<8x64xf32>
    %c1_i32_182 = arith.constant 1 : i32
    %c8_i32_183 = arith.constant 8 : i32
    %489 = arith.muli %c1_i32_182, %c8_i32_183 : i32
    %490 = tpu.assume_multiple %489, 8 : i32
    %c6_i32_184 = arith.constant 6 : i32
    %491 = arith.subi %c6_i32_184, %c1_i32_182 : i32
    %c8_i32_185 = arith.constant 8 : i32
    %492 = arith.muli %491, %c8_i32_185 : i32
    %493 = tpu.assume_multiple %492, 8 : i32
    %494 = arith.index_cast %490 : i32 to index
    %c0_186 = arith.constant 0 : index
    %495 = vector.load %arg14[%494, %c0_186] : memref<56x256xf32, #tpu.memory_space<vmem>>, vector<8x256xf32>
    %496 = arith.index_cast %493 : i32 to index
    %c0_187 = arith.constant 0 : index
    %497 = vector.load %arg14[%496, %c0_187] : memref<56x256xf32, #tpu.memory_space<vmem>>, vector<8x256xf32>
    %498 = arith.select %77, %495, %497 : vector<8x256xi1>, vector<8x256xf32>
    %c0_188 = arith.constant 0 : index
    %c0_189 = arith.constant 0 : index
    %499 = vector.load %arg8[%c0_188, %c0_189] : memref<64x256xf32, #tpu.memory_space<vmem>>, vector<64x256xf32>
    %cst_190 = arith.constant dense<0.000000e+00> : vector<8x256xf32>
    %500 = tpu.matmul %481, %499, %cst_190 {dimension_numbers = #tpu.dot_dimension_numbers<[1], [0], [0], [1], [0, 0, 1, 1], [], []>} : vector<8x64xf32>, vector<64x256xf32>, vector<8x256xf32> -> vector<8x256xf32>
    %501 = arith.addf %498, %500 : vector<8x256xf32>
    %cst_191 = arith.constant 5.000000e-01 : f32
    %502 = vector.broadcast %cst_191 : f32 to vector<8x256xf32>
    %503 = arith.mulf %502, %501 : vector<8x256xf32>
    %504 = math.tanh %503 : vector<8x256xf32>
    %cst_192 = arith.constant 1.000000e+00 : f32
    %505 = vector.broadcast %cst_192 : f32 to vector<8x256xf32>
    %506 = arith.addf %504, %505 : vector<8x256xf32>
    %cst_193 = arith.constant 5.000000e-01 : f32
    %507 = vector.broadcast %cst_193 : f32 to vector<8x256xf32>
    %508 = arith.mulf %507, %506 : vector<8x256xf32>
    %509 = vector.extract_strided_slice %504 {offsets = [0, 128], sizes = [8, 128], strides = [1, 1]} : vector<8x256xf32> to vector<8x128xf32>
    %cst_194 = arith.constant 2.000000e+00 : f32
    %510 = vector.broadcast %cst_194 : f32 to vector<8x128xf32>
    %511 = arith.mulf %510, %509 : vector<8x128xf32>
    %512 = arith.mulf %509, %509 : vector<8x128xf32>
    %cst_195 = arith.constant 1.000000e+00 : f32
    %513 = vector.broadcast %cst_195 : f32 to vector<8x128xf32>
    %514 = arith.addf %513, %512 : vector<8x128xf32>
    %515 = tpu.reciprocal %514 {approx = true} : vector<8x128xf32> -> vector<8x128xf32>
    %516 = arith.mulf %511, %515 : vector<8x128xf32>
    %517 = vector.extract_strided_slice %508 {offsets = [0, 128], sizes = [8, 128], strides = [1, 1]} : vector<8x256xf32> to vector<8x128xf32>
    %518 = arith.select %80, %516, %517 : vector<8x128xi1>, vector<8x128xf32>
    %519 = vector.extract_strided_slice %508 {offsets = [0, 0], sizes = [8, 64], strides = [1, 1]} : vector<8x256xf32> to vector<8x64xf32>
    %520 = vector.extract_strided_slice %508 {offsets = [0, 64], sizes = [8, 64], strides = [1, 1]} : vector<8x256xf32> to vector<8x64xf32>
    %521 = vector.extract_strided_slice %518 {offsets = [0, 0], sizes = [8, 64], strides = [1, 1]} : vector<8x128xf32> to vector<8x64xf32>
    %522 = vector.extract_strided_slice %518 {offsets = [0, 64], sizes = [8, 64], strides = [1, 1]} : vector<8x128xf32> to vector<8x64xf32>
    %523 = arith.mulf %520, %488 : vector<8x64xf32>
    %524 = arith.mulf %519, %521 : vector<8x64xf32>
    %525 = arith.addf %523, %524 : vector<8x64xf32>
    %526 = math.tanh %525 : vector<8x64xf32>
    %527 = arith.mulf %522, %526 : vector<8x64xf32>
    %528 = arith.index_cast %493 : i32 to index
    %c0_196 = arith.constant 0 : index
    %529 = vector.load %arg2[%528, %c0_196] : memref<56x64xf32, #tpu.memory_space<vmem>>, vector<8x64xf32>
    %530 = arith.mulf %527, %529 : vector<8x64xf32>
    %531 = vector.extract_strided_slice %527 {offsets = [0, 0], sizes = [8, 32], strides = [1, 1]} : vector<8x64xf32> to vector<8x32xf32>
    %532 = arith.index_cast %490 : i32 to index
    %c0_197 = arith.constant 0 : index
    %533 = vector.load %arg16[%532, %c0_197] : memref<56x64xf32, #tpu.memory_space<vmem>>, vector<8x32xf32>
    tpu.vector_store %arg16[%532, %c0_197], %531 {strides = array<i32>} : memref<56x64xf32, #tpu.memory_space<vmem>>, vector<8x32xf32>,
    %534 = vector.extract_strided_slice %530 {offsets = [0, 32], sizes = [8, 32], strides = [1, 1]} : vector<8x64xf32> to vector<8x32xf32>
    %535 = arith.index_cast %493 : i32 to index
    %c32_198 = arith.constant 32 : index
    %536 = vector.load %arg16[%535, %c32_198] : memref<56x64xf32, #tpu.memory_space<vmem>>, vector<8x32xf32>
    tpu.vector_store %arg16[%535, %c32_198], %534 {strides = array<i32>} : memref<56x64xf32, #tpu.memory_space<vmem>>, vector<8x32xf32>,
    %537 = arith.mulf %525, %529 : vector<8x64xf32>
    %c2_i32_199 = arith.constant 2 : i32
    %c8_i32_200 = arith.constant 8 : i32
    %538 = arith.muli %c2_i32_199, %c8_i32_200 : i32
    %539 = tpu.assume_multiple %538, 8 : i32
    %c6_i32_201 = arith.constant 6 : i32
    %540 = arith.subi %c6_i32_201, %c2_i32_199 : i32
    %c8_i32_202 = arith.constant 8 : i32
    %541 = arith.muli %540, %c8_i32_202 : i32
    %542 = tpu.assume_multiple %541, 8 : i32
    %543 = arith.index_cast %539 : i32 to index
    %c0_203 = arith.constant 0 : index
    %544 = vector.load %arg14[%543, %c0_203] : memref<56x256xf32, #tpu.memory_space<vmem>>, vector<8x256xf32>
    %545 = arith.index_cast %542 : i32 to index
    %c0_204 = arith.constant 0 : index
    %546 = vector.load %arg14[%545, %c0_204] : memref<56x256xf32, #tpu.memory_space<vmem>>, vector<8x256xf32>
    %547 = arith.select %77, %544, %546 : vector<8x256xi1>, vector<8x256xf32>
    %c0_205 = arith.constant 0 : index
    %c0_206 = arith.constant 0 : index
    %548 = vector.load %arg8[%c0_205, %c0_206] : memref<64x256xf32, #tpu.memory_space<vmem>>, vector<64x256xf32>
    %cst_207 = arith.constant dense<0.000000e+00> : vector<8x256xf32>
    %549 = tpu.matmul %530, %548, %cst_207 {dimension_numbers = #tpu.dot_dimension_numbers<[1], [0], [0], [1], [0, 0, 1, 1], [], []>} : vector<8x64xf32>, vector<64x256xf32>, vector<8x256xf32> -> vector<8x256xf32>
    %550 = arith.addf %547, %549 : vector<8x256xf32>
    %cst_208 = arith.constant 5.000000e-01 : f32
    %551 = vector.broadcast %cst_208 : f32 to vector<8x256xf32>
    %552 = arith.mulf %551, %550 : vector<8x256xf32>
    %553 = math.tanh %552 : vector<8x256xf32>
    %cst_209 = arith.constant 1.000000e+00 : f32
    %554 = vector.broadcast %cst_209 : f32 to vector<8x256xf32>
    %555 = arith.addf %553, %554 : vector<8x256xf32>
    %cst_210 = arith.constant 5.000000e-01 : f32
    %556 = vector.broadcast %cst_210 : f32 to vector<8x256xf32>
    %557 = arith.mulf %556, %555 : vector<8x256xf32>
    %558 = vector.extract_strided_slice %553 {offsets = [0, 128], sizes = [8, 128], strides = [1, 1]} : vector<8x256xf32> to vector<8x128xf32>
    %cst_211 = arith.constant 2.000000e+00 : f32
    %559 = vector.broadcast %cst_211 : f32 to vector<8x128xf32>
    %560 = arith.mulf %559, %558 : vector<8x128xf32>
    %561 = arith.mulf %558, %558 : vector<8x128xf32>
    %cst_212 = arith.constant 1.000000e+00 : f32
    %562 = vector.broadcast %cst_212 : f32 to vector<8x128xf32>
    %563 = arith.addf %562, %561 : vector<8x128xf32>
    %564 = tpu.reciprocal %563 {approx = true} : vector<8x128xf32> -> vector<8x128xf32>
    %565 = arith.mulf %560, %564 : vector<8x128xf32>
    %566 = vector.extract_strided_slice %557 {offsets = [0, 128], sizes = [8, 128], strides = [1, 1]} : vector<8x256xf32> to vector<8x128xf32>
    %567 = arith.select %80, %565, %566 : vector<8x128xi1>, vector<8x128xf32>
    %568 = vector.extract_strided_slice %557 {offsets = [0, 0], sizes = [8, 64], strides = [1, 1]} : vector<8x256xf32> to vector<8x64xf32>
    %569 = vector.extract_strided_slice %557 {offsets = [0, 64], sizes = [8, 64], strides = [1, 1]} : vector<8x256xf32> to vector<8x64xf32>
    %570 = vector.extract_strided_slice %567 {offsets = [0, 0], sizes = [8, 64], strides = [1, 1]} : vector<8x128xf32> to vector<8x64xf32>
    %571 = vector.extract_strided_slice %567 {offsets = [0, 64], sizes = [8, 64], strides = [1, 1]} : vector<8x128xf32> to vector<8x64xf32>
    %572 = arith.mulf %569, %537 : vector<8x64xf32>
    %573 = arith.mulf %568, %570 : vector<8x64xf32>
    %574 = arith.addf %572, %573 : vector<8x64xf32>
    %575 = math.tanh %574 : vector<8x64xf32>
    %576 = arith.mulf %571, %575 : vector<8x64xf32>
    %577 = arith.index_cast %542 : i32 to index
    %c0_213 = arith.constant 0 : index
    %578 = vector.load %arg2[%577, %c0_213] : memref<56x64xf32, #tpu.memory_space<vmem>>, vector<8x64xf32>
    %579 = arith.mulf %576, %578 : vector<8x64xf32>
    %580 = vector.extract_strided_slice %576 {offsets = [0, 0], sizes = [8, 32], strides = [1, 1]} : vector<8x64xf32> to vector<8x32xf32>
    %581 = arith.index_cast %539 : i32 to index
    %c0_214 = arith.constant 0 : index
    %582 = vector.load %arg16[%581, %c0_214] : memref<56x64xf32, #tpu.memory_space<vmem>>, vector<8x32xf32>
    tpu.vector_store %arg16[%581, %c0_214], %580 {strides = array<i32>} : memref<56x64xf32, #tpu.memory_space<vmem>>, vector<8x32xf32>,
    %583 = vector.extract_strided_slice %579 {offsets = [0, 32], sizes = [8, 32], strides = [1, 1]} : vector<8x64xf32> to vector<8x32xf32>
    %584 = arith.index_cast %542 : i32 to index
    %c32_215 = arith.constant 32 : index
    %585 = vector.load %arg16[%584, %c32_215] : memref<56x64xf32, #tpu.memory_space<vmem>>, vector<8x32xf32>
    tpu.vector_store %arg16[%584, %c32_215], %583 {strides = array<i32>} : memref<56x64xf32, #tpu.memory_space<vmem>>, vector<8x32xf32>,
    %586 = arith.mulf %574, %578 : vector<8x64xf32>
    %c3_i32_216 = arith.constant 3 : i32
    %c8_i32_217 = arith.constant 8 : i32
    %587 = arith.muli %c3_i32_216, %c8_i32_217 : i32
    %588 = tpu.assume_multiple %587, 8 : i32
    %c6_i32_218 = arith.constant 6 : i32
    %589 = arith.subi %c6_i32_218, %c3_i32_216 : i32
    %c8_i32_219 = arith.constant 8 : i32
    %590 = arith.muli %589, %c8_i32_219 : i32
    %591 = tpu.assume_multiple %590, 8 : i32
    %592 = arith.index_cast %588 : i32 to index
    %c0_220 = arith.constant 0 : index
    %593 = vector.load %arg14[%592, %c0_220] : memref<56x256xf32, #tpu.memory_space<vmem>>, vector<8x256xf32>
    %594 = arith.index_cast %591 : i32 to index
    %c0_221 = arith.constant 0 : index
    %595 = vector.load %arg14[%594, %c0_221] : memref<56x256xf32, #tpu.memory_space<vmem>>, vector<8x256xf32>
    %596 = arith.select %77, %593, %595 : vector<8x256xi1>, vector<8x256xf32>
    %c0_222 = arith.constant 0 : index
    %c0_223 = arith.constant 0 : index
    %597 = vector.load %arg8[%c0_222, %c0_223] : memref<64x256xf32, #tpu.memory_space<vmem>>, vector<64x256xf32>
    %cst_224 = arith.constant dense<0.000000e+00> : vector<8x256xf32>
    %598 = tpu.matmul %579, %597, %cst_224 {dimension_numbers = #tpu.dot_dimension_numbers<[1], [0], [0], [1], [0, 0, 1, 1], [], []>} : vector<8x64xf32>, vector<64x256xf32>, vector<8x256xf32> -> vector<8x256xf32>
    %599 = arith.addf %596, %598 : vector<8x256xf32>
    %cst_225 = arith.constant 5.000000e-01 : f32
    %600 = vector.broadcast %cst_225 : f32 to vector<8x256xf32>
    %601 = arith.mulf %600, %599 : vector<8x256xf32>
    %602 = math.tanh %601 : vector<8x256xf32>
    %cst_226 = arith.constant 1.000000e+00 : f32
    %603 = vector.broadcast %cst_226 : f32 to vector<8x256xf32>
    %604 = arith.addf %602, %603 : vector<8x256xf32>
    %cst_227 = arith.constant 5.000000e-01 : f32
    %605 = vector.broadcast %cst_227 : f32 to vector<8x256xf32>
    %606 = arith.mulf %605, %604 : vector<8x256xf32>
    %607 = vector.extract_strided_slice %602 {offsets = [0, 128], sizes = [8, 128], strides = [1, 1]} : vector<8x256xf32> to vector<8x128xf32>
    %cst_228 = arith.constant 2.000000e+00 : f32
    %608 = vector.broadcast %cst_228 : f32 to vector<8x128xf32>
    %609 = arith.mulf %608, %607 : vector<8x128xf32>
    %610 = arith.mulf %607, %607 : vector<8x128xf32>
    %cst_229 = arith.constant 1.000000e+00 : f32
    %611 = vector.broadcast %cst_229 : f32 to vector<8x128xf32>
    %612 = arith.addf %611, %610 : vector<8x128xf32>
    %613 = tpu.reciprocal %612 {approx = true} : vector<8x128xf32> -> vector<8x128xf32>
    %614 = arith.mulf %609, %613 : vector<8x128xf32>
    %615 = vector.extract_strided_slice %606 {offsets = [0, 128], sizes = [8, 128], strides = [1, 1]} : vector<8x256xf32> to vector<8x128xf32>
    %616 = arith.select %80, %614, %615 : vector<8x128xi1>, vector<8x128xf32>
    %617 = vector.extract_strided_slice %606 {offsets = [0, 0], sizes = [8, 64], strides = [1, 1]} : vector<8x256xf32> to vector<8x64xf32>
    %618 = vector.extract_strided_slice %606 {offsets = [0, 64], sizes = [8, 64], strides = [1, 1]} : vector<8x256xf32> to vector<8x64xf32>
    %619 = vector.extract_strided_slice %616 {offsets = [0, 0], sizes = [8, 64], strides = [1, 1]} : vector<8x128xf32> to vector<8x64xf32>
    %620 = vector.extract_strided_slice %616 {offsets = [0, 64], sizes = [8, 64], strides = [1, 1]} : vector<8x128xf32> to vector<8x64xf32>
    %621 = arith.mulf %618, %586 : vector<8x64xf32>
    %622 = arith.mulf %617, %619 : vector<8x64xf32>
    %623 = arith.addf %621, %622 : vector<8x64xf32>
    %624 = math.tanh %623 : vector<8x64xf32>
    %625 = arith.mulf %620, %624 : vector<8x64xf32>
    %626 = arith.index_cast %591 : i32 to index
    %c0_230 = arith.constant 0 : index
    %627 = vector.load %arg2[%626, %c0_230] : memref<56x64xf32, #tpu.memory_space<vmem>>, vector<8x64xf32>
    %628 = arith.mulf %625, %627 : vector<8x64xf32>
    %629 = vector.extract_strided_slice %625 {offsets = [0, 0], sizes = [8, 32], strides = [1, 1]} : vector<8x64xf32> to vector<8x32xf32>
    %630 = arith.index_cast %588 : i32 to index
    %c0_231 = arith.constant 0 : index
    %631 = vector.load %arg16[%630, %c0_231] : memref<56x64xf32, #tpu.memory_space<vmem>>, vector<8x32xf32>
    tpu.vector_store %arg16[%630, %c0_231], %629 {strides = array<i32>} : memref<56x64xf32, #tpu.memory_space<vmem>>, vector<8x32xf32>,
    %632 = vector.extract_strided_slice %628 {offsets = [0, 32], sizes = [8, 32], strides = [1, 1]} : vector<8x64xf32> to vector<8x32xf32>
    %633 = arith.index_cast %591 : i32 to index
    %c32_232 = arith.constant 32 : index
    %634 = vector.load %arg16[%633, %c32_232] : memref<56x64xf32, #tpu.memory_space<vmem>>, vector<8x32xf32>
    tpu.vector_store %arg16[%633, %c32_232], %632 {strides = array<i32>} : memref<56x64xf32, #tpu.memory_space<vmem>>, vector<8x32xf32>,
    %635 = arith.mulf %623, %627 : vector<8x64xf32>
    %c4_i32_233 = arith.constant 4 : i32
    %c8_i32_234 = arith.constant 8 : i32
    %636 = arith.muli %c4_i32_233, %c8_i32_234 : i32
    %637 = tpu.assume_multiple %636, 8 : i32
    %c6_i32_235 = arith.constant 6 : i32
    %638 = arith.subi %c6_i32_235, %c4_i32_233 : i32
    %c8_i32_236 = arith.constant 8 : i32
    %639 = arith.muli %638, %c8_i32_236 : i32
    %640 = tpu.assume_multiple %639, 8 : i32
    %641 = arith.index_cast %637 : i32 to index
    %c0_237 = arith.constant 0 : index
    %642 = vector.load %arg14[%641, %c0_237] : memref<56x256xf32, #tpu.memory_space<vmem>>, vector<8x256xf32>
    %643 = arith.index_cast %640 : i32 to index
    %c0_238 = arith.constant 0 : index
    %644 = vector.load %arg14[%643, %c0_238] : memref<56x256xf32, #tpu.memory_space<vmem>>, vector<8x256xf32>
    %645 = arith.select %77, %642, %644 : vector<8x256xi1>, vector<8x256xf32>
    %c0_239 = arith.constant 0 : index
    %c0_240 = arith.constant 0 : index
    %646 = vector.load %arg8[%c0_239, %c0_240] : memref<64x256xf32, #tpu.memory_space<vmem>>, vector<64x256xf32>
    %cst_241 = arith.constant dense<0.000000e+00> : vector<8x256xf32>
    %647 = tpu.matmul %628, %646, %cst_241 {dimension_numbers = #tpu.dot_dimension_numbers<[1], [0], [0], [1], [0, 0, 1, 1], [], []>} : vector<8x64xf32>, vector<64x256xf32>, vector<8x256xf32> -> vector<8x256xf32>
    %648 = arith.addf %645, %647 : vector<8x256xf32>
    %cst_242 = arith.constant 5.000000e-01 : f32
    %649 = vector.broadcast %cst_242 : f32 to vector<8x256xf32>
    %650 = arith.mulf %649, %648 : vector<8x256xf32>
    %651 = math.tanh %650 : vector<8x256xf32>
    %cst_243 = arith.constant 1.000000e+00 : f32
    %652 = vector.broadcast %cst_243 : f32 to vector<8x256xf32>
    %653 = arith.addf %651, %652 : vector<8x256xf32>
    %cst_244 = arith.constant 5.000000e-01 : f32
    %654 = vector.broadcast %cst_244 : f32 to vector<8x256xf32>
    %655 = arith.mulf %654, %653 : vector<8x256xf32>
    %656 = vector.extract_strided_slice %651 {offsets = [0, 128], sizes = [8, 128], strides = [1, 1]} : vector<8x256xf32> to vector<8x128xf32>
    %cst_245 = arith.constant 2.000000e+00 : f32
    %657 = vector.broadcast %cst_245 : f32 to vector<8x128xf32>
    %658 = arith.mulf %657, %656 : vector<8x128xf32>
    %659 = arith.mulf %656, %656 : vector<8x128xf32>
    %cst_246 = arith.constant 1.000000e+00 : f32
    %660 = vector.broadcast %cst_246 : f32 to vector<8x128xf32>
    %661 = arith.addf %660, %659 : vector<8x128xf32>
    %662 = tpu.reciprocal %661 {approx = true} : vector<8x128xf32> -> vector<8x128xf32>
    %663 = arith.mulf %658, %662 : vector<8x128xf32>
    %664 = vector.extract_strided_slice %655 {offsets = [0, 128], sizes = [8, 128], strides = [1, 1]} : vector<8x256xf32> to vector<8x128xf32>
    %665 = arith.select %80, %663, %664 : vector<8x128xi1>, vector<8x128xf32>
    %666 = vector.extract_strided_slice %655 {offsets = [0, 0], sizes = [8, 64], strides = [1, 1]} : vector<8x256xf32> to vector<8x64xf32>
    %667 = vector.extract_strided_slice %655 {offsets = [0, 64], sizes = [8, 64], strides = [1, 1]} : vector<8x256xf32> to vector<8x64xf32>
    %668 = vector.extract_strided_slice %665 {offsets = [0, 0], sizes = [8, 64], strides = [1, 1]} : vector<8x128xf32> to vector<8x64xf32>
    %669 = vector.extract_strided_slice %665 {offsets = [0, 64], sizes = [8, 64], strides = [1, 1]} : vector<8x128xf32> to vector<8x64xf32>
    %670 = arith.mulf %667, %635 : vector<8x64xf32>
    %671 = arith.mulf %666, %668 : vector<8x64xf32>
    %672 = arith.addf %670, %671 : vector<8x64xf32>
    %673 = math.tanh %672 : vector<8x64xf32>
    %674 = arith.mulf %669, %673 : vector<8x64xf32>
    %675 = arith.index_cast %640 : i32 to index
    %c0_247 = arith.constant 0 : index
    %676 = vector.load %arg2[%675, %c0_247] : memref<56x64xf32, #tpu.memory_space<vmem>>, vector<8x64xf32>
    %677 = arith.mulf %674, %676 : vector<8x64xf32>
    %678 = vector.extract_strided_slice %674 {offsets = [0, 0], sizes = [8, 32], strides = [1, 1]} : vector<8x64xf32> to vector<8x32xf32>
    %679 = arith.index_cast %637 : i32 to index
    %c0_248 = arith.constant 0 : index
    %680 = vector.load %arg16[%679, %c0_248] : memref<56x64xf32, #tpu.memory_space<vmem>>, vector<8x32xf32>
    tpu.vector_store %arg16[%679, %c0_248], %678 {strides = array<i32>} : memref<56x64xf32, #tpu.memory_space<vmem>>, vector<8x32xf32>,
    %681 = vector.extract_strided_slice %677 {offsets = [0, 32], sizes = [8, 32], strides = [1, 1]} : vector<8x64xf32> to vector<8x32xf32>
    %682 = arith.index_cast %640 : i32 to index
    %c32_249 = arith.constant 32 : index
    %683 = vector.load %arg16[%682, %c32_249] : memref<56x64xf32, #tpu.memory_space<vmem>>, vector<8x32xf32>
    tpu.vector_store %arg16[%682, %c32_249], %681 {strides = array<i32>} : memref<56x64xf32, #tpu.memory_space<vmem>>, vector<8x32xf32>,
    %684 = arith.mulf %672, %676 : vector<8x64xf32>
    %c5_i32_250 = arith.constant 5 : i32
    %c8_i32_251 = arith.constant 8 : i32
    %685 = arith.muli %c5_i32_250, %c8_i32_251 : i32
    %686 = tpu.assume_multiple %685, 8 : i32
    %c6_i32_252 = arith.constant 6 : i32
    %687 = arith.subi %c6_i32_252, %c5_i32_250 : i32
    %c8_i32_253 = arith.constant 8 : i32
    %688 = arith.muli %687, %c8_i32_253 : i32
    %689 = tpu.assume_multiple %688, 8 : i32
    %690 = arith.index_cast %686 : i32 to index
    %c0_254 = arith.constant 0 : index
    %691 = vector.load %arg14[%690, %c0_254] : memref<56x256xf32, #tpu.memory_space<vmem>>, vector<8x256xf32>
    %692 = arith.index_cast %689 : i32 to index
    %c0_255 = arith.constant 0 : index
    %693 = vector.load %arg14[%692, %c0_255] : memref<56x256xf32, #tpu.memory_space<vmem>>, vector<8x256xf32>
    %694 = arith.select %77, %691, %693 : vector<8x256xi1>, vector<8x256xf32>
    %c0_256 = arith.constant 0 : index
    %c0_257 = arith.constant 0 : index
    %695 = vector.load %arg8[%c0_256, %c0_257] : memref<64x256xf32, #tpu.memory_space<vmem>>, vector<64x256xf32>
    %cst_258 = arith.constant dense<0.000000e+00> : vector<8x256xf32>
    %696 = tpu.matmul %677, %695, %cst_258 {dimension_numbers = #tpu.dot_dimension_numbers<[1], [0], [0], [1], [0, 0, 1, 1], [], []>} : vector<8x64xf32>, vector<64x256xf32>, vector<8x256xf32> -> vector<8x256xf32>
    %697 = arith.addf %694, %696 : vector<8x256xf32>
    %cst_259 = arith.constant 5.000000e-01 : f32
    %698 = vector.broadcast %cst_259 : f32 to vector<8x256xf32>
    %699 = arith.mulf %698, %697 : vector<8x256xf32>
    %700 = math.tanh %699 : vector<8x256xf32>
    %cst_260 = arith.constant 1.000000e+00 : f32
    %701 = vector.broadcast %cst_260 : f32 to vector<8x256xf32>
    %702 = arith.addf %700, %701 : vector<8x256xf32>
    %cst_261 = arith.constant 5.000000e-01 : f32
    %703 = vector.broadcast %cst_261 : f32 to vector<8x256xf32>
    %704 = arith.mulf %703, %702 : vector<8x256xf32>
    %705 = vector.extract_strided_slice %700 {offsets = [0, 128], sizes = [8, 128], strides = [1, 1]} : vector<8x256xf32> to vector<8x128xf32>
    %cst_262 = arith.constant 2.000000e+00 : f32
    %706 = vector.broadcast %cst_262 : f32 to vector<8x128xf32>
    %707 = arith.mulf %706, %705 : vector<8x128xf32>
    %708 = arith.mulf %705, %705 : vector<8x128xf32>
    %cst_263 = arith.constant 1.000000e+00 : f32
    %709 = vector.broadcast %cst_263 : f32 to vector<8x128xf32>
    %710 = arith.addf %709, %708 : vector<8x128xf32>
    %711 = tpu.reciprocal %710 {approx = true} : vector<8x128xf32> -> vector<8x128xf32>
    %712 = arith.mulf %707, %711 : vector<8x128xf32>
    %713 = vector.extract_strided_slice %704 {offsets = [0, 128], sizes = [8, 128], strides = [1, 1]} : vector<8x256xf32> to vector<8x128xf32>
    %714 = arith.select %80, %712, %713 : vector<8x128xi1>, vector<8x128xf32>
    %715 = vector.extract_strided_slice %704 {offsets = [0, 0], sizes = [8, 64], strides = [1, 1]} : vector<8x256xf32> to vector<8x64xf32>
    %716 = vector.extract_strided_slice %704 {offsets = [0, 64], sizes = [8, 64], strides = [1, 1]} : vector<8x256xf32> to vector<8x64xf32>
    %717 = vector.extract_strided_slice %714 {offsets = [0, 0], sizes = [8, 64], strides = [1, 1]} : vector<8x128xf32> to vector<8x64xf32>
    %718 = vector.extract_strided_slice %714 {offsets = [0, 64], sizes = [8, 64], strides = [1, 1]} : vector<8x128xf32> to vector<8x64xf32>
    %719 = arith.mulf %716, %684 : vector<8x64xf32>
    %720 = arith.mulf %715, %717 : vector<8x64xf32>
    %721 = arith.addf %719, %720 : vector<8x64xf32>
    %722 = math.tanh %721 : vector<8x64xf32>
    %723 = arith.mulf %718, %722 : vector<8x64xf32>
    %724 = arith.index_cast %689 : i32 to index
    %c0_264 = arith.constant 0 : index
    %725 = vector.load %arg2[%724, %c0_264] : memref<56x64xf32, #tpu.memory_space<vmem>>, vector<8x64xf32>
    %726 = arith.mulf %723, %725 : vector<8x64xf32>
    %727 = vector.extract_strided_slice %723 {offsets = [0, 0], sizes = [8, 32], strides = [1, 1]} : vector<8x64xf32> to vector<8x32xf32>
    %728 = arith.index_cast %686 : i32 to index
    %c0_265 = arith.constant 0 : index
    %729 = vector.load %arg16[%728, %c0_265] : memref<56x64xf32, #tpu.memory_space<vmem>>, vector<8x32xf32>
    tpu.vector_store %arg16[%728, %c0_265], %727 {strides = array<i32>} : memref<56x64xf32, #tpu.memory_space<vmem>>, vector<8x32xf32>,
    %730 = vector.extract_strided_slice %726 {offsets = [0, 32], sizes = [8, 32], strides = [1, 1]} : vector<8x64xf32> to vector<8x32xf32>
    %731 = arith.index_cast %689 : i32 to index
    %c32_266 = arith.constant 32 : index
    %732 = vector.load %arg16[%731, %c32_266] : memref<56x64xf32, #tpu.memory_space<vmem>>, vector<8x32xf32>
    tpu.vector_store %arg16[%731, %c32_266], %730 {strides = array<i32>} : memref<56x64xf32, #tpu.memory_space<vmem>>, vector<8x32xf32>,
    %733 = arith.mulf %721, %725 : vector<8x64xf32>
    %c6_i32_267 = arith.constant 6 : i32
    %c8_i32_268 = arith.constant 8 : i32
    %734 = arith.muli %c6_i32_267, %c8_i32_268 : i32
    %735 = tpu.assume_multiple %734, 8 : i32
    %c6_i32_269 = arith.constant 6 : i32
    %736 = arith.subi %c6_i32_269, %c6_i32_267 : i32
    %c8_i32_270 = arith.constant 8 : i32
    %737 = arith.muli %736, %c8_i32_270 : i32
    %738 = tpu.assume_multiple %737, 8 : i32
    %739 = arith.index_cast %735 : i32 to index
    %c0_271 = arith.constant 0 : index
    %740 = vector.load %arg14[%739, %c0_271] : memref<56x256xf32, #tpu.memory_space<vmem>>, vector<8x256xf32>
    %741 = arith.index_cast %738 : i32 to index
    %c0_272 = arith.constant 0 : index
    %742 = vector.load %arg14[%741, %c0_272] : memref<56x256xf32, #tpu.memory_space<vmem>>, vector<8x256xf32>
    %743 = arith.select %77, %740, %742 : vector<8x256xi1>, vector<8x256xf32>
    %c0_273 = arith.constant 0 : index
    %c0_274 = arith.constant 0 : index
    %744 = vector.load %arg8[%c0_273, %c0_274] : memref<64x256xf32, #tpu.memory_space<vmem>>, vector<64x256xf32>
    %cst_275 = arith.constant dense<0.000000e+00> : vector<8x256xf32>
    %745 = tpu.matmul %726, %744, %cst_275 {dimension_numbers = #tpu.dot_dimension_numbers<[1], [0], [0], [1], [0, 0, 1, 1], [], []>} : vector<8x64xf32>, vector<64x256xf32>, vector<8x256xf32> -> vector<8x256xf32>
    %746 = arith.addf %743, %745 : vector<8x256xf32>
    %cst_276 = arith.constant 5.000000e-01 : f32
    %747 = vector.broadcast %cst_276 : f32 to vector<8x256xf32>
    %748 = arith.mulf %747, %746 : vector<8x256xf32>
    %749 = math.tanh %748 : vector<8x256xf32>
    %cst_277 = arith.constant 1.000000e+00 : f32
    %750 = vector.broadcast %cst_277 : f32 to vector<8x256xf32>
    %751 = arith.addf %749, %750 : vector<8x256xf32>
    %cst_278 = arith.constant 5.000000e-01 : f32
    %752 = vector.broadcast %cst_278 : f32 to vector<8x256xf32>
    %753 = arith.mulf %752, %751 : vector<8x256xf32>
    %754 = vector.extract_strided_slice %749 {offsets = [0, 128], sizes = [8, 128], strides = [1, 1]} : vector<8x256xf32> to vector<8x128xf32>
    %cst_279 = arith.constant 2.000000e+00 : f32
    %755 = vector.broadcast %cst_279 : f32 to vector<8x128xf32>
    %756 = arith.mulf %755, %754 : vector<8x128xf32>
    %757 = arith.mulf %754, %754 : vector<8x128xf32>
    %cst_280 = arith.constant 1.000000e+00 : f32
    %758 = vector.broadcast %cst_280 : f32 to vector<8x128xf32>
    %759 = arith.addf %758, %757 : vector<8x128xf32>
    %760 = tpu.reciprocal %759 {approx = true} : vector<8x128xf32> -> vector<8x128xf32>
    %761 = arith.mulf %756, %760 : vector<8x128xf32>
    %762 = vector.extract_strided_slice %753 {offsets = [0, 128], sizes = [8, 128], strides = [1, 1]} : vector<8x256xf32> to vector<8x128xf32>
    %763 = arith.select %80, %761, %762 : vector<8x128xi1>, vector<8x128xf32>
    %764 = vector.extract_strided_slice %753 {offsets = [0, 0], sizes = [8, 64], strides = [1, 1]} : vector<8x256xf32> to vector<8x64xf32>
    %765 = vector.extract_strided_slice %753 {offsets = [0, 64], sizes = [8, 64], strides = [1, 1]} : vector<8x256xf32> to vector<8x64xf32>
    %766 = vector.extract_strided_slice %763 {offsets = [0, 0], sizes = [8, 64], strides = [1, 1]} : vector<8x128xf32> to vector<8x64xf32>
    %767 = vector.extract_strided_slice %763 {offsets = [0, 64], sizes = [8, 64], strides = [1, 1]} : vector<8x128xf32> to vector<8x64xf32>
    %768 = arith.mulf %765, %733 : vector<8x64xf32>
    %769 = arith.mulf %764, %766 : vector<8x64xf32>
    %770 = arith.addf %768, %769 : vector<8x64xf32>
    %771 = math.tanh %770 : vector<8x64xf32>
    %772 = arith.mulf %767, %771 : vector<8x64xf32>
    %773 = arith.index_cast %738 : i32 to index
    %c0_281 = arith.constant 0 : index
    %774 = vector.load %arg2[%773, %c0_281] : memref<56x64xf32, #tpu.memory_space<vmem>>, vector<8x64xf32>
    %775 = arith.mulf %772, %774 : vector<8x64xf32>
    %776 = vector.extract_strided_slice %772 {offsets = [0, 0], sizes = [8, 32], strides = [1, 1]} : vector<8x64xf32> to vector<8x32xf32>
    %777 = arith.index_cast %735 : i32 to index
    %c0_282 = arith.constant 0 : index
    %778 = vector.load %arg16[%777, %c0_282] : memref<56x64xf32, #tpu.memory_space<vmem>>, vector<8x32xf32>
    tpu.vector_store %arg16[%777, %c0_282], %776 {strides = array<i32>} : memref<56x64xf32, #tpu.memory_space<vmem>>, vector<8x32xf32>,
    %779 = vector.extract_strided_slice %775 {offsets = [0, 32], sizes = [8, 32], strides = [1, 1]} : vector<8x64xf32> to vector<8x32xf32>
    %780 = arith.index_cast %738 : i32 to index
    %c32_283 = arith.constant 32 : index
    %781 = vector.load %arg16[%780, %c32_283] : memref<56x64xf32, #tpu.memory_space<vmem>>, vector<8x32xf32>
    tpu.vector_store %arg16[%780, %c32_283], %779 {strides = array<i32>} : memref<56x64xf32, #tpu.memory_space<vmem>>, vector<8x32xf32>,
    %782 = arith.mulf %770, %774 : vector<8x64xf32>
    %c7_i32_284 = arith.constant 7 : i32
    %c0_285 = arith.constant 0 : index
    %c0_286 = arith.constant 0 : index
    %783 = vector.load %arg16[%c0_285, %c0_286] : memref<56x64xf32, #tpu.memory_space<vmem>>, vector<56x64xf32>
    %c0_287 = arith.constant 0 : index
    %c0_288 = arith.constant 0 : index
    %784 = vector.load %arg3[%c0_287, %c0_288] : memref<56x64xf32, #tpu.memory_space<vmem>>, vector<56x64xf32>
    %785 = arith.mulf %783, %784 : vector<56x64xf32>
    %c0_289 = arith.constant 0 : index
    %c0_290 = arith.constant 0 : index
    %786 = vector.load %arg10[%c0_289, %c0_290] : memref<64x128xf32, #tpu.memory_space<vmem>>, vector<64x128xf32>
    %cst_291 = arith.constant dense<0.000000e+00> : vector<56x128xf32>
    %787 = tpu.matmul %785, %786, %cst_291 {dimension_numbers = #tpu.dot_dimension_numbers<[1], [0], [0], [1], [0, 0, 1, 1], [], []>} : vector<56x64xf32>, vector<64x128xf32>, vector<56x128xf32> -> vector<56x128xf32>
    %c0_292 = arith.constant 0 : index
    %c0_293 = arith.constant 0 : index
    %788 = vector.load %arg11[%c0_292, %c0_293] : memref<1x128xf32, #tpu.memory_space<vmem>>, vector<1x128xf32>
    %789 = vector.broadcast %788 : vector<1x128xf32> to vector<56x128xf32>
    %790 = arith.addf %787, %789 : vector<56x128xf32>
    %cst_294 = arith.constant dense<0xFF800000> : vector<56xf32>
    %791 = vector.multi_reduction <maximumf>, %790, %cst_294 [1] : vector<56x128xf32> to vector<56xf32>
    %792 = vector.shape_cast %791 : vector<56xf32> to vector<56x1xf32>
    %793 = vector.broadcast %792 : vector<56x1xf32> to vector<56x128xf32>
    %794 = arith.subf %790, %793 : vector<56x128xf32>
    %795 = math.exp %794 : vector<56x128xf32>
    %cst_295 = arith.constant dense<0.000000e+00> : vector<56xf32>
    %796 = vector.multi_reduction <add>, %795, %cst_295 [1] : vector<56x128xf32> to vector<56xf32>
    %797 = vector.shape_cast %796 : vector<56xf32> to vector<56x1xf32>
    %798 = vector.broadcast %792 : vector<56x1xf32> to vector<56x128xf32>
    %799 = arith.subf %790, %798 : vector<56x128xf32>
    %800 = math.log %797 : vector<56x1xf32>
    %801 = vector.broadcast %800 : vector<56x1xf32> to vector<56x128xf32>
    %802 = arith.subf %799, %801 : vector<56x128xf32>
    %c0_296 = arith.constant 0 : index
    %c0_297 = arith.constant 0 : index
    %803 = vector.load %arg12[%c0_296, %c0_297] : memref<56x128xf32, #tpu.memory_space<vmem>>, vector<56x128xf32>
    tpu.vector_store %arg12[%c0_296, %c0_297], %802 {strides = array<i32>} : memref<56x128xf32, #tpu.memory_space<vmem>>, vector<56x128xf32>,
    return
  }
}

</mosaic_0001>

<bundles_post_ra>
// kernel: tpu_custom_call.1
= control target key start
LH: loop header
LB: loop body
LE: loop exit
PB: predicated region body
PF: predicated region fallthrough
CT: control target
= control target key end

     0   :  { %17 = vsyncpa [#allocation7], 0  ;;  %s4870_s0 = inlined_call_operand.hbm [shape: f32[9,56,128], index: 0, kind: input, shape index: {}]   ;;  %s4871_s1 = inlined_call_operand.vmem [shape: f32[10], index: 1, kind: input, shape index: {}]   ;;  %s4872_s2 = inlined_call_operand.hbm [shape: f32[56,64], index: 2, kind: input, shape index: {}]   ;;  %s4873_s3 = inlined_call_operand.hbm [shape: f32[56,64], index: 3, kind: input, shape index: {}]   ;;  %s4874_s4 = inlined_call_operand.hbm [shape: f32[128,256], index: 4, kind: input, shape index: {}]   ;;  %s4875_s5 = inlined_call_operand.hbm [shape: f32[64,256], index: 5, kind: input, shape index: {}]   ;;  %s4876_s6 = inlined_call_operand.vmem [shape: f32[1,256], index: 6, kind: input, shape index: {}]   ;;  %s4877_s7 = inlined_call_operand.hbm [shape: f32[64,256], index: 7, kind: input, shape index: {}]   ;;  %s4878_s8 = inlined_call_operand.hbm [shape: f32[64,256], index: 8, kind: input, shape index: {}]   ;;  %s4879_s9 = inlined_call_operand.vmem [shape: f32[1,256], index: 9, kind: input, shape index: {}]   ;;  %s4880_s10 = inlined_call_operand.hbm [shape: f32[64,128], index: 10, kind: input, shape index: {}]   ;;  %s4881_s11 = inlined_call_operand.vmem [shape: f32[1,128], index: 11, kind: input, shape index: {}]   ;;  %s4882_s12 = inlined_call_operand.hbm [shape: f32[56,128], index: 12, kind: output, shape index: {}]  }
   0x1   :  { %18 = vsyncpa [#allocation9], 0 }
   0x2   :  { %19 = vsyncpa [#allocation12], 0 }
   0x3   :  { %20 = vsyncpa [#allocation15], 0 }
   0x4   :  { %21 = vsyncpa [#allocation18], 0 }
   0x5   :  { %22 = vsyncpa [#allocation21], 0 }
   0x6   :  { %23 = vsyncpa [#allocation8], 0  ;;  %s3747_s21 = smov [#allocation11]   ;;  %s3748_s23 = smov [#allocation14]  }
   0x7   :  { %s51_s22 = sshll.u32 %s3747_s21, 4  ;;  %s75_s24 = sshll.u32 %s3748_s23, 4  ;;  %s52_s22 = int_to_ptr.vmem [resolvable:$true] %s51_s22  ;;  %s3830_s24 = int_to_ptr.vmem [resolvable:$true] %s75_s24 }
   0x8   :  { %s3523_s27 = scalar_lea.hbm %s4872_s2, 896 }
   0x9   :  { %p3524_p0 = scmp.ne.s32.totalorder %s4872_s2, %s3523_s27  ;;  %p3527_p1 = scmp.lt.u32.totalorder %s3523_s27, %s4872_s2 }
   0xb   :  { %p3529_p2 = pnand %p3527_p1, %p3524_p0 }
   0xd   :  { %3532 = shalt.err (!%p3529_p2)
}
   0xe   :  { %s3533_s14 = scalar_lea.vmem %s52_s22, 896  ;;  %p3538_p4 = scmp.lt.s32.totalorder %s52_s22, %s52_s22 }
   0xf   :  { %p3534_p3 = scmp.ne.s32.totalorder %s52_s22, %s3533_s14  ;;  %p3539_p5 = scmp.lt.s32.totalorder %s3533_s14, %s3533_s14 }
  0x11   :  { %p3540_p6 = por %p3539_p5, %p3538_p4 }
  0x13   :  { %p3541_p7 = pnand %p3540_p6, %p3534_p3 }
  0x15   :  { %3544 = shalt.err (!%p3541_p7)
}
  0x16   :  { %s3749_s15 = smov 128   ;;  %s3750_s16 = smov 8  }
  0x17   :  { %57 = dma.hbm_to_vmem [thread:$0]  %s4872_s2, 896, %s52_s22, [#allocation12], %s3749_s15, %s3749_s15, %s3750_s16  }
  0x18   :  { %s3545_s21 = scalar_lea.hbm %s4874_s4, 4096 }
  0x19   :  { %p3546_p8 = scmp.ne.s32.totalorder %s4874_s4, %s3545_s21  ;;  %p3549_p9 = scmp.lt.u32.totalorder %s3545_s21, %s4874_s4 }
  0x1b   :  { %p3551_p10 = pnand %p3549_p9, %p3546_p8 }
  0x1d   :  { %3554 = shalt.err (!%p3551_p10)
}
  0x1e   :  { %s3555_s28 = scalar_lea.vmem %s3830_s24, 4096  ;;  %p3560_p12 = scmp.lt.s32.totalorder %s3830_s24, %s3830_s24 }
  0x1f   :  { %p3556_p11 = scmp.ne.s32.totalorder %s3830_s24, %s3555_s28  ;;  %p3561_p13 = scmp.lt.s32.totalorder %s3555_s28, %s3555_s28 }
  0x21   :  { %p3562_p0 = por %p3561_p13, %p3560_p12 }
  0x23   :  { %p3563_p1 = pnand %p3562_p0, %p3556_p11 }
  0x25   :  { %3566 = shalt.err (!%p3563_p1)
}
  0x26   :  { %s3751_s2 = smov 256   ;;  %s3752_s22 = smov 16  }
  0x27   :  { %81 = dma.hbm_to_vmem [thread:$0]  %s4874_s4, 4096, %s3830_s24, [#allocation15], %s3751_s2, %s3751_s2, %s3752_s22  }
  0x28   :  { %s3753_s13 = smov [#allocation17]   ;;  %s3754_s17 = smov [#allocation6]  }
  0x29   :  { %s101_s14 = sshll.u32 %s3753_s13, 4  ;;  %s29_s18 = sshll.u32 %s3754_s17, 4  ;;  %s102_s14 = int_to_ptr.vmem [resolvable:$true] %s101_s14  ;;  %s3867_s18 = int_to_ptr.vmem [resolvable:$true] %s29_s18 }
  0x2a   :  { %s3567_s21 = scalar_lea.hbm %s4877_s7, 2048 }
  0x2b   :  { %p3568_p2 = scmp.ne.s32.totalorder %s4877_s7, %s3567_s21  ;;  %p3571_p3 = scmp.lt.u32.totalorder %s3567_s21, %s4877_s7 }
  0x2d   :  { %p3573_p4 = pnand %p3571_p3, %p3568_p2 }
  0x2f   :  { %3576 = shalt.err (!%p3573_p4)
}
  0x30   :  { %s3577_s4 = scalar_lea.vmem %s102_s14, 2048  ;;  %p3582_p6 = scmp.lt.s32.totalorder %s102_s14, %s102_s14 }
  0x31   :  { %p3578_p5 = scmp.ne.s32.totalorder %s102_s14, %s3577_s4  ;;  %p3583_p7 = scmp.lt.s32.totalorder %s3577_s4, %s3577_s4 }
  0x33   :  { %p3584_p8 = por %p3583_p7, %p3582_p6 }
  0x35   :  { %p3585_p9 = pnand %p3584_p8, %p3578_p5 }
  0x37   :  { %3588 = shalt.err (!%p3585_p9)
}
  0x38   :  { %107 = dma.hbm_to_vmem [thread:$0]  %s4877_s7, 2048, %s102_s14, [#allocation18], %s3751_s2, %s3751_s2, %s3752_s22  }
  0x39   :  { %s3589_s13 = scalar_lea.hbm %s4870_s0, 8064 }
  0x3a   :  { %p3590_p10 = scmp.ne.s32.totalorder %s4870_s0, %s3589_s13  ;;  %p3593_p11 = scmp.lt.u32.totalorder %s3589_s13, %s4870_s0 }
  0x3c   :  { %p3595_p12 = pnand %p3593_p11, %p3590_p10 }
  0x3e   :  { %3598 = shalt.err (!%p3595_p12)
}
  0x3f   :  { %s3599_s23 = scalar_lea.vmem %s3867_s18, 8064  ;;  %p3604_p0 = scmp.lt.s32.totalorder %s3867_s18, %s3867_s18 }
  0x40   :  { %p3600_p13 = scmp.ne.s32.totalorder %s3867_s18, %s3599_s23  ;;  %p3605_p1 = scmp.lt.s32.totalorder %s3599_s23, %s3599_s23 }
  0x42   :  { %p3606_p2 = por %p3605_p1, %p3604_p0 }
  0x44   :  { %p3607_p3 = pnand %p3606_p2, %p3600_p13 }
  0x46   :  { %3610 = shalt.err (!%p3607_p3)
}
  0x47   :  { %35 = dma.hbm_to_vmem [thread:$0]  %s4870_s0, 8064, %s3867_s18, [#allocation7], %s3749_s15, %s3749_s15, %s3750_s16  }
  0x48   :  { %s42_s27 = sshll.u32 %s4871_s1, 4  ;;  %s43_s27 = int_to_ptr.vmem [resolvable:$true] %s42_s27 }
  0x49   :  { %s3611_s4 = scalar_lea.vmem %s43_s27, 16  ;;  %p3616_p5 = scmp.lt.s32.totalorder %s43_s27, %s43_s27 }
  0x4a   :  { %p3612_p4 = scmp.ne.s32.totalorder %s43_s27, %s3611_s4  ;;  %p3617_p6 = scmp.lt.s32.totalorder %s3611_s4, %s3611_s4 }
  0x4c   :  { %p3618_p7 = por %p3617_p6, %p3616_p5 }
  0x4e   :  { %p3619_p8 = pnand %p3618_p7, %p3612_p4 }
  0x50   :  { %3622 = shalt.err (!%p3619_p8)
}
  0x51   :  { %s3755_s24 = smov [#allocation10]   ;;  %s3756_s28 = smov [#allocation13]  }
  0x52   :  { %45 = dma.vmem_to_smem %s43_s27, 16, %s3755_s24, [#allocation9]  }
  0x53   :  { %s63_s29 = sshll.u32 %s3756_s28, 4  ;;  %s3757_s30 = smov [#allocation16]   ;;  %s64_s29 = int_to_ptr.vmem [resolvable:$true] %s63_s29 }
  0x54   :  { %s87_s13 = sshll.u32 %s3757_s30, 4  ;;  %s3623_s17 = scalar_lea.hbm %s4873_s3, 896  ;;  %s88_s13 = int_to_ptr.vmem [resolvable:$true] %s87_s13 }
  0x55   :  { %p3624_p9 = scmp.ne.s32.totalorder %s4873_s3, %s3623_s17  ;;  %p3627_p10 = scmp.lt.u32.totalorder %s3623_s17, %s4873_s3 }
  0x57   :  { %p3629_p11 = pnand %p3627_p10, %p3624_p9 }
  0x59   :  { %3632 = shalt.err (!%p3629_p11)
}
  0x5a   :  { %s3633_s23 = scalar_lea.vmem %s64_s29, 896  ;;  %p3638_p13 = scmp.lt.s32.totalorder %s64_s29, %s64_s29 }
  0x5b   :  { %p3634_p12 = scmp.ne.s32.totalorder %s64_s29, %s3633_s23  ;;  %p3639_p0 = scmp.lt.s32.totalorder %s3633_s23, %s3633_s23 }
  0x5d   :  { %p3640_p1 = por %p3639_p0, %p3638_p13 }
  0x5f   :  { %p3641_p2 = pnand %p3640_p1, %p3634_p12 }
  0x61   :  { %3644 = shalt.err (!%p3641_p2)
}
  0x62   :  { %69 = dma.hbm_to_vmem [thread:$0]  %s4873_s3, 896, %s64_s29, [#allocation12], %s3749_s15, %s3749_s15, %s3750_s16  }
  0x63   :  { %s3645_s27 = scalar_lea.hbm %s4875_s5, 2048 }
  0x64   :  { %p3646_p3 = scmp.ne.s32.totalorder %s4875_s5, %s3645_s27  ;;  %p3649_p4 = scmp.lt.u32.totalorder %s3645_s27, %s4875_s5 }
  0x66   :  { %p3651_p5 = pnand %p3649_p4, %p3646_p3 }
  0x68   :  { %3654 = shalt.err (!%p3651_p5)
}
  0x69   :  { %s3655_s0 = scalar_lea.vmem %s88_s13, 2048  ;;  %p3660_p7 = scmp.lt.s32.totalorder %s88_s13, %s88_s13 }
  0x6a   :  { %p3656_p6 = scmp.ne.s32.totalorder %s88_s13, %s3655_s0  ;;  %p3661_p8 = scmp.lt.s32.totalorder %s3655_s0, %s3655_s0 }
  0x6c   :  { %p3662_p9 = por %p3661_p8, %p3660_p7 }
  0x6e   :  { %p3663_p10 = pnand %p3662_p9, %p3656_p6 }
  0x70   :  { %3666 = shalt.err (!%p3663_p10)
}
  0x71   :  { %93 = dma.hbm_to_vmem [thread:$0]  %s4875_s5, 2048, %s88_s13, [#allocation15], %s3751_s2, %s3751_s2, %s3752_s22  }
  0x72   :  { %s3758_s18 = smov [#allocation19]   ;;  %s3759_s1 = smov [#allocation20]  }
  0x73   :  { %s113_s17 = sshll.u32 %s3758_s18, 4  ;;  %s127_s19 = sshll.u32 %s3759_s1, 4  ;;  %s114_s17 = int_to_ptr.vmem [resolvable:$true] %s113_s17  ;;  %s128_s19 = int_to_ptr.vmem [resolvable:$true] %s127_s19 }
  0x74   :  { %s3667_s23 = scalar_lea.hbm %s4878_s8, 2048 }
  0x75   :  { %p3668_p11 = scmp.ne.s32.totalorder %s4878_s8, %s3667_s23  ;;  %p3671_p12 = scmp.lt.u32.totalorder %s3667_s23, %s4878_s8 }
  0x77   :  { %p3673_p13 = pnand %p3671_p12, %p3668_p11 }
  0x79   :  { %3676 = shalt.err (!%p3673_p13)
}
  0x7a   :  { %s3677_s5 = scalar_lea.vmem %s114_s17, 2048  ;;  %p3682_p1 = scmp.lt.s32.totalorder %s114_s17, %s114_s17 }
  0x7b   :  { %p3678_p0 = scmp.ne.s32.totalorder %s114_s17, %s3677_s5  ;;  %p3683_p2 = scmp.lt.s32.totalorder %s3677_s5, %s3677_s5 }
  0x7d   :  { %p3684_p3 = por %p3683_p2, %p3682_p1 }
  0x7f   :  { %p3685_p4 = pnand %p3684_p3, %p3678_p0 }
  0x81   :  { %3688 = shalt.err (!%p3685_p4)
}
  0x82   :  { %119 = dma.hbm_to_vmem [thread:$0]  %s4878_s8, 2048, %s114_s17, [#allocation18], %s3751_s2, %s3751_s2, %s3752_s22  }
  0x83   :  { %s3689_s28 = scalar_lea.hbm %s4880_s10, 1024 }
  0x84   :  { %p3690_p5 = scmp.ne.s32.totalorder %s4880_s10, %s3689_s28  ;;  %p3693_p6 = scmp.lt.u32.totalorder %s3689_s28, %s4880_s10 }
  0x86   :  { %p3695_p7 = pnand %p3693_p6, %p3690_p5 }
  0x88   :  { %3698 = shalt.err (!%p3695_p7)
}
  0x89   :  { %s3699_s18 = scalar_lea.vmem %s128_s19, 1024  ;;  %p3704_p9 = scmp.lt.s32.totalorder %s128_s19, %s128_s19 }
  0x8a   :  { %p3700_p8 = scmp.ne.s32.totalorder %s128_s19, %s3699_s18  ;;  %p3705_p10 = scmp.lt.s32.totalorder %s3699_s18, %s3699_s18 }
  0x8c   :  { %p3706_p11 = por %p3705_p10, %p3704_p9 }
  0x8e   :  { %p3707_p12 = pnand %p3706_p11, %p3700_p8 }
  0x90   :  { %3710 = shalt.err (!%p3707_p12)
}
  0x91   :  { %133 = dma.hbm_to_vmem [thread:$0]  %s4880_s10, 1024, %s128_s19, [#allocation21], %s3749_s15, %s3749_s15, %s3750_s16  }
  0x92   :  { %3733 = dma.done.wait [#allocation7], 8064  }
  0x93   :  { %3734 = vsyncadd [#allocation7], 4294959232 }
  0x94   :  { %3735 = dma.done.wait [#allocation9], 16  }
  0x95   :  { %3736 = vsyncadd [#allocation9], 4294967280 }
  0x96   :  { %3737 = dma.done.wait [#allocation12], 1792  }
  0x97   :  { %3738 = vsyncadd [#allocation12], 4294965504 }
  0x98   :  { %3739 = dma.done.wait [#allocation15], 6144  }
  0x99   :  { %3740 = vsyncadd [#allocation15], 4294961152 }
  0x9a   :  { %3741 = dma.done.wait [#allocation18], 4096  }
  0x9b   :  { %3742 = vsyncadd [#allocation18], 4294963200 }
  0x9c   :  { %3743 = dma.done.wait [#allocation21], 1024  }
  0x9d   :  { %3744 = vsyncadd [#allocation21], 4294966272 }
  0x9e   :  { %163 = sfence }
  0x9f   :  { %v433_v0 = vld [vmem:[#allocation14 + $0x8] sm:$0xff]  ;;  %v435_v1 = vld [vmem:[#allocation14 + $0x18] sm:$0xff]  ;;  %v432_v2 = vld [vmem:[#allocation14] sm:$0xff]  ;;  %s3967_s22 = sld [smem:[#allocation10]]  ;;  %v3760_v7 = vmov 0.0   ;;  %s3970_s10 = sld [smem:[#allocation10 + $0x1]] }
  0xa0   :  { %v3073_v3 = vpack.c.bf16 %v435_v1, %v433_v0  ;;  %v434_v4 = vld [vmem:[#allocation14 + $0x10] sm:$0xff]  ;;  %v437_v5 = vld [vmem:[#allocation14 + $0x28] sm:$0xff]  ;;  %v439_v6 = vld [vmem:[#allocation14 + $0x38] sm:$0xff]  ;;  %540 = vmatprep.mubr.f32.mxu0 %v3760_v7  ;;  %840 = vmatprep.mubr.f32.mxu1 %v3760_v7  ;;  %s3973_s17 = sld [smem:[#allocation10 + $0x2]]  ;;  %s3975_s1 = sld [smem:[#allocation10 + $0x3]]  ;;  %vm743_vm3 = vcmask 523520  }
  0xa1   :  { %v3075_v8 = vpack.c.bf16 %v434_v4, %v432_v2  ;;  %v3077_v9 = vpack.c.bf16 %v439_v6, %v437_v5  ;;  %v436_v10 = vld [vmem:[#allocation14 + $0x20] sm:$0xff]  ;;  %v438_v11 = vld [vmem:[#allocation14 + $0x30] sm:$0xff]  ;;  %v441_v12 = vld [vmem:[#allocation14 + $0x48] sm:$0xff]  ;;  %s3977_s19 = sld [smem:[#allocation10 + $0x4]]  ;;  %s3987_s20 = sld [smem:[#allocation10 + $0x5]]  ;;  %vm625_vm4 = vcmask 523264  }
  0xa2   :  { %3074 = vmatprep.subr.bf16.mxu0 %v3073_v3  ;;  %v443_v13 = vld [vmem:[#allocation14 + $0x58] sm:$0xff]  ;;  %v440_v14 = vld [vmem:[#allocation14 + $0x40] sm:$0xff]  ;;  %v3079_v15 = vpack.c.bf16 %v438_v11, %v436_v10  ;;  %v442_v16 = vld [vmem:[#allocation14 + $0x50] sm:$0xff]  ;;  %s3995_s21 = sld [smem:[#allocation10 + $0x6]]  ;;  %s4003_s23 = sld [smem:[#allocation10 + $0x7]]  ;;  %vm736_vm5 = vcmask 261120  }
  0xa3   :  { %3076 = vmatpush1.bf16.msra.mxu0 %v3075_v8  ;;  %v445_v17 = vld [vmem:[#allocation14 + $0x68] sm:$0xff]  ;;  %v447_v18 = vld [vmem:[#allocation14 + $0x78] sm:$0xff]  ;;  %v3081_v19 = vpack.c.bf16 %v443_v13, %v441_v12  ;;  %v3979_v20 = vld [vmem:[#allocation14 + $0x60] sm:$0xff]  ;;  %v3083_v30 = vpack.c.bf16 %v442_v16, %v440_v14  ;;  %s4014_s7 = sld [smem:[#allocation10 + $0x8]]  ;;  %s4046_s14 = sld [smem:[#allocation10 + $0x9]]  ;;  %vm3763_vm6 = vmmov 0  }
  0xa4   :  { %3078 = vmatprep.subr.bf16.mxu0 %v3077_v9  ;;  %v3981_v21 = vld [vmem:[#allocation14 + $0x70] sm:$0xff]  ;;  %v3983_v22 = vld [vmem:[#allocation14 + $0x88] sm:$0xff]  ;;  %v3985_v23 = vld [vmem:[#allocation14 + $0x98] sm:$0xff]  ;;  %v3085_v35 = vpack.c.bf16 %v447_v18, %v445_v17 }
  0xa5   :  { %v3989_v24 = vld [vmem:[#allocation14 + $0x80] sm:$0xff]  ;;  %v3991_v25 = vld [vmem:[#allocation14 + $0x90] sm:$0xff]  ;;  %v3993_v26 = vld [vmem:[#allocation14 + $0xa8] sm:$0xff]  ;;  %v4012_v34 = vstv %s3967_s22  ;;  %v4023_v39 = vstv %s3970_s10  ;;  %v3087_v41 = vpack.c.bf16 %v3981_v21, %v3979_v20  ;;  %v3089_v42 = vpack.c.bf16 %v3985_v23, %v3983_v22 }
  0xa6   :  { %v3997_v27 = vld [vmem:[#allocation14 + $0xb8] sm:$0xff]  ;;  %v3999_v28 = vld [vmem:[#allocation14 + $0xa0] sm:$0xff]  ;;  %v4001_v29 = vld [vmem:[#allocation14 + $0xb0] sm:$0xff]  ;;  %v4026_v40 = vstv %s3973_s17  ;;  %v3091_v43 = vpack.c.bf16 %v3991_v25, %v3989_v24  ;;  %v4044_v53 = vstv %s3975_s1 }
  0xa7   :  { %3080 = vmatpush1.bf16.msra.mxu0 %v3079_v15  ;;  %v4005_v31 = vld [vmem:[#allocation14 + $0xc8] sm:$0xff]  ;;  %v4007_v32 = vld [vmem:[#allocation14 + $0xd8] sm:$0xff]  ;;  %v4009_v33 = vld [vmem:[#allocation14 + $0xc0] sm:$0xff]  ;;  %v3093_v47 = vpack.c.bf16 %v3997_v27, %v3993_v26  ;;  %v3095_v48 = vpack.c.bf16 %v4001_v29, %v3999_v28  ;;  %v4053_v58 = vstv %s3977_s19  ;;  %v4062_v0 = vstv %s3987_s20 }
  0xa8   :  { %3082 = vmatprep.subr.bf16.mxu0 %v3081_v19  ;;  %v4016_v36 = vld [vmem:[#allocation14 + $0xd0] sm:$0xff]  ;;  %v4018_v37 = vld [vmem:[#allocation14 + $0xe8] sm:$0xff]  ;;  %v4020_v38 = vld [vmem:[#allocation14 + $0xf8] sm:$0xff]  ;;  %v3097_v54 = vpack.c.bf16 %v4007_v32, %v4005_v31  ;;  %v4066_v6 = vstv %s3995_s21  ;;  %v4069_v8 = vstv %s4003_s23 }
  0xa9   :  { %v4034_v44 = vld [vmem:[#allocation14 + $0xe0] sm:$0xff]  ;;  %v4036_v45 = vld [vmem:[#allocation14 + $0xf0] sm:$0xff]  ;;  %v164_v46 = vld [vmem:[#allocation6] sm:$0xff]  ;;  %v3099_v61 = vpack.c.bf16 %v4016_v36, %v4009_v33  ;;  %v3101_v62 = vpack.c.bf16 %v4020_v38, %v4018_v37  ;;  %v4073_v13 = vstv %s4014_s7 }
  0xaa   :  { %v173_v49 = vmul.f32 %v4012_v34, %v164_v46  ;;  %v181_v50 = vld [vmem:[#allocation6 + $0x38] sm:$0xff]  ;;  %v205_v51 = vld [vmem:[#allocation6 + $0x70] sm:$0xff]  ;;  %v229_v52 = vld [vmem:[#allocation6 + $0xa8] sm:$0xff]  ;;  %v3103_v63 = vpack.c.bf16 %v4036_v45, %v4034_v44 }
  0xab   :  { %3084 = vmatpush1.bf16.msra.mxu0 %v3083_v30  ;;  %v190_v55 = vmul.f32 %v4023_v39, %v181_v50  ;;  %v214_v56 = vmul.f32 %v4026_v40, %v205_v51  ;;  %v253_v57 = vld [vmem:[#allocation6 + $0xe0] sm:$0xff]  ;;  %v277_v59 = vld [vmem:[#allocation6 + $0x118] sm:$0xff]  ;;  %v301_v60 = vld [vmem:[#allocation6 + $0x150] sm:$0xff]  ;;  %v238_v5 = vmul.f32 %v4044_v53, %v229_v52 }
  0xac   :  { %3086 = vmatprep.subr.bf16.mxu0 %v3085_v35  ;;  %v325_v1 = vld [vmem:[#allocation6 + $0x188] sm:$0xff]  ;;  %v349_v2 = vld [vmem:[#allocation6 + $0x1c0] sm:$0xff]  ;;  %v610_v3 = vld [vmem:[#allocation16 + $0x8] sm:$0xff]  ;;  %v262_v12 = vmul.f32 %v4053_v58, %v253_v57  ;;  %v286_v46 = vmul.f32 %v4062_v0, %v277_v59 }
  0xad   :  { %v197_v4 = vadd.f32 %v190_v55, %v173_v49  ;;  %v612_v9 = vld [vmem:[#allocation16 + $0x18] sm:$0xff]  ;;  %v609_v10 = vld [vmem:[#allocation16] sm:$0xff]  ;;  %v611_v11 = vld [vmem:[#allocation16 + $0x10] sm:$0xff]  ;;  %v310_v49 = vmul.f32 %v4066_v6, %v301_v60  ;;  %v4085_v50 = vmul.f32 %v4069_v8, %v325_v1  ;;  %v4094_v60 = vstv %s4046_s14 }
  0xae   :  { %v4075_v14 = vpack.c.bf16 %v612_v9, %v610_v3  ;;  %v4077_v15 = vpack.c.bf16 %v611_v11, %v609_v10  ;;  %v165_v16 = vld [vmem:[#allocation6 + $0x8] sm:$0xff]  ;;  %v182_v17 = vld [vmem:[#allocation6 + $0x40] sm:$0xff]  ;;  %v206_v18 = vld [vmem:[#allocation6 + $0x78] sm:$0xff] }
  0xaf   :  { %3088 = vmatpush1.bf16.msra.mxu0 %v3087_v41  ;;  %v221_v19 = vadd.f32 %v214_v56, %v197_v4  ;;  %v174_v20 = vmul.f32 %v4012_v34, %v165_v16  ;;  %v191_v21 = vmul.f32 %v4023_v39, %v182_v17  ;;  %v215_v22 = vmul.f32 %v4026_v40, %v206_v18  ;;  %v230_v23 = vld [vmem:[#allocation6 + $0xb0] sm:$0xff]  ;;  %v254_v30 = vld [vmem:[#allocation6 + $0xe8] sm:$0xff]  ;;  %v278_v35 = vld [vmem:[#allocation6 + $0x120] sm:$0xff] }
  0xb0   :  { %3090 = vmatprep.subr.bf16.mxu0 %v3089_v42  ;;  %v302_v41 = vld [vmem:[#allocation6 + $0x158] sm:$0xff]  ;;  %v326_v51 = vld [vmem:[#allocation6 + $0x190] sm:$0xff]  ;;  %v350_v52 = vld [vmem:[#allocation6 + $0x1c8] sm:$0xff]  ;;  %3122 = vmatprep.subr.bf16.mxu1 %v4075_v14  ;;  %v4089_v56 = vmul.f32 %v4073_v13, %v349_v2  ;;  %v239_v42 = vmul.f32 %v4044_v53, %v230_v23  ;;  %v263_v1 = vmul.f32 %v4053_v58, %v254_v30 }
  0xb1   :  { %v245_v55 = vadd.f32 %v238_v5, %v221_v19  ;;  %v198_v57 = vadd.f32 %v191_v21, %v174_v20  ;;  %v614_v3 = vld [vmem:[#allocation16 + $0x28] sm:$0xff]  ;;  %v616_v4 = vld [vmem:[#allocation16 + $0x38] sm:$0xff]  ;;  %3124 = vmatpush1.bf16.msra.mxu1 %v4077_v15  ;;  %v183_v5 = vld [vmem:[#allocation6 + $0x48] sm:$0xff]  ;;  %v287_v21 = vmul.f32 %v4062_v0, %v278_v35  ;;  %v311_v23 = vmul.f32 %v4066_v6, %v302_v41 }
  0xb2   :  { %v166_v59 = vld [vmem:[#allocation6 + $0x10] sm:$0xff]  ;;  %v4097_v9 = vpack.c.bf16 %v616_v4, %v614_v3  ;;  %v207_v11 = vld [vmem:[#allocation6 + $0x80] sm:$0xff]  ;;  %v231_v2 = vld [vmem:[#allocation6 + $0xb8] sm:$0xff]  ;;  %v192_v18 = vmul.f32 %v4023_v39, %v183_v5  ;;  %v4111_v30 = vmul.f32 %v4069_v8, %v326_v51  ;;  %v4114_v24 = vmul.f32 %v4073_v13, %v350_v52 }
  0xb3   :  { %v175_v10 = vmul.f32 %v4012_v34, %v166_v59  ;;  %3092 = vmatpush1.bf16.msra.mxu0 %v3091_v43  ;;  %v269_v16 = vadd.f32 %v262_v12, %v245_v55  ;;  %v222_v17 = vadd.f32 %v215_v22, %v198_v57  ;;  %v216_v19 = vmul.f32 %v4026_v40, %v207_v11  ;;  %v255_v20 = vld [vmem:[#allocation6 + $0xf0] sm:$0xff]  ;;  %v279_v25 = vld [vmem:[#allocation6 + $0x128] sm:$0xff]  ;;  %v303_v43 = vld [vmem:[#allocation6 + $0x160] sm:$0xff] }
  0xb4   :  { %3094 = vmatprep.subr.bf16.mxu0 %v3093_v47  ;;  %v613_v12 = vld [vmem:[#allocation16 + $0x20] sm:$0xff]  ;;  %v240_v3 = vmul.f32 %v4044_v53, %v231_v2  ;;  %v615_v26 = vld [vmem:[#allocation16 + $0x30] sm:$0xff]  ;;  %v184_v47 = vld [vmem:[#allocation6 + $0x50] sm:$0xff]  ;;  %3126 = vmatprep.subr.bf16.mxu1 %v4097_v9  ;;  %v264_v35 = vmul.f32 %v4053_v58, %v255_v20 }
  0xb5   :  { %v293_v22 = vadd.f32 %v286_v46, %v269_v16  ;;  %v246_v55 = vadd.f32 %v239_v42, %v222_v17  ;;  %v199_v57 = vadd.f32 %v192_v18, %v175_v10  ;;  %v167_v27 = vld [vmem:[#allocation6 + $0x18] sm:$0xff]  ;;  %v4119_v51 = vpack.c.bf16 %v615_v26, %v613_v12  ;;  %v208_v59 = vld [vmem:[#allocation6 + $0x88] sm:$0xff]  ;;  %v232_v46 = vld [vmem:[#allocation6 + $0xc0] sm:$0xff] }
  0xb6   :  { %v327_v41 = vld [vmem:[#allocation6 + $0x198] sm:$0xff]  ;;  %v176_v52 = vmul.f32 %v4012_v34, %v167_v27  ;;  %v193_v4 = vmul.f32 %v4023_v39, %v184_v47  ;;  %v217_v11 = vmul.f32 %v4026_v40, %v208_v59  ;;  %v280_v16 = vld [vmem:[#allocation6 + $0x130] sm:$0xff]  ;;  %v288_v17 = vmul.f32 %v4062_v0, %v279_v25  ;;  %v620_v29 = vld [vmem:[#allocation16 + $0x58] sm:$0xff] }
  0xb7   :  { %3096 = vmatpush1.bf16.msra.mxu0 %v3095_v48  ;;  %v317_v42 = vadd.f32 %v310_v49, %v293_v22  ;;  %v270_v10 = vadd.f32 %v263_v1, %v246_v55  ;;  %v223_v5 = vadd.f32 %v216_v19, %v199_v57  ;;  %v256_v2 = vld [vmem:[#allocation6 + $0xf8] sm:$0xff]  ;;  %v312_v18 = vmul.f32 %v4066_v6, %v303_v43  ;;  %v618_v28 = vld [vmem:[#allocation16 + $0x48] sm:$0xff]  ;;  %v617_v22 = vld [vmem:[#allocation16 + $0x40] sm:$0xff] }
  0xb8   :  { %3098 = vmatprep.subr.bf16.mxu0 %v3097_v54  ;;  %v200_v20 = vadd.f32 %v193_v4, %v176_v52  ;;  %v241_v12 = vmul.f32 %v4044_v53, %v232_v46  ;;  %v336_v19 = vmul.f32 %v4069_v8, %v327_v41  ;;  %v619_v55 = vld [vmem:[#allocation16 + $0x50] sm:$0xff]  ;;  %v168_v57 = vld [vmem:[#allocation6 + $0x20] sm:$0xff]  ;;  %3128 = vmatpush1.bf16.msra.mxu1 %v4119_v51  ;;  %v351_v31 = vld [vmem:[#allocation6 + $0x1d0] sm:$0xff] }
  0xb9   :  { %v341_v48 = vadd.f32 %v4085_v50, %v317_v42  ;;  %v294_v49 = vadd.f32 %v287_v21, %v270_v10  ;;  %v247_v1 = vadd.f32 %v240_v3, %v223_v5  ;;  %v265_v54 = vmul.f32 %v4053_v58, %v256_v2  ;;  %v185_v26 = vld [vmem:[#allocation6 + $0x58] sm:$0xff]  ;;  %v209_v27 = vld [vmem:[#allocation6 + $0x90] sm:$0xff]  ;;  %v304_v47 = vld [vmem:[#allocation6 + $0x168] sm:$0xff] }
  0xba   :  { %v224_v32 = vadd.f32 %v217_v11, %v200_v20  ;;  %v289_v25 = vmul.f32 %v4062_v0, %v280_v16  ;;  %v4138_v43 = vpack.c.bf16 %v620_v29, %v618_v28  ;;  %v4144_v41 = vpack.c.bf16 %v619_v55, %v617_v22  ;;  %v233_v52 = vld [vmem:[#allocation6 + $0xc8] sm:$0xff]  ;;  %v328_v59 = vld [vmem:[#allocation6 + $0x1a0] sm:$0xff]  ;;  %v210_v28 = vld [vmem:[#allocation6 + $0x98] sm:$0xff] }
  0xbb   :  { %3100 = vmatpush1.bf16.msra.mxu0 %v3099_v61  ;;  %v365_v50 = vadd.f32 %v4089_v56, %v341_v48  ;;  %v318_v21 = vadd.f32 %v311_v23, %v294_v49  ;;  %v271_v3 = vadd.f32 %v264_v35, %v247_v1  ;;  %v177_v46 = vmul.f32 %v4012_v34, %v168_v57  ;;  %v352_v35 = vld [vmem:[#allocation6 + $0x1d8] sm:$0xff]  ;;  %v257_v10 = vld [vmem:[#allocation6 + $0x100] sm:$0xff]  ;;  %v169_v11 = vld [vmem:[#allocation6 + $0x28] sm:$0xff] }
  0xbc   :  { %3102 = vmatprep.subr.bf16.mxu0 %v3101_v62  ;;  %v248_v4 = vadd.f32 %v241_v12, %v224_v32  ;;  %v194_v42 = vmul.f32 %v4023_v39, %v185_v26  ;;  %v218_v33 = vmul.f32 %v4026_v40, %v209_v27  ;;  %v360_v23 = vmul.f32 %v4073_v13, %v351_v31  ;;  %v186_v2 = vld [vmem:[#allocation6 + $0x60] sm:$0xff]  ;;  %v281_v12 = vld [vmem:[#allocation6 + $0x138] sm:$0xff]  ;;  %v234_v22 = vld [vmem:[#allocation6 + $0xd0] sm:$0xff] }
  0xbd   :  { %v374_v36 = vadd.f32 %v4094_v60, %v365_v50  ;;  %v342_v61 = vadd.f32 %v4111_v30, %v318_v21  ;;  %v295_v56 = vadd.f32 %v288_v17, %v271_v3  ;;  %3130 = vmatprep.subr.bf16.mxu1 %v4138_v43  ;;  %v313_v38 = vmul.f32 %v4066_v6, %v304_v47  ;;  %v329_v55 = vld [vmem:[#allocation6 + $0x1a8] sm:$0xff]  ;;  %v282_v3 = vld [vmem:[#allocation6 + $0x140] sm:$0xff]  ;;  %v622_v47 = vld [vmem:[#allocation16 + $0x68] sm:$0xff] }
  0xbe   :  { %v272_v37 = vadd.f32 %v265_v54, %v248_v4  ;;  %v201_v62 = vadd.f32 %v194_v42, %v177_v46  ;;  %v242_v5 = vmul.f32 %v4044_v53, %v233_v52  ;;  %3132 = vmatpush1.bf16.msra.mxu1 %v4144_v41  ;;  %v337_v20 = vmul.f32 %v4069_v8, %v328_v59  ;;  %v353_v54 = vld [vmem:[#allocation6 + $0x1e0] sm:$0xff]  ;;  %v258_v26 = vld [vmem:[#allocation6 + $0x108] sm:$0xff] }
  0xbf   :  { %3104 = vmatpush1.bf16.msra.mxu0 %v3103_v63  ;;  %v381_v30 = vmax.f32 %v374_v36, 0.0  ;;  %v366_v16 = vadd.f32 %v4114_v24, %v342_v61  ;;  %v319_v17 = vadd.f32 %v312_v18, %v295_v56  ;;  %v361_v48 = vmul.f32 %v4073_v13, %v352_v35  ;;  %v305_v63 = vld [vmem:[#allocation6 + $0x170] sm:$0xff]  ;;  %v624_v52 = vld [vmem:[#allocation16 + $0x78] sm:$0xff]  ;;  %v187_v36 = vld [vmem:[#allocation6 + $0x68] sm:$0xff] }
  0xc0   :  { %3106 = vmatprep.subr.bf16.mxu0 %v4075_v14  ;;  %v296_v29 = vadd.f32 %v289_v25, %v272_v37  ;;  %v225_v49 = vadd.f32 %v218_v33, %v201_v62  ;;  %v266_v1 = vmul.f32 %v4053_v58, %v257_v10  ;;  %v178_v24 = vmul.f32 %v4012_v34, %v169_v11  ;;  %v170_v33 = vld [vmem:[#allocation6 + $0x30] sm:$0xff]  ;;  %v621_v10 = vld [vmem:[#allocation16 + $0x60] sm:$0xff]  ;;  %v623_v37 = vld [vmem:[#allocation16 + $0x70] sm:$0xff] }
  0xc1   :  { %v375_v44 = vadd.f32 %v4094_v60, %v366_v16  ;;  %v343_v45 = vadd.f32 %v336_v19, %v319_v17  ;;  %v195_v18 = vmul.f32 %v4023_v39, %v186_v2  ;;  %v290_v32 = vmul.f32 %v4062_v0, %v281_v12  ;;  %v306_v2 = vld [vmem:[#allocation6 + $0x178] sm:$0xff]  ;;  %v330_v12 = vld [vmem:[#allocation6 + $0x1b0] sm:$0xff] }
  0xc2   :  { %541 = vmatmul.mubr.f32.vlgmr.msra.gmra.mrb[0].mxu0 %v381_v30  ;;  %v320_v57 = vadd.f32 %v313_v38, %v296_v29  ;;  %v249_v31 = vadd.f32 %v242_v5, %v225_v49  ;;  %v219_v25 = vmul.f32 %v4026_v40, %v210_v28  ;;  %v243_v21 = vmul.f32 %v4044_v53, %v234_v22  ;;  %v211_v38 = vld [vmem:[#allocation6 + $0xa0] sm:$0xff]  ;;  %v235_v16 = vld [vmem:[#allocation6 + $0xd8] sm:$0xff] }
  0xc3   :  { %3108 = vmatpush1.bf16.msra.mxu0 %v4077_v15  ;;  %546 = vmatprep.mubr.f32.mxu0 %v3760_v7  ;;  %v382_v19 = vmax.f32 %v375_v44, 0.0  ;;  %v367_v27 = vadd.f32 %v360_v23, %v343_v45  ;;  %v202_v50 = vadd.f32 %v195_v18, %v178_v24  ;;  %v314_v46 = vmul.f32 %v4066_v6, %v305_v63  ;;  %v259_v44 = vld [vmem:[#allocation6 + $0x110] sm:$0xff] }
  0xc4   :  { %3110 = vmatprep.subr.bf16.mxu0 %v4097_v9  ;;  %v344_v4 = vadd.f32 %v337_v20, %v320_v57  ;;  %v273_v59 = vadd.f32 %v266_v1, %v249_v31  ;;  %v338_v42 = vmul.f32 %v4069_v8, %v329_v55  ;;  %v362_v56 = vmul.f32 %v4073_v13, %v353_v54  ;;  %v354_v57 = vld [vmem:[#allocation6 + $0x1e8] sm:$0xff] }
  0xc5   :  { %v376_v61 = vadd.f32 %v4094_v60, %v367_v27  ;;  %v226_v23 = vadd.f32 %v219_v25, %v202_v50  ;;  %v267_v35 = vmul.f32 %v4053_v58, %v258_v26  ;;  %v291_v11 = vmul.f32 %v4062_v0, %v282_v3  ;;  %v283_v31 = vld [vmem:[#allocation6 + $0x148] sm:$0xff]  ;;  %v307_v25 = vld [vmem:[#allocation6 + $0x180] sm:$0xff]  ;;  %v331_v3 = vld [vmem:[#allocation6 + $0x1b8] sm:$0xff] }
  0xc6   :  { %547 = vmatmul.mubr.f32.gmra.mrb[2].mxu0 %v382_v19  ;;  %v368_v62 = vadd.f32 %v361_v48, %v344_v4  ;;  %v297_v5 = vadd.f32 %v290_v32, %v273_v59  ;;  %v4182_v30 = vpack.c.bf16 %v624_v52, %v622_v47  ;;  %v179_v28 = vmul.f32 %v4012_v34, %v170_v33  ;;  %v355_v59 = vld [vmem:[#allocation6 + $0x1f0] sm:$0xff] }
  0xc7   :  { %552 = vmatprep.mubr.f32.mxu0 %v3760_v7  ;;  %v383_v17 = vmax.f32 %v376_v61, 0.0  ;;  %3112 = vmatpush1.bf16.msra.mxu0 %v4119_v51  ;;  %v250_v20 = vadd.f32 %v243_v21, %v226_v23  ;;  %v196_v29 = vmul.f32 %v4023_v39, %v187_v36  ;;  %v4190_v1 = vpack.c.bf16 %v623_v37, %v621_v10 }
  0xc8   :  { %v377_v48 = vadd.f32 %v4094_v60, %v368_v62  ;;  %3114 = vmatprep.subr.bf16.mxu0 %v4138_v43  ;;  %v321_v49 = vadd.f32 %v314_v46, %v297_v5  ;;  %v220_v22 = vmul.f32 %v4026_v40, %v211_v38  ;;  %v315_v63 = vmul.f32 %v4066_v6, %v306_v2 }
  0xc9   :  { %v274_v45 = vadd.f32 %v267_v35, %v250_v20  ;;  %v203_v55 = vadd.f32 %v196_v29, %v179_v28  ;;  %v244_v24 = vmul.f32 %v4044_v53, %v235_v16  ;;  %3134 = vmatprep.subr.bf16.mxu1 %v4182_v30  ;;  %v339_v18 = vmul.f32 %v4069_v8, %v330_v12  ;;  %v464_v12 = vld [vmem:[%s4876_s6] sm:$0x3]  ;;  %s3761_s6 = smov 64  }
  0xca   :  { %553 = vmatmul.mubr.f32.gmra.mrb[4].mxu0 %v383_v17  ;;  %v384_v34 = vmax.f32 %v377_v48, 0.0  ;;  %v345_v39 = vadd.f32 %v338_v42, %v321_v49  ;;  %3136 = vmatpush1.bf16.msra.mxu1 %v4190_v1  ;;  %v268_v54 = vmul.f32 %v4053_v58, %v259_v44  ;;  %v363_v19 = vmul.f32 %v4073_v13, %v354_v57 }
  0xcb   :  { %558 = vmatprep.mubr.f32.mxu0 %v3760_v7  ;;  %3116 = vmatpush1.bf16.msra.mxu0 %v4144_v41  ;;  %v298_v40 = vadd.f32 %v291_v11, %v274_v45  ;;  %v227_v32 = vadd.f32 %v220_v22, %v203_v55  ;;  %v292_v50 = vmul.f32 %v4062_v0, %v283_v31 }
  0xcc   :  { %v369_v53 = vadd.f32 %v362_v56, %v345_v39  ;;  %3118 = vmatprep.subr.bf16.mxu0 %v4182_v30  ;;  %3138 = vmatprep.subr.bf16.mxu1 %v4075_v14  ;;  %v316_v52 = vmul.f32 %v4066_v6, %v307_v25  ;;  %v340_v0 = vmul.f32 %v4069_v8, %v331_v3 }
  0xcd   :  { %v322_v26 = vadd.f32 %v315_v63, %v298_v40  ;;  %v251_v27 = vadd.f32 %v244_v24, %v227_v32  ;;  %v364_v61 = vmul.f32 %v4073_v13, %v355_v59 }
  0xce   :  { %559 = vmatmul.mubr.f32.gmra.mrb[6].mxu0 %v384_v34  ;;  %v378_v21 = vadd.f32 %v4094_v60, %v369_v53 }
  0xcf   :  { %564 = vmatprep.mubr.f32.mxu0 %v3760_v7  ;;  %v346_v47 = vadd.f32 %v339_v18, %v322_v26  ;;  %3120 = vmatpush1.bf16.msra.mxu0 %v4190_v1  ;;  %v275_v58 = vadd.f32 %v268_v54, %v251_v27 }
  0xd0   :  { %v385_v4 = vmax.f32 %v378_v21, 0.0  ;;  %3154 = vmatprep.subr.bf16.mxu0 %v4075_v14 }
  0xd1   :  { %v370_v46 = vadd.f32 %v363_v19, %v346_v47  ;;  %v299_v42 = vadd.f32 %v292_v50, %v275_v58 }
  0xd2   :  { %565 = vmatmul.mubr.f32.gmra.mrb[8].mxu0 %v385_v4 }
  0xd3   :  { %570 = vmatprep.mubr.f32.mxu0 %v3760_v7  ;;  %v379_v33 = vadd.f32 %v4094_v60, %v370_v46  ;;  %v323_v36 = vadd.f32 %v316_v52, %v299_v42 }
  0xd5   :  { %v386_v56 = vmax.f32 %v379_v33, 0.0  ;;  %v347_v23 = vadd.f32 %v340_v0, %v323_v36 }
  0xd7   :  { %571 = vmatmul.mubr.f32.gmra.mrb[10].mxu0 %v386_v56  ;;  %v371_v6 = vadd.f32 %v364_v61, %v347_v23 }
  0xd8   :  { %576 = vmatprep.mubr.f32.mxu0 %v3760_v7 }
  0xd9   :  { %v380_v35 = vadd.f32 %v4094_v60, %v371_v6  ;;  %v395_v60 = vlaneseq }
  0xdb   :  { %v387_v10 = vmax.f32 %v380_v35, 0.0  ;;  %v4226_v38 = vand.u32 127, %v395_v60  ;;  %v4228_v5 = vshrl.u32 %v395_v60, 7 }
  0xdd   :  { %577 = vmatmul.mubr.f32.gmra.mrb[12].mxu0 %v387_v10  ;;  %v397_v2 = vadd.s32 128, %v4226_v38  ;;  %v468_v17 = vsub.s32 0, %v4228_v5  ;;  %v402_v20 = vand.u32 63, %v4226_v38  ;;  %v472_v28 = vsub.s32 1, %v4228_v5 }
  0xde   :  { %693 = vmatprep.mubr.f32.mxu0 %v3760_v7  ;;  %vm424_vm2 = vcmp.lt.s32.totalorder %v4226_v38, 64 }
  0xdf   :  { %v409_v29 = vand.u32 63, %v397_v2  ;;  %v4239_v48 = vrot.slane %v464_v12, %v468_v17  ;;  %v4243_v49 = vrot.slane %v464_v12, %v472_v28  ;;  %vm4245_vm0 = vcmp.lt.s32.totalorder %v402_v20, 32 }
  0xe1   :  { %694 = vmatmul.mubr.f32.vlgmr.msra.gmra.mrb[14].mxu0 %v3760_v7  ;;  %vm4255_vm1 = vcmp.lt.s32.totalorder %v409_v29, 32 }
  0xe2   :  { %3156 = vmatpush1.bf16.msra.mxu0 %v4077_v15  ;;  %1125 = vmatprep.mubr.f32.mxu0 %v3760_v7 }
  0xe3   :  { %3158 = vmatprep.subr.bf16.mxu0 %v4097_v9 }
  0xe6   :  { %3160 = vmatpush1.bf16.msra.mxu0 %v4119_v51 }
  0xe7   :  { %3162 = vmatprep.subr.bf16.mxu0 %v4138_v43 }
  0xea   :  { %3164 = vmatpush1.bf16.msra.mxu0 %v4144_v41 }
  0xeb   :  { %3166 = vmatprep.subr.bf16.mxu0 %v4182_v30 }
  0xee   :  { %3168 = vmatpush1.bf16.msra.mxu0 %v4190_v1 }
 0x195   :  { %v542_v8 = vpop.f32.mrb[0].mxu0 }
 0x196   :  { %v544_v13 = vpop.f32.mrb[1].mxu0  ;;  %v4310_v58 = vadd.f32 %v542_v8, %v4239_v48 }
 0x197   :  { %v4316_v59 = vadd.f32 %v544_v13, %v4243_v49 }
 0x199   :  { %v548_v37 = vpop.f32.mrb[2].mxu0 }
 0x19a   :  { %v550_v62 = vpop.f32.mrb[3].mxu0  ;;  %v4282_v54 = vadd.f32 %v548_v37, %v4239_v48 }
 0x19b   :  { %v4288_v26 = vadd.f32 %v550_v62, %v4243_v49 }
 0x19d   :  { %v554_v11 = vpop.f32.mrb[4].mxu0 }
 0x19e   :  { %v556_v16 = vpop.f32.mrb[5].mxu0  ;;  %v4250_v45 = vadd.f32 %v554_v11, %v4239_v48 }
 0x19f   :  { %v4260_v34 = vadd.f32 %v556_v16, %v4243_v49 }
 0x1a5   :  { %v566_v22 = vpop.f32.mrb[8].mxu0 }
 0x1a6   :  { %v4253_v63 = vadd.f32 %v566_v22, %v4239_v48  ;;  %v568_v55 = vpop.f32.mrb[9].mxu0 }
 0x1a7   :  { %v4263_v39 = vadd.f32 %v568_v55, %v4243_v49 }
 0x1a8   :  { %v902_v18 = vsel %vm4245_vm0, %v4250_v45, %v4253_v63  ;;  %v1180_v57 = vsel %vm4245_vm0, %v4253_v63, %v4250_v45 }
 0x1a9   :  { %v903_v31 = vsel %vm4255_vm1, %v4260_v34, %v4263_v39  ;;  %v1181_v40 = vsel %vm4255_vm1, %v4263_v39, %v4260_v34 }
 0x1aa   :  { %v572_v32 = vpop.f32.mrb[10].mxu0 }
 0x1ab   :  { %v4285_v53 = vadd.f32 %v572_v32, %v4239_v48  ;;  %v574_v25 = vpop.f32.mrb[11].mxu0  ;;  %v726_v32 = vld [vmem:[#allocation11 + $0x30] sm:$0xff] }
 0x1ac   :  { %v4291_v19 = vadd.f32 %v574_v25, %v4243_v49 }
 0x1ad   :  { %v756_v27 = vsel %vm4245_vm0, %v4282_v54, %v4285_v53  ;;  %v1318_v50 = vsel %vm4245_vm0, %v4285_v53, %v4282_v54 }
 0x1ae   :  { %v757_v21 = vsel %vm4255_vm1, %v4288_v26, %v4291_v19  ;;  %v1319_v3 = vsel %vm4255_vm1, %v4291_v19, %v4288_v26 }
 0x1b0   :  { %v578_v47 = vpop.f32.mrb[12].mxu0 }
 0x1b1   :  { %v4313_v52 = vadd.f32 %v578_v47, %v4239_v48  ;;  %v580_v4 = vpop.f32.mrb[13].mxu0 }
 0x1b2   :  { %v4319_v46 = vadd.f32 %v580_v4, %v4243_v49 }
 0x1b3   :  { %v607_v42 = vsel %vm4245_vm0, %v4310_v58, %v4313_v52  ;;  %v1456_v0 = vsel %vm4245_vm0, %v4313_v52, %v4310_v58 }
 0x1b4   :  { %v695_v33 = vpop.f32.mrb[14].mxu0  ;;  %v608_v36 = vsel %vm4255_vm1, %v4316_v59, %v4319_v46  ;;  %v1457_v61 = vsel %vm4255_vm1, %v4319_v46, %v4316_v59 }
 0x1b5   :  { %v700_v56 = vadd.f32 %v695_v33, %v607_v42  ;;  %v697_v23 = vpop.f32.mrb[15].mxu0 }
 0x1b6   :  { %v701_v6 = vadd.f32 %v697_v23, %v608_v36 }
 0x1b7   :  { %v702_v10 = vmul.f32 0.5, %v700_v56 }
 0x1b8   :  { %v703_v35 = vmul.f32 0.5, %v701_v6  ;;  %v873_v6 = vld [vmem:[#allocation11 + $0x28] sm:$0xff] }
 0x1ba   :  { %3383 = vtanh.f32 %v703_v35 }
 0x1bb   :  { %3385 = vtanh.f32 %v702_v10 }
 0x1c4   :  { %v3384_v8 = vpop.eup %3383 }
 0x1c5   :  { %v711_v13 = vmul.f32 %v3384_v8, %v3384_v8  ;;  %v3386_v37 = vpop.eup %3385  ;;  %v707_v62 = vadd.f32 1.0, %v3384_v8  ;;  %v710_v2 = vmul.f32 2.0, %v3384_v8 }
 0x1c6   :  { %v706_v11 = vadd.f32 1.0, %v3386_v37 }
 0x1c7   :  { %v712_v60 = vadd.f32 1.0, %v711_v13  ;;  %v709_v20 = vmul.f32 0.5, %v707_v62 }
 0x1c8   :  { %v708_v29 = vmul.f32 0.5, %v706_v11 }
 0x1c9   :  { %3387 = vrcp.f32 %v712_v60 }
 0x1ca   :  { %v716_v25 = vmul.f32 0.0, %v708_v29 }
 0x1d3   :  { %v3388_v16 = vpop.eup %3387 }
 0x1d4   :  { %v714_v12 = vmul.f32 %v3388_v16, %v710_v2 }
 0x1d6   :  { %v715_v22 = vsel %vm424_vm2, %v714_v12, %v709_v20 }
 0x1d7   :  { %v717_v55 = vmul.f32 %v715_v22, %v708_v29 }
 0x1d9   :  { %719 = vrot.lane.b32.xlu0 %v717_v55, %s3761_s6 }
 0x1dd   :  { %728 = vrot.lane.b32.xlu0 %v726_v32, %s3761_s6 }
 0x1e1   :  { %875 = vrot.lane.b32.xlu0 %v873_v6, %s3761_s6 }
 0x24b   :  { %v720_v47 = vpop.permute.xlu0 %719 }
 0x24c   :  { %v722_v4 = vadd.f32 %v720_v47, %v716_v25 }
 0x24e   :  { %3389 = vtanh.f32 %v722_v4 }
 0x24f   :  { %v729_v36 = vpop.permute.xlu0 %728 }
 0x250   :  { %v745_v16 = vmul.f32 %v729_v36, %v722_v4 }
 0x258   :  { %v3390_v42 = vpop.eup %3389 }
 0x259   :  { %v4342_v33 = vmul.f32 %v3390_v42, %v715_v22 }
 0x25b   :  { %v731_v56 = vmul.f32 %v729_v36, %v4342_v33  ;;  %v876_v36 = vpop.permute.xlu0 %875 }
 0x25d   :  { %739 = vrot.lane.b32.xlu1 %v731_v56, %s3761_s6 }
 0x2cf   :  { %v740_v23 = vpop.permute.xlu1 %739 }
 0x2d0   :  { %744 = vst.msk [vmem:[#allocation4 + $0x30] sm:$0xff] %vm743_vm3, %v740_v23  ;;  %2994 = vmatmul.mubr.msk.f32.vlgmr.msra.gmra.mrb[0].mxu1 %vm625_vm4, %v740_v23 }
 0x2d1   :  { %3140 = vmatpush1.bf16.msra.mxu1 %v4077_v15  ;;  %986 = vmatprep.mubr.f32.mxu1 %v3760_v7 }
 0x2d2   :  { %3142 = vmatprep.subr.bf16.mxu1 %v4097_v9 }
 0x2d5   :  { %3144 = vmatpush1.bf16.msra.mxu1 %v4119_v51 }
 0x2d6   :  { %3146 = vmatprep.subr.bf16.mxu1 %v4138_v43 }
 0x2d9   :  { %3148 = vmatpush1.bf16.msra.mxu1 %v4144_v41 }
 0x2da   :  { %3150 = vmatprep.subr.bf16.mxu1 %v4182_v30 }
 0x2dd   :  { %3152 = vmatpush1.bf16.msra.mxu1 %v4190_v1 }
 0x2de   :  { %3170 = vmatprep.subr.bf16.mxu1 %v4075_v14 }
 0x3a3   :  { %v842_v35 = vpop.f32.mrb[0].mxu1 }
 0x3a4   :  { %v847_v10 = vadd.f32 %v842_v35, %v756_v27  ;;  %v844_v8 = vpop.f32.mrb[1].mxu1 }
 0x3a5   :  { %v848_v13 = vadd.f32 %v844_v8, %v757_v21 }
 0x3a6   :  { %v849_v60 = vmul.f32 0.5, %v847_v10  ;;  %v1019_v10 = vld [vmem:[#allocation11 + $0x20] sm:$0xff] }
 0x3a7   :  { %v850_v37 = vmul.f32 0.5, %v848_v13 }
 0x3a8   :  { %3391 = vtanh.f32 %v849_v60 }
 0x3a9   :  { %3393 = vtanh.f32 %v850_v37 }
 0x3b2   :  { %v3392_v14 = vpop.eup %3391 }
 0x3b3   :  { %v3394_v62 = vpop.eup %3393  ;;  %v853_v11 = vadd.f32 1.0, %v3392_v14 }
 0x3b4   :  { %v858_v2 = vmul.f32 %v3394_v62, %v3394_v62  ;;  %v854_v27 = vadd.f32 1.0, %v3394_v62  ;;  %v857_v22 = vmul.f32 2.0, %v3394_v62 }
 0x3b5   :  { %v855_v20 = vmul.f32 0.5, %v853_v11 }
 0x3b6   :  { %v859_v12 = vadd.f32 1.0, %v858_v2  ;;  %v856_v32 = vmul.f32 0.5, %v854_v27 }
 0x3b7   :  { %v863_v29 = vmul.f32 %v855_v20, %v745_v16 }
 0x3b8   :  { %3395 = vrcp.f32 %v859_v12 }
 0x3c2   :  { %v3396_v55 = vpop.eup %3395 }
 0x3c3   :  { %v861_v25 = vmul.f32 %v3396_v55, %v857_v22 }
 0x3c5   :  { %v862_v21 = vsel %vm424_vm2, %v861_v25, %v856_v32 }
 0x3c6   :  { %v864_v47 = vmul.f32 %v862_v21, %v855_v20 }
 0x3c8   :  { %866 = vrot.lane.b32.xlu1 %v864_v47, %s3761_s6 }
 0x43a   :  { %v867_v42 = vpop.permute.xlu1 %866 }
 0x43b   :  { %v869_v56 = vadd.f32 %v867_v42, %v863_v29 }
 0x43d   :  { %3397 = vtanh.f32 %v869_v56  ;;  %v891_v16 = vmul.f32 %v876_v36, %v869_v56 }
 0x447   :  { %v3398_v23 = vpop.eup %3397 }
 0x448   :  { %v4371_v4 = vmul.f32 %v3398_v23, %v862_v21 }
 0x44a   :  { %v878_v6 = vmul.f32 %v876_v36, %v4371_v4 }
 0x44c   :  { %886 = vrot.lane.b32.xlu1 %v878_v6, %s3761_s6 }
 0x450   :  { %1021 = vrot.lane.b32.xlu1 %v1019_v10, %s3761_s6 }
 0x4be   :  { %v887_v35 = vpop.permute.xlu1 %886 }
 0x4bf   :  { %890 = vst.msk [vmem:[#allocation4 + $0x28] sm:$0xff] %vm743_vm3, %v887_v35  ;;  %2995 = vmatmul.mubr.msk.f32.vlgmr.msra.gmra.mrb[2].mxu1 %vm625_vm4, %v887_v35  ;;  %v1158_v35 = vld [vmem:[#allocation11 + $0x18] sm:$0xff] }
 0x4c0   :  { %3172 = vmatpush1.bf16.msra.mxu1 %v4077_v15  ;;  %1264 = vmatprep.mubr.f32.mxu1 %v3760_v7 }
 0x4c1   :  { %3174 = vmatprep.subr.bf16.mxu1 %v4097_v9 }
 0x4c2   :  { %v1022_v23 = vpop.permute.xlu1 %1021 }
 0x4c4   :  { %3176 = vmatpush1.bf16.msra.mxu1 %v4119_v51 }
 0x4c5   :  { %3178 = vmatprep.subr.bf16.mxu1 %v4138_v43 }
 0x4c8   :  { %3180 = vmatpush1.bf16.msra.mxu1 %v4144_v41 }
 0x4c9   :  { %3182 = vmatprep.subr.bf16.mxu1 %v4182_v30 }
 0x4cc   :  { %3184 = vmatpush1.bf16.msra.mxu1 %v4190_v1 }
 0x592   :  { %v988_v8 = vpop.f32.mrb[2].mxu1 }
 0x593   :  { %v993_v15 = vadd.f32 %v988_v8, %v902_v18  ;;  %v990_v9 = vpop.f32.mrb[3].mxu1 }
 0x594   :  { %v994_v13 = vadd.f32 %v990_v9, %v903_v31 }
 0x595   :  { %v995_v60 = vmul.f32 0.5, %v993_v15 }
 0x596   :  { %v996_v37 = vmul.f32 0.5, %v994_v13 }
 0x597   :  { %3399 = vtanh.f32 %v995_v60 }
 0x598   :  { %3401 = vtanh.f32 %v996_v37 }
 0x5a1   :  { %v3400_v14 = vpop.eup %3399 }
 0x5a2   :  { %v3402_v62 = vpop.eup %3401  ;;  %v999_v11 = vadd.f32 1.0, %v3400_v14 }
 0x5a3   :  { %v1004_v2 = vmul.f32 %v3402_v62, %v3402_v62  ;;  %v1000_v18 = vadd.f32 1.0, %v3402_v62  ;;  %v1003_v27 = vmul.f32 2.0, %v3402_v62 }
 0x5a4   :  { %v1001_v20 = vmul.f32 0.5, %v999_v11 }
 0x5a5   :  { %v1005_v12 = vadd.f32 1.0, %v1004_v2  ;;  %v1002_v55 = vmul.f32 0.5, %v1000_v18 }
 0x5a6   :  { %v1009_v29 = vmul.f32 %v1001_v20, %v891_v16 }
 0x5a7   :  { %3403 = vrcp.f32 %v1005_v12 }
 0x5b1   :  { %v3404_v22 = vpop.eup %3403 }
 0x5b2   :  { %v1007_v32 = vmul.f32 %v3404_v22, %v1003_v27 }
 0x5b4   :  { %v1008_v31 = vsel %vm424_vm2, %v1007_v32, %v1002_v55 }
 0x5b5   :  { %v1010_v25 = vmul.f32 %v1008_v31, %v1001_v20 }
 0x5b7   :  { %1012 = vrot.lane.b32.xlu0 %v1010_v25, %s3761_s6 }
 0x629   :  { %v1013_v21 = vpop.permute.xlu0 %1012 }
 0x62a   :  { %v1015_v47 = vadd.f32 %v1013_v21, %v1009_v29 }
 0x62c   :  { %3405 = vtanh.f32 %v1015_v47  ;;  %v1037_v2 = vmul.f32 %v1022_v23, %v1015_v47 }
 0x636   :  { %v3406_v42 = vpop.eup %3405 }
 0x637   :  { %v4399_v56 = vmul.f32 %v3406_v42, %v1008_v31 }
 0x639   :  { %v1024_v36 = vmul.f32 %v1022_v23, %v4399_v56 }
 0x63b   :  { %1032 = vrot.lane.b32.xlu0 %v1024_v36, %s3761_s6  ;;  %v1297_v36 = vld [vmem:[#allocation11 + $0x10] sm:$0xff] }
 0x63f   :  { %1160 = vrot.lane.b32.xlu0 %v1158_v35, %s3761_s6 }
 0x6ad   :  { %v1033_v6 = vpop.permute.xlu0 %1032 }
 0x6ae   :  { %1036 = vst.msk [vmem:[#allocation4 + $0x20] sm:$0xff] %vm743_vm3, %v1033_v6  ;;  %2996 = vmatmul.mubr.msk.f32.vlgmr.msra.gmra.mrb[6].mxu0 %vm625_vm4, %v1033_v6 }
 0x6af   :  { %1402 = vmatprep.mubr.f32.mxu0 %v3760_v7 }
 0x6b1   :  { %v1161_v47 = vpop.permute.xlu0 %1160 }
 0x781   :  { %v1127_v10 = vpop.f32.mrb[6].mxu0 }
 0x782   :  { %v3357_v8 = vadd.f32 %v1127_v10, %v4239_v48  ;;  %v1129_v15 = vpop.f32.mrb[7].mxu0 }
 0x783   :  { %v3358_v9 = vadd.f32 %v1129_v15, %v4243_v49 }
 0x784   :  { %v1134_v13 = vmul.f32 0.5, %v3357_v8 }
 0x785   :  { %v1135_v60 = vmul.f32 0.5, %v3358_v9 }
 0x786   :  { %3407 = vtanh.f32 %v1134_v13 }
 0x787   :  { %3409 = vtanh.f32 %v1135_v60 }
 0x790   :  { %v3408_v37 = vpop.eup %3407 }
 0x791   :  { %v3410_v14 = vpop.eup %3409  ;;  %v1138_v62 = vadd.f32 1.0, %v3408_v37 }
 0x792   :  { %v1143_v11 = vmul.f32 %v3410_v14, %v3410_v14  ;;  %v1139_v29 = vadd.f32 1.0, %v3410_v14  ;;  %v1142_v18 = vmul.f32 2.0, %v3410_v14 }
 0x793   :  { %v1140_v16 = vmul.f32 0.5, %v1138_v62 }
 0x794   :  { %v1144_v20 = vadd.f32 1.0, %v1143_v11  ;;  %v1141_v48 = vmul.f32 0.5, %v1139_v29  ;;  %v1323_v29 = vld [vmem:[#allocation16 + $0x18] sm:$0xff] }
 0x795   :  { %v1148_v12 = vmul.f32 %v1140_v16, %v1037_v2 }
 0x796   :  { %3411 = vrcp.f32 %v1144_v20 }
 0x7a0   :  { %v3412_v27 = vpop.eup %3411 }
 0x7a1   :  { %v1146_v22 = vmul.f32 %v3412_v27, %v1142_v18  ;;  %v1320_v18 = vld [vmem:[#allocation16] sm:$0xff] }
 0x7a3   :  { %v1147_v49 = vsel %vm424_vm2, %v1146_v22, %v1141_v48  ;;  %v1322_v48 = vld [vmem:[#allocation16 + $0x10] sm:$0xff]  ;;  %v1325_v22 = vld [vmem:[#allocation16 + $0x28] sm:$0xff] }
 0x7a4   :  { %v1149_v55 = vmul.f32 %v1147_v49, %v1140_v16 }
 0x7a6   :  { %1151 = vrot.lane.b32.xlu1 %v1149_v55, %s3761_s6  ;;  %v3187_v55 = vpack.c.bf16 %v1322_v48, %v1320_v18 }
 0x818   :  { %v1152_v32 = vpop.permute.xlu1 %1151 }
 0x819   :  { %v1154_v31 = vadd.f32 %v1152_v32, %v1148_v12 }
 0x81b   :  { %3413 = vtanh.f32 %v1154_v31  ;;  %v1175_v62 = vmul.f32 %v1161_v47, %v1154_v31 }
 0x825   :  { %v3414_v25 = vpop.eup %3413 }
 0x826   :  { %v4412_v21 = vmul.f32 %v3414_v25, %v1147_v49  ;;  %v1327_v49 = vld [vmem:[#allocation16 + $0x38] sm:$0xff] }
 0x827   :  { %v3189_v32 = vpack.c.bf16 %v1327_v49, %v1325_v22 }
 0x828   :  { %v1163_v42 = vmul.f32 %v1161_v47, %v4412_v21 }
 0x82a   :  { %1171 = vrot.lane.b32.xlu1 %v1163_v42, %s3761_s6 }
 0x82e   :  { %1299 = vrot.lane.b32.xlu1 %v1297_v36, %s3761_s6 }
 0x89c   :  { %v4416_v23 = vpop.permute.xlu1 %1171 }
 0x89d   :  { %2997 = vmatmul.mubr.msk.f32.vlgmr.msra.gmra.mrb[4].mxu1 %vm625_vm4, %v4416_v23 }
 0x89e   :  { %1540 = vmatprep.mubr.f32.mxu1 %v3760_v7 }
 0x8a0   :  { %v1300_v36 = vpop.permute.xlu1 %1299 }
 0x970   :  { %v1266_v6 = vpop.f32.mrb[4].mxu1 }
 0x971   :  { %v1271_v35 = vadd.f32 %v1266_v6, %v1180_v57  ;;  %v1268_v10 = vpop.f32.mrb[5].mxu1 }
 0x972   :  { %v1272_v8 = vadd.f32 %v1268_v10, %v1181_v40  ;;  %v1321_v40 = vld [vmem:[#allocation16 + $0x8] sm:$0xff] }
 0x973   :  { %v1273_v15 = vmul.f32 0.5, %v1271_v35  ;;  %v3185_v27 = vpack.c.bf16 %v1323_v29, %v1321_v40  ;;  %v1468_v40 = vld [vmem:[#allocation16 + $0x50] sm:$0xff] }
 0x974   :  { %v1274_v9 = vmul.f32 0.5, %v1272_v8 }
 0x975   :  { %3415 = vtanh.f32 %v1273_v15  ;;  %3186 = vmatprep.subr.bf16.mxu0 %v3185_v27  ;;  %3202 = vmatprep.subr.bf16.mxu1 %v3185_v27 }
 0x976   :  { %3417 = vtanh.f32 %v1274_v9  ;;  %3188 = vmatpush1.bf16.msra.mxu0 %v3187_v55  ;;  %3204 = vmatpush1.bf16.msra.mxu1 %v3187_v55 }
 0x977   :  { %3190 = vmatprep.subr.bf16.mxu0 %v3189_v32  ;;  %3206 = vmatprep.subr.bf16.mxu1 %v3189_v32 }
 0x97a   :  { %3192 = vmatpush1.bf16.msra.mxu0 %v4119_v51 }
 0x97b   :  { %3194 = vmatprep.subr.bf16.mxu0 %v4138_v43  ;;  %v1435_v43 = vld [vmem:[#allocation11 + $0x8] sm:$0xff] }
 0x97e   :  { %3196 = vmatpush1.bf16.msra.mxu0 %v4144_v41 }
 0x97f   :  { %v3416_v13 = vpop.eup %3415  ;;  %3198 = vmatprep.subr.bf16.mxu0 %v4182_v30 }
 0x980   :  { %v3418_v60 = vpop.eup %3417  ;;  %v1277_v37 = vadd.f32 1.0, %v3416_v13 }
 0x981   :  { %v1282_v14 = vmul.f32 %v3418_v60, %v3418_v60  ;;  %v1278_v63 = vadd.f32 1.0, %v3418_v60  ;;  %v1281_v57 = vmul.f32 2.0, %v3418_v60 }
 0x982   :  { %v1279_v11 = vmul.f32 0.5, %v1277_v37  ;;  %3200 = vmatpush1.bf16.msra.mxu0 %v4190_v1 }
 0x983   :  { %v1283_v2 = vadd.f32 1.0, %v1282_v14  ;;  %v1280_v20 = vmul.f32 0.5, %v1278_v63 }
 0x984   :  { %v1287_v45 = vmul.f32 %v1279_v11, %v1175_v62 }
 0x985   :  { %3419 = vrcp.f32 %v1283_v2 }
 0x98f   :  { %v3420_v16 = vpop.eup %3419 }
 0x990   :  { %v1285_v12 = vmul.f32 %v3420_v16, %v1281_v57  ;;  %v1464_v16 = vld [vmem:[#allocation16 + $0x30] sm:$0xff] }
 0x992   :  { %v1286_v34 = vsel %vm424_vm2, %v1285_v12, %v1280_v20  ;;  %v1467_v20 = vld [vmem:[#allocation16 + $0x48] sm:$0xff] }
 0x993   :  { %v1288_v39 = vmul.f32 %v1286_v34, %v1279_v11 }
 0x995   :  { %1290 = vrot.lane.b32.xlu0 %v1288_v39, %s3761_s6  ;;  %v1466_v39 = vld [vmem:[#allocation16 + $0x40] sm:$0xff] }
 0x996   :  { %v3211_v18 = vpack.c.bf16 %v1468_v40, %v1466_v39  ;;  %v1608_v40 = vld [vmem:[#allocation17 + $0x68] sm:$0xff] }
 0xa07   :  { %v1291_v31 = vpop.permute.xlu0 %1290 }
 0xa08   :  { %v1293_v25 = vadd.f32 %v1291_v31, %v1287_v45 }
 0xa0a   :  { %3421 = vtanh.f32 %v1293_v25  ;;  %v1313_v62 = vmul.f32 %v1300_v36, %v1293_v25  ;;  %v1572_v25 = vld [vmem:[#allocation11] sm:$0xff] }
 0xa14   :  { %v3422_v47 = vpop.eup %3421 }
 0xa15   :  { %v4440_v42 = vmul.f32 %v3422_v47, %v1286_v34  ;;  %v1469_v34 = vld [vmem:[#allocation16 + $0x58] sm:$0xff] }
 0xa16   :  { %v3209_v29 = vpack.c.bf16 %v1469_v34, %v1467_v20  ;;  %v1603_v20 = vld [vmem:[#allocation17 + $0x40] sm:$0xff] }
 0xa17   :  { %v1302_v6 = vmul.f32 %v1300_v36, %v4440_v42 }
 0xa19   :  { %1309 = vrot.lane.b32.xlu0 %v1302_v6, %s3761_s6 }
 0xa1d   :  { %1437 = vrot.lane.b32.xlu0 %v1435_v43, %s3761_s6 }
 0xa8b   :  { %v4444_v51 = vpop.permute.xlu0 %1309 }
 0xa8c   :  { %2998 = vmatmul.mubr.msk.f32.vlgmr.msra.gmra.mrb[16].mxu0 %vm625_vm4, %v4444_v51 }
 0xa8d   :  { %1708 = vmatprep.mubr.f32.mxu0 %v3760_v7 }
 0xa8f   :  { %v1438_v55 = vpop.permute.xlu0 %1437 }
 0xb5f   :  { %v1404_v41 = vpop.f32.mrb[16].mxu0 }
 0xb60   :  { %v1409_v35 = vadd.f32 %v1404_v41, %v1318_v50  ;;  %v1406_v10 = vpop.f32.mrb[17].mxu0 }
 0xb61   :  { %v1410_v8 = vadd.f32 %v1406_v10, %v1319_v3  ;;  %v1462_v3 = vld [vmem:[#allocation16 + $0x20] sm:$0xff] }
 0xb62   :  { %v1411_v15 = vmul.f32 0.5, %v1409_v35  ;;  %v3207_v12 = vpack.c.bf16 %v1464_v16, %v1462_v3  ;;  %v1606_v3 = vld [vmem:[#allocation17 + $0x58] sm:$0xff] }
 0xb63   :  { %v1412_v9 = vmul.f32 0.5, %v1410_v8 }
 0xb64   :  { %3423 = vtanh.f32 %v1411_v15  ;;  %3208 = vmatpush1.bf16.msra.mxu1 %v3207_v12  ;;  %v1605_v12 = vld [vmem:[#allocation17 + $0x50] sm:$0xff] }
 0xb65   :  { %3425 = vtanh.f32 %v1412_v9  ;;  %3210 = vmatprep.subr.bf16.mxu1 %v3209_v29  ;;  %v3227_v39 = vpack.c.bf16 %v1605_v12, %v1603_v20  ;;  %v1610_v29 = vld [vmem:[#allocation17 + $0x78] sm:$0xff] }
 0xb68   :  { %3212 = vmatpush1.bf16.msra.mxu1 %v3211_v18  ;;  %v3229_v18 = vpack.c.bf16 %v1610_v29, %v1608_v40  ;;  %v1611_v40 = vld [vmem:[%s4879_s9] sm:$0x3] }
 0xb69   :  { %3214 = vmatprep.subr.bf16.mxu1 %v4182_v30  ;;  %v4576_v29 = vrot.slane %v1611_v40, %v468_v17 }
 0xb6c   :  { %3216 = vmatpush1.bf16.msra.mxu1 %v4190_v1 }
 0xb6e   :  { %v3424_v13 = vpop.eup %3423 }
 0xb6f   :  { %v3426_v60 = vpop.eup %3425  ;;  %v1415_v37 = vadd.f32 1.0, %v3424_v13 }
 0xb70   :  { %v1420_v14 = vmul.f32 %v3426_v60, %v3426_v60  ;;  %v1416_v53 = vadd.f32 1.0, %v3426_v60  ;;  %v1419_v50 = vmul.f32 2.0, %v3426_v60 }
 0xb71   :  { %v1417_v11 = vmul.f32 0.5, %v1415_v37 }
 0xb72   :  { %v1421_v2 = vadd.f32 1.0, %v1420_v14  ;;  %v1418_v63 = vmul.f32 0.5, %v1416_v53  ;;  %v1600_v53 = vld [vmem:[#allocation17 + $0x28] sm:$0xff] }
 0xb73   :  { %v1425_v54 = vmul.f32 %v1417_v11, %v1313_v62  ;;  %v1598_v62 = vld [vmem:[#allocation17 + $0x18] sm:$0xff] }
 0xb74   :  { %3427 = vrcp.f32 %v1421_v2 }
 0xb7e   :  { %v3428_v45 = vpop.eup %3427 }
 0xb7f   :  { %v1423_v57 = vmul.f32 %v3428_v45, %v1419_v50  ;;  %v1602_v50 = vld [vmem:[#allocation17 + $0x38] sm:$0xff] }
 0xb81   :  { %v1424_v26 = vsel %vm424_vm2, %v1423_v57, %v1418_v63  ;;  %v3221_v63 = vpack.c.bf16 %v1602_v50, %v1600_v53  ;;  %v1599_v57 = vld [vmem:[#allocation17 + $0x20] sm:$0xff] }
 0xb82   :  { %v1426_v19 = vmul.f32 %v1424_v26, %v1417_v11  ;;  %v1595_v11 = vld [vmem:[#allocation17] sm:$0xff] }
 0xb84   :  { %1428 = vrot.lane.b32.xlu1 %v1426_v19, %s3761_s6  ;;  %v1604_v19 = vld [vmem:[#allocation17 + $0x48] sm:$0xff] }
 0xb85   :  { %v3225_v16 = vpack.c.bf16 %v1606_v3, %v1604_v19  ;;  %v1883_v19 = vld [vmem:[#allocation11 + $0x30] sm:$0xff] }
 0xbf6   :  { %v1429_v27 = vpop.permute.xlu1 %1428 }
 0xbf7   :  { %v1431_v48 = vadd.f32 %v1429_v27, %v1425_v54  ;;  %v1597_v54 = vld [vmem:[#allocation17 + $0x10] sm:$0xff]  ;;  %v1607_v27 = vld [vmem:[#allocation17 + $0x60] sm:$0xff] }
 0xbf8   :  { %v3219_v45 = vpack.c.bf16 %v1597_v54, %v1595_v11 }
 0xbf9   :  { %3429 = vtanh.f32 %v1431_v48  ;;  %v1451_v15 = vmul.f32 %v1438_v55, %v1431_v48  ;;  %v1609_v48 = vld [vmem:[#allocation17 + $0x70] sm:$0xff] }
 0xc03   :  { %v3430_v22 = vpop.eup %3429 }
 0xc04   :  { %v1433_v49 = vmul.f32 %v3430_v22, %v1424_v26  ;;  %v1601_v26 = vld [vmem:[#allocation17 + $0x30] sm:$0xff] }
 0xc06   :  { %v1440_v32 = vmul.f32 %v1438_v55, %v1433_v49 }
 0xc08   :  { %1447 = vrot.lane.b32.xlu1 %v1440_v32, %s3761_s6 }
 0xc0c   :  { %1574 = vrot.lane.b32.xlu1 %v1572_v25, %s3761_s6 }
 0xc7a   :  { %v4466_v31 = vpop.permute.xlu1 %1447 }
 0xc7b   :  { %2999 = vmatmul.mubr.msk.f32.vlgmr.msra.gmra.mrb[6].mxu1 %vm625_vm4, %v4466_v31 }
 0xc7c   :  { %1851 = vmatprep.mubr.f32.mxu1 %v3760_v7 }
 0xc7e   :  { %v1575_v25 = vpop.permute.xlu1 %1574 }
 0xd4e   :  { %v1542_v30 = vpop.f32.mrb[6].mxu1 }
 0xd4f   :  { %v1547_v1 = vadd.f32 %v1542_v30, %v1456_v0  ;;  %v1544_v47 = vpop.f32.mrb[7].mxu1 }
 0xd50   :  { %v1548_v36 = vadd.f32 %v1544_v47, %v1457_v61  ;;  %v1596_v61 = vld [vmem:[#allocation17 + $0x8] sm:$0xff] }
 0xd51   :  { %v1549_v6 = vmul.f32 0.5, %v1547_v1  ;;  %v3217_v2 = vpack.c.bf16 %v1598_v62, %v1596_v61  ;;  %v1785_v61 = vld [vmem:[#allocation19 + $0x70] sm:$0xff] }
 0xd52   :  { %v1550_v43 = vmul.f32 0.5, %v1548_v36  ;;  %v1772_v36 = vld [vmem:[#allocation19 + $0x8] sm:$0xff] }
 0xd53   :  { %3431 = vtanh.f32 %v1549_v6  ;;  %3218 = vmatprep.subr.bf16.mxu0 %v3217_v2  ;;  %v1774_v6 = vld [vmem:[#allocation19 + $0x18] sm:$0xff] }
 0xd54   :  { %3433 = vtanh.f32 %v1550_v43  ;;  %3220 = vmatpush1.bf16.msra.mxu0 %v3219_v45  ;;  %v4501_v43 = vpack.c.bf16 %v1774_v6, %v1772_v36 }
 0xd55   :  { %3222 = vmatprep.subr.bf16.mxu0 %v3221_v63 }
 0xd56   :  { %3234 = vmatprep.subr.bf16.mxu1 %v4501_v43 }
 0xd5d   :  { %v3432_v41 = vpop.eup %3431 }
 0xd5e   :  { %v3434_v35 = vpop.eup %3433  ;;  %v1553_v10 = vadd.f32 1.0, %v3432_v41  ;;  %v1773_v41 = vld [vmem:[#allocation19 + $0x10] sm:$0xff] }
 0xd5f   :  { %v1558_v8 = vmul.f32 %v3434_v35, %v3434_v35  ;;  %v1554_v52 = vadd.f32 1.0, %v3434_v35  ;;  %v1557_v0 = vmul.f32 2.0, %v3434_v35 }
 0xd60   :  { %v1555_v9 = vmul.f32 0.5, %v1553_v10  ;;  %v1778_v10 = vld [vmem:[#allocation19 + $0x38] sm:$0xff] }
 0xd61   :  { %v1559_v13 = vadd.f32 1.0, %v1558_v8  ;;  %v1556_v37 = vmul.f32 0.5, %v1554_v52 }
 0xd62   :  { %v1563_v58 = vmul.f32 %v1555_v9, %v1451_v15  ;;  %v1775_v15 = vld [vmem:[#allocation19 + $0x20] sm:$0xff] }
 0xd63   :  { %3435 = vrcp.f32 %v1559_v13 }
 0xd6d   :  { %v3436_v60 = vpop.eup %3435 }
 0xd6e   :  { %v1561_v14 = vmul.f32 %v3436_v60, %v1557_v0  ;;  %v1779_v0 = vld [vmem:[#allocation19 + $0x40] sm:$0xff]  ;;  %v1781_v60 = vld [vmem:[#allocation19 + $0x50] sm:$0xff] }
 0xd70   :  { %v1562_v59 = vsel %vm424_vm2, %v1561_v14, %v1556_v37  ;;  %v4521_v37 = vpack.c.bf16 %v1781_v60, %v1779_v0  ;;  %v1786_v14 = vld [vmem:[#allocation19 + $0x78] sm:$0xff] }
 0xd71   :  { %v1564_v46 = vmul.f32 %v1562_v59, %v1555_v9  ;;  %v1777_v9 = vld [vmem:[#allocation19 + $0x30] sm:$0xff] }
 0xd72   :  { %v4514_v13 = vpack.c.bf16 %v1777_v9, %v1775_v15 }
 0xd73   :  { %1566 = vrot.lane.b32.xlu0 %v1564_v46, %s3761_s6  ;;  %v1783_v46 = vld [vmem:[#allocation19 + $0x60] sm:$0xff] }
 0xd74   :  { %v4527_v62 = vpack.c.bf16 %v1785_v61, %v1783_v46 }
 0xd77   :  { %733 = vrot.lane.b32.xlu0 %v4342_v33, %s3761_s6  ;;  %v3223_v33 = vpack.c.bf16 %v1601_v26, %v1599_v57 }
 0xd79   :  { %3224 = vmatpush1.bf16.msra.mxu0 %v3223_v33 }
 0xd7a   :  { %3226 = vmatprep.subr.bf16.mxu0 %v3225_v16 }
 0xd7b   :  { %880 = vrot.lane.b32.xlu0 %v4371_v4, %s3761_s6 }
 0xd7d   :  { %3228 = vmatpush1.bf16.msra.mxu0 %v3227_v39 }
 0xd7e   :  { %3230 = vmatprep.subr.bf16.mxu0 %v3229_v18  ;;  %v4580_v18 = vrot.slane %v1611_v40, %v472_v28 }
 0xd7f   :  { %1165 = vrot.lane.b32.xlu0 %v4412_v21, %s3761_s6 }
 0xd83   :  { %1442 = vrot.lane.b32.xlu0 %v1433_v49, %s3761_s6  ;;  %v3231_v49 = vpack.c.bf16 %v1609_v48, %v1607_v27 }
 0xd85   :  { %3232 = vmatpush1.bf16.msra.mxu0 %v3231_v49 }
 0xd86   :  { %3266 = vmatprep.subr.bf16.mxu0 %v4501_v43 }
 0xde5   :  { %v1567_v4 = vpop.permute.xlu0 %1566 }
 0xde6   :  { %v1569_v21 = vadd.f32 %v1567_v4, %v1563_v58  ;;  %v1782_v58 = vld [vmem:[#allocation19 + $0x58] sm:$0xff] }
 0xde8   :  { %3437 = vtanh.f32 %v1569_v21 }
 0xde9   :  { %v734_v34 = vpop.permute.xlu0 %733 }
 0xdea   :  { %737 = vst.msk [vmem:[#allocation4] sm:$0xff] %vm736_vm5, %v734_v34 }
 0xded   :  { %v881_v22 = vpop.permute.xlu0 %880 }
 0xdee   :  { %884 = vst.msk [vmem:[#allocation4 + $0x8] sm:$0xff] %vm736_vm5, %v881_v22 }
 0xdef   :  { %1450 = vst.msk [vmem:[#allocation4 + $0x8] sm:$0xff] %vm743_vm3, %v4466_v31  ;;  %v1771_v31 = vld [vmem:[#allocation19] sm:$0xff] }
 0xdf0   :  { %v4505_v35 = vpack.c.bf16 %v1773_v41, %v1771_v31 }
 0xdf1   :  { %v1166_v55 = vpop.permute.xlu0 %1165 }
 0xdf2   :  { %v3438_v32 = vpop.eup %3437  ;;  %1169 = vst.msk [vmem:[#allocation4 + $0x18] sm:$0xff] %vm736_vm5, %v1166_v55  ;;  %3236 = vmatpush1.bf16.msra.mxu1 %v4505_v35 }
 0xdf3   :  { %1174 = vst.msk [vmem:[#allocation4 + $0x18] sm:$0xff] %vm743_vm3, %v4416_v23  ;;  %v1571_v30 = vmul.f32 %v3438_v32, %v1562_v59  ;;  %v1776_v23 = vld [vmem:[#allocation19 + $0x28] sm:$0xff] }
 0xdf4   :  { %v4510_v8 = vpack.c.bf16 %v1778_v10, %v1776_v23 }
 0xdf5   :  { %v1577_v1 = vmul.f32 %v1575_v25, %v1571_v30  ;;  %v1443_v47 = vpop.permute.xlu0 %1442 }
 0xdf6   :  { %1445 = vst.msk [vmem:[#allocation4 + $0x28] sm:$0xff] %vm736_vm5, %v1443_v47  ;;  %3238 = vmatprep.subr.bf16.mxu1 %v4510_v8  ;;  %v1589_v45 = vld [vmem:[#allocation4 + $0x8] sm:$0xff] }
 0xdf7   :  { %1584 = vrot.lane.b32.xlu1 %v1577_v1, %s3761_s6  ;;  %3240 = vmatpush1.bf16.msra.mxu1 %v4514_v13 }
 0xdfa   :  { %v1591_v63 = vld [vmem:[#allocation4 + $0x18] sm:$0xff] }
 0xdfb   :  { %1026 = vrot.lane.b32.xlu1 %v4399_v56, %s3761_s6  ;;  %v1780_v56 = vld [vmem:[#allocation19 + $0x48] sm:$0xff] }
 0xdfc   :  { %v4518_v52 = vpack.c.bf16 %v1782_v58, %v1780_v56 }
 0xdfd   :  { %v1593_v26 = vld [vmem:[#allocation4 + $0x28] sm:$0xff] }
 0xdfe   :  { %3242 = vmatprep.subr.bf16.mxu1 %v4518_v52 }
 0xdff   :  { %1304 = vrot.lane.b32.xlu1 %v4440_v42, %s3761_s6  ;;  %3244 = vmatpush1.bf16.msra.mxu1 %v4521_v37  ;;  %v1784_v42 = vld [vmem:[#allocation19 + $0x68] sm:$0xff] }
 0xe00   :  { %v4525_v59 = vpack.c.bf16 %v1786_v14, %v1784_v42 }
 0xe02   :  { %3246 = vmatprep.subr.bf16.mxu1 %v4525_v59 }
 0xe03   :  { %1579 = vrot.lane.b32.xlu1 %v1571_v30, %s3761_s6  ;;  %3248 = vmatpush1.bf16.msra.mxu1 %v4527_v62 }
 0xe04   :  { %3250 = vmatprep.subr.bf16.mxu1 %v4501_v43 }
 0xe06   :  { %1852 = vmatmul.mubr.f32.vlgmr.msra.gmra.mrb[8].mxu1 %v3760_v7 }
 0xe07   :  { %3252 = vmatpush1.bf16.msra.mxu1 %v4505_v35  ;;  %1989 = vmatprep.mubr.f32.mxu1 %v3760_v7 }
 0xe08   :  { %3254 = vmatprep.subr.bf16.mxu1 %v4510_v8  ;;  %1885 = vrot.lane.b32.xlu1 %v1883_v19, %s3761_s6 }
 0xe0b   :  { %3256 = vmatpush1.bf16.msra.mxu1 %v4514_v13 }
 0xe0c   :  { %3258 = vmatprep.subr.bf16.mxu1 %v4518_v52 }
 0xe0f   :  { %3260 = vmatpush1.bf16.msra.mxu1 %v4521_v37 }
 0xe10   :  { %3262 = vmatprep.subr.bf16.mxu1 %v4525_v59 }
 0xe13   :  { %3264 = vmatpush1.bf16.msra.mxu1 %v4527_v62 }
 0xe14   :  { %3298 = vmatprep.subr.bf16.mxu1 %v4501_v43 }
 0xe69   :  { %v1585_v11 = vpop.permute.xlu1 %1584 }
 0xe6a   :  { %1587 = vst.msk [vmem:[#allocation4] sm:$0xff] %vm743_vm3, %v1585_v11 }
 0xe6d   :  { %v1027_v2 = vpop.permute.xlu1 %1026 }
 0xe6e   :  { %1030 = vst.msk [vmem:[#allocation4 + $0x10] sm:$0xff] %vm736_vm5, %v1027_v2 }
 0xe6f   :  { %1312 = vst.msk [vmem:[#allocation4 + $0x10] sm:$0xff] %vm743_vm3, %v4444_v51 }
 0xe71   :  { %v1305_v54 = vpop.permute.xlu1 %1304  ;;  %v1588_v53 = vld [vmem:[#allocation4] sm:$0xff] }
 0xe72   :  { %1307 = vst.msk [vmem:[#allocation4 + $0x20] sm:$0xff] %vm736_vm5, %v1305_v54  ;;  %3000 = vmatmul.mubr.msk.f32.vlgmr.msra.gmra.mrb[18].mxu0 %vm625_vm4, %v1588_v53 }
 0xe73   :  { %1714 = vmatprep.mubr.f32.mxu0 %v3760_v7  ;;  %3268 = vmatpush1.bf16.msra.mxu0 %v4505_v35 }
 0xe74   :  { %3270 = vmatprep.subr.bf16.mxu0 %v4510_v8 }
 0xe75   :  { %v1580_v50 = vpop.permute.xlu1 %1579 }
 0xe76   :  { %1582 = vst.msk [vmem:[#allocation4 + $0x30] sm:$0xff] %vm736_vm5, %v1580_v50  ;;  %3001 = vmatmul.mubr.msk.f32.gmra.mrb[20].mxu0 %vm625_vm4, %v1589_v45  ;;  %v1590_v51 = vld [vmem:[#allocation4 + $0x10] sm:$0xff] }
 0xe77   :  { %1720 = vmatprep.mubr.f32.mxu0 %v3760_v7  ;;  %3272 = vmatpush1.bf16.msra.mxu0 %v4514_v13 }
 0xe78   :  { %3274 = vmatprep.subr.bf16.mxu0 %v4518_v52 }
 0xe79   :  { %v1592_v57 = vld [vmem:[#allocation4 + $0x20] sm:$0xff] }
 0xe7a   :  { %3002 = vmatmul.mubr.msk.f32.gmra.mrb[22].mxu0 %vm625_vm4, %v1590_v51 }
 0xe7b   :  { %1726 = vmatprep.mubr.f32.mxu0 %v3760_v7  ;;  %3276 = vmatpush1.bf16.msra.mxu0 %v4521_v37 }
 0xe7c   :  { %3278 = vmatprep.subr.bf16.mxu0 %v4525_v59 }
 0xe7d   :  { %v1594_v33 = vld [vmem:[#allocation4 + $0x30] sm:$0xff] }
 0xe7e   :  { %3003 = vmatmul.mubr.msk.f32.gmra.mrb[24].mxu0 %vm625_vm4, %v1591_v63 }
 0xe7f   :  { %1732 = vmatprep.mubr.f32.mxu0 %v3760_v7  ;;  %3280 = vmatpush1.bf16.msra.mxu0 %v4527_v62 }
 0xe80   :  { %3282 = vmatprep.subr.bf16.mxu0 %v4501_v43 }
 0xe82   :  { %3004 = vmatmul.mubr.msk.f32.gmra.mrb[26].mxu0 %vm625_vm4, %v1592_v57 }
 0xe83   :  { %1738 = vmatprep.mubr.f32.mxu0 %v3760_v7 }
 0xe86   :  { %3005 = vmatmul.mubr.msk.f32.gmra.mrb[28].mxu0 %vm625_vm4, %v1593_v26 }
 0xe87   :  { %1744 = vmatprep.mubr.f32.mxu0 %v3760_v7 }
 0xe8a   :  { %3006 = vmatmul.mubr.msk.f32.gmra.mrb[30].mxu0 %vm625_vm4, %v1594_v33 }
 0xe8b   :  { %2128 = vmatprep.mubr.f32.mxu0 %v3760_v7 }
 0xed9   :  { %v1853_v4 = vpop.f32.mrb[8].mxu1 }
 0xeda   :  { %v1855_v21 = vpop.f32.mrb[9].mxu1 }
 0xf45   :  { %v1710_v3 = vpop.f32.mrb[18].mxu0 }
 0xf46   :  { %v1712_v16 = vpop.f32.mrb[19].mxu0  ;;  %v4639_v56 = vadd.f32 %v1710_v3, %v4576_v29 }
 0xf47   :  { %v4645_v60 = vadd.f32 %v1712_v16, %v4580_v18 }
 0xf49   :  { %v1716_v20 = vpop.f32.mrb[20].mxu0 }
 0xf4a   :  { %v1718_v12 = vpop.f32.mrb[21].mxu0  ;;  %v4611_v1 = vadd.f32 %v1716_v20, %v4576_v29 }
 0xf4b   :  { %v4617_v6 = vadd.f32 %v1718_v12, %v4580_v18 }
 0xf4d   :  { %v1722_v34 = vpop.f32.mrb[22].mxu0 }
 0xf4e   :  { %v1724_v39 = vpop.f32.mrb[23].mxu0  ;;  %v4583_v48 = vadd.f32 %v1722_v34, %v4576_v29 }
 0xf4f   :  { %v4589_v55 = vadd.f32 %v1724_v39, %v4580_v18 }
 0xf55   :  { %v1734_v27 = vpop.f32.mrb[26].mxu0 }
 0xf56   :  { %v4586_v22 = vadd.f32 %v1734_v27, %v4576_v29  ;;  %v1736_v49 = vpop.f32.mrb[27].mxu0 }
 0xf57   :  { %v4592_v32 = vadd.f32 %v1736_v49, %v4580_v18 }
 0xf58   :  { %v2044_v5 = vsel %vm4245_vm0, %v4583_v48, %v4586_v22  ;;  %v2317_v17 = vsel %vm4245_vm0, %v4586_v22, %v4583_v48 }
 0xf59   :  { %v1740_v28 = vpop.f32.mrb[28].mxu0  ;;  %v2045_v25 = vsel %vm4255_vm1, %v4589_v55, %v4592_v32  ;;  %v2318_v30 = vsel %vm4255_vm1, %v4592_v32, %v4589_v55 }
 0xf5a   :  { %v4614_v47 = vadd.f32 %v1740_v28, %v4576_v29  ;;  %v1742_v36 = vpop.f32.mrb[29].mxu0  ;;  %v1886_v28 = vpop.permute.xlu1 %1885 }
 0xf5b   :  { %v4620_v31 = vadd.f32 %v1742_v36, %v4580_v18 }
 0xf5c   :  { %v1905_v41 = vsel %vm4245_vm0, %v4611_v1, %v4614_v47  ;;  %v2454_v23 = vsel %vm4245_vm0, %v4614_v47, %v4611_v1 }
 0xf5d   :  { %v1746_v10 = vpop.f32.mrb[30].mxu0  ;;  %v1906_v15 = vsel %vm4255_vm1, %v4617_v6, %v4620_v31  ;;  %v2455_v9 = vsel %vm4255_vm1, %v4620_v31, %v4617_v6 }
 0xf5e   :  { %v4642_v58 = vadd.f32 %v1746_v10, %v4576_v29  ;;  %v1748_v0 = vpop.f32.mrb[31].mxu0 }
 0xf5f   :  { %v4648_v42 = vadd.f32 %v1748_v0, %v4580_v18  ;;  %v2021_v0 = vld [vmem:[#allocation11 + $0x28] sm:$0xff] }
 0xf60   :  { %v1769_v14 = vsel %vm4245_vm0, %v4639_v56, %v4642_v58  ;;  %v2591_v46 = vsel %vm4245_vm0, %v4642_v58, %v4639_v56 }
 0xf61   :  { %v1858_v61 = vadd.f32 %v1853_v4, %v1769_v14  ;;  %v1770_v11 = vsel %vm4255_vm1, %v4645_v60, %v4648_v42  ;;  %v2592_v2 = vsel %vm4255_vm1, %v4648_v42, %v4645_v60 }
 0xf62   :  { %v1859_v54 = vadd.f32 %v1855_v21, %v1770_v11 }
 0xf63   :  { %v1860_v50 = vmul.f32 0.5, %v1858_v61 }
 0xf64   :  { %v1861_v53 = vmul.f32 0.5, %v1859_v54 }
 0xf66   :  { %3439 = vtanh.f32 %v1861_v53 }
 0xf67   :  { %3441 = vtanh.f32 %v1860_v50 }
 0xf70   :  { %v3440_v45 = vpop.eup %3439 }
 0xf71   :  { %v1869_v51 = vmul.f32 %v3440_v45, %v3440_v45  ;;  %v3442_v57 = vpop.eup %3441  ;;  %v1865_v26 = vadd.f32 1.0, %v3440_v45  ;;  %v1868_v4 = vmul.f32 2.0, %v3440_v45 }
 0xf72   :  { %v1864_v33 = vadd.f32 1.0, %v3442_v57 }
 0xf73   :  { %v1870_v63 = vadd.f32 1.0, %v1869_v51  ;;  %v1867_v3 = vmul.f32 0.5, %v1865_v26 }
 0xf74   :  { %v1866_v20 = vmul.f32 0.5, %v1864_v33 }
 0xf75   :  { %3443 = vrcp.f32 %v1870_v63 }
 0xf76   :  { %v1874_v34 = vmul.f32 0.0, %v1866_v20 }
 0xf7f   :  { %v3444_v19 = vpop.eup %3443 }
 0xf80   :  { %v1872_v16 = vmul.f32 %v3444_v19, %v1868_v4 }
 0xf82   :  { %v1873_v12 = vsel %vm424_vm2, %v1872_v16, %v1867_v3 }
 0xf83   :  { %v1875_v21 = vmul.f32 %v1873_v12, %v1866_v20 }
 0xf85   :  { %1877 = vrot.lane.b32.xlu0 %v1875_v21, %s3761_s6 }
 0xff7   :  { %v1878_v39 = vpop.permute.xlu0 %1877 }
 0xff8   :  { %v1880_v40 = vadd.f32 %v1878_v39, %v1874_v34 }
 0xffa   :  { %3445 = vtanh.f32 %v1880_v40  ;;  %v1900_v26 = vmul.f32 %v1886_v28, %v1880_v40 }
0x1004   :  { %v3446_v27 = vpop.eup %3445 }
0x1005   :  { %v4669_v49 = vmul.f32 %v3446_v27, %v1873_v12 }
0x1007   :  { %v1888_v36 = vmul.f32 %v1886_v28, %v4669_v49 }
0x1009   :  { %1895 = vrot.lane.b32.xlu0 %v1888_v36, %s3761_s6 }
0x100d   :  { %2023 = vrot.lane.b32.xlu0 %v2021_v0, %s3761_s6  ;;  %v2160_v0 = vld [vmem:[#allocation11 + $0x20] sm:$0xff] }
0x107b   :  { %v1896_v10 = vpop.permute.xlu0 %1895 }
0x107c   :  { %1899 = vst.msk [vmem:[#allocation5 + $0x30] sm:$0xff] %vm743_vm3, %v1896_v10  ;;  %3007 = vmatmul.mubr.msk.f32.vlgmr.msra.gmra.mrb[10].mxu1 %vm625_vm4, %v1896_v10 }
0x107d   :  { %3300 = vmatpush1.bf16.msra.mxu1 %v4505_v35  ;;  %2401 = vmatprep.mubr.f32.mxu1 %v3760_v7 }
0x107e   :  { %3302 = vmatprep.subr.bf16.mxu1 %v4510_v8 }
0x107f   :  { %v2024_v28 = vpop.permute.xlu0 %2023 }
0x1081   :  { %3304 = vmatpush1.bf16.msra.mxu1 %v4514_v13 }
0x1082   :  { %3306 = vmatprep.subr.bf16.mxu1 %v4518_v52 }
0x1085   :  { %3308 = vmatpush1.bf16.msra.mxu1 %v4521_v37 }
0x1086   :  { %3310 = vmatprep.subr.bf16.mxu1 %v4525_v59 }
0x1089   :  { %3312 = vmatpush1.bf16.msra.mxu1 %v4527_v62 }
0x108a   :  { %3314 = vmatprep.subr.bf16.mxu1 %v4501_v43 }
0x114f   :  { %v1991_v14 = vpop.f32.mrb[10].mxu1 }
0x1150   :  { %v1996_v61 = vadd.f32 %v1991_v14, %v1905_v41  ;;  %v1993_v11 = vpop.f32.mrb[11].mxu1 }
0x1151   :  { %v1997_v54 = vadd.f32 %v1993_v11, %v1906_v15 }
0x1152   :  { %v1998_v53 = vmul.f32 0.5, %v1996_v61 }
0x1153   :  { %v1999_v50 = vmul.f32 0.5, %v1997_v54 }
0x1154   :  { %3447 = vtanh.f32 %v1998_v53 }
0x1155   :  { %3449 = vtanh.f32 %v1999_v50 }
0x115e   :  { %v3448_v45 = vpop.eup %3447 }
0x115f   :  { %v3450_v51 = vpop.eup %3449  ;;  %v2002_v63 = vadd.f32 1.0, %v3448_v45 }
0x1160   :  { %v2007_v57 = vmul.f32 %v3450_v51, %v3450_v51  ;;  %v2003_v3 = vadd.f32 1.0, %v3450_v51  ;;  %v2006_v16 = vmul.f32 2.0, %v3450_v51 }
0x1161   :  { %v2004_v33 = vmul.f32 0.5, %v2002_v63 }
0x1162   :  { %v2008_v4 = vadd.f32 1.0, %v2007_v57  ;;  %v2005_v12 = vmul.f32 0.5, %v2003_v3 }
0x1163   :  { %v2012_v19 = vmul.f32 %v2004_v33, %v1900_v26 }
0x1164   :  { %3451 = vrcp.f32 %v2008_v4 }
0x116e   :  { %v3452_v20 = vpop.eup %3451 }
0x116f   :  { %v2010_v41 = vmul.f32 %v3452_v20, %v2006_v16 }
0x1171   :  { %v2011_v15 = vsel %vm424_vm2, %v2010_v41, %v2005_v12 }
0x1172   :  { %v2013_v21 = vmul.f32 %v2011_v15, %v2004_v33 }
0x1174   :  { %2015 = vrot.lane.b32.xlu1 %v2013_v21, %s3761_s6 }
0x11e6   :  { %v2016_v34 = vpop.permute.xlu1 %2015 }
0x11e7   :  { %v2018_v39 = vadd.f32 %v2016_v34, %v2012_v19 }
0x11e9   :  { %3453 = vtanh.f32 %v2018_v39  ;;  %v2039_v57 = vmul.f32 %v2024_v28, %v2018_v39 }
0x11f3   :  { %v3454_v27 = vpop.eup %3453 }
0x11f4   :  { %v4688_v40 = vmul.f32 %v3454_v27, %v2011_v15 }
0x11f6   :  { %v2026_v36 = vmul.f32 %v2024_v28, %v4688_v40 }
0x11f8   :  { %2034 = vrot.lane.b32.xlu1 %v2026_v36, %s3761_s6  ;;  %v2295_v36 = vld [vmem:[#allocation11 + $0x18] sm:$0xff] }
0x11fc   :  { %2162 = vrot.lane.b32.xlu1 %v2160_v0, %s3761_s6 }
0x126a   :  { %v2035_v10 = vpop.permute.xlu1 %2034 }
0x126b   :  { %2038 = vst.msk [vmem:[#allocation5 + $0x28] sm:$0xff] %vm743_vm3, %v2035_v10  ;;  %3008 = vmatmul.mubr.msk.f32.vlgmr.msra.gmra.mrb[32].mxu0 %vm625_vm4, %v2035_v10 }
0x126c   :  { %3284 = vmatpush1.bf16.msra.mxu0 %v4505_v35  ;;  %2263 = vmatprep.mubr.f32.mxu0 %v3760_v7 }
0x126d   :  { %3286 = vmatprep.subr.bf16.mxu0 %v4510_v8 }
0x126e   :  { %v2163_v39 = vpop.permute.xlu1 %2162 }
0x1270   :  { %3288 = vmatpush1.bf16.msra.mxu0 %v4514_v13 }
0x1271   :  { %3290 = vmatprep.subr.bf16.mxu0 %v4518_v52 }
0x1274   :  { %3292 = vmatpush1.bf16.msra.mxu0 %v4521_v37 }
0x1275   :  { %3294 = vmatprep.subr.bf16.mxu0 %v4525_v59 }
0x1278   :  { %3296 = vmatpush1.bf16.msra.mxu0 %v4527_v62 }
0x1279   :  { %3330 = vmatprep.subr.bf16.mxu0 %v4501_v43 }
0x133e   :  { %v2130_v14 = vpop.f32.mrb[32].mxu0 }
0x133f   :  { %v2135_v61 = vadd.f32 %v2130_v14, %v2044_v5  ;;  %v2132_v11 = vpop.f32.mrb[33].mxu0 }
0x1340   :  { %v2136_v54 = vadd.f32 %v2132_v11, %v2045_v25 }
0x1341   :  { %v2137_v53 = vmul.f32 0.5, %v2135_v61 }
0x1342   :  { %v2138_v50 = vmul.f32 0.5, %v2136_v54 }
0x1343   :  { %3455 = vtanh.f32 %v2137_v53 }
0x1344   :  { %3457 = vtanh.f32 %v2138_v50 }
0x134d   :  { %v3456_v43 = vpop.eup %3455 }
0x134e   :  { %v3458_v45 = vpop.eup %3457  ;;  %v2141_v51 = vadd.f32 1.0, %v3456_v43 }
0x134f   :  { %v2146_v63 = vmul.f32 %v3458_v45, %v3458_v45  ;;  %v2142_v5 = vadd.f32 1.0, %v3458_v45  ;;  %v2145_v19 = vmul.f32 2.0, %v3458_v45 }
0x1350   :  { %v2143_v26 = vmul.f32 0.5, %v2141_v51 }
0x1351   :  { %v2147_v33 = vadd.f32 1.0, %v2146_v63  ;;  %v2144_v16 = vmul.f32 0.5, %v2142_v5 }
0x1352   :  { %v2151_v4 = vmul.f32 %v2143_v26, %v2039_v57 }
0x1353   :  { %3459 = vrcp.f32 %v2147_v33 }
0x135d   :  { %v3460_v3 = vpop.eup %3459 }
0x135e   :  { %v2149_v20 = vmul.f32 %v3460_v3, %v2145_v19 }
0x1360   :  { %v2150_v25 = vsel %vm424_vm2, %v2149_v20, %v2144_v16 }
0x1361   :  { %v2152_v12 = vmul.f32 %v2150_v25, %v2143_v26 }
0x1363   :  { %2154 = vrot.lane.b32.xlu0 %v2152_v12, %s3761_s6 }
0x13d5   :  { %v2155_v41 = vpop.permute.xlu0 %2154 }
0x13d6   :  { %v2157_v15 = vadd.f32 %v2155_v41, %v2151_v4 }
0x13d8   :  { %3461 = vtanh.f32 %v2157_v15  ;;  %v2178_v51 = vmul.f32 %v2163_v39, %v2157_v15 }
0x13e2   :  { %v3462_v21 = vpop.eup %3461 }
0x13e3   :  { %v4717_v34 = vmul.f32 %v3462_v21, %v2150_v25 }
0x13e5   :  { %v2165_v27 = vmul.f32 %v2163_v39, %v4717_v34  ;;  %v2433_v39 = vld [vmem:[#allocation11 + $0x10] sm:$0xff] }
0x13e7   :  { %2173 = vrot.lane.b32.xlu0 %v2165_v27, %s3761_s6 }
0x13eb   :  { %2297 = vrot.lane.b32.xlu0 %v2295_v36, %s3761_s6 }
0x1459   :  { %v2174_v28 = vpop.permute.xlu0 %2173 }
0x145a   :  { %2177 = vst.msk [vmem:[#allocation5 + $0x20] sm:$0xff] %vm743_vm3, %v2174_v28  ;;  %3009 = vmatmul.mubr.msk.f32.vlgmr.msra.gmra.mrb[24].mxu0 %vm625_vm4, %v2174_v28 }
0x145b   :  { %3332 = vmatpush1.bf16.msra.mxu0 %v4505_v35  ;;  %2675 = vmatprep.mubr.f32.mxu0 %v3760_v7 }
0x145c   :  { %3334 = vmatprep.subr.bf16.mxu0 %v4510_v8 }
0x145d   :  { %v2298_v41 = vpop.permute.xlu0 %2297 }
0x145f   :  { %3336 = vmatpush1.bf16.msra.mxu0 %v4514_v13 }
0x1460   :  { %3338 = vmatprep.subr.bf16.mxu0 %v4518_v52 }
0x1463   :  { %3340 = vmatpush1.bf16.msra.mxu0 %v4521_v37 }
0x1464   :  { %3342 = vmatprep.subr.bf16.mxu0 %v4525_v59 }
0x1467   :  { %3344 = vmatpush1.bf16.msra.mxu0 %v4527_v62 }
0x152d   :  { %v2265_v10 = vpop.f32.mrb[24].mxu0 }
0x152e   :  { %v3359_v0 = vadd.f32 %v2265_v10, %v4576_v29  ;;  %v2267_v14 = vpop.f32.mrb[25].mxu0 }
0x152f   :  { %v3360_v61 = vadd.f32 %v2267_v14, %v4580_v18 }
0x1530   :  { %v2272_v11 = vmul.f32 0.5, %v3359_v0 }
0x1531   :  { %v2273_v54 = vmul.f32 0.5, %v3360_v61 }
0x1532   :  { %3463 = vtanh.f32 %v2272_v11 }
0x1533   :  { %3465 = vtanh.f32 %v2273_v54 }
0x153c   :  { %v3464_v53 = vpop.eup %3463 }
0x153d   :  { %v3466_v50 = vpop.eup %3465  ;;  %v2276_v43 = vadd.f32 1.0, %v3464_v53 }
0x153e   :  { %v2281_v45 = vmul.f32 %v3466_v50, %v3466_v50  ;;  %v2277_v33 = vadd.f32 1.0, %v3466_v50  ;;  %v2280_v4 = vmul.f32 2.0, %v3466_v50 }
0x153f   :  { %v2278_v63 = vmul.f32 0.5, %v2276_v43 }
0x1540   :  { %v2282_v57 = vadd.f32 1.0, %v2281_v45  ;;  %v2279_v29 = vmul.f32 0.5, %v2277_v33 }
0x1541   :  { %v2286_v26 = vmul.f32 %v2278_v63, %v2178_v51 }
0x1542   :  { %3467 = vrcp.f32 %v2282_v57  ;;  %v2570_v57 = vld [vmem:[#allocation11 + $0x8] sm:$0xff] }
0x154c   :  { %v3468_v5 = vpop.eup %3467 }
0x154d   :  { %v2284_v19 = vmul.f32 %v3468_v5, %v2280_v4 }
0x154f   :  { %v2285_v18 = vsel %vm424_vm2, %v2284_v19, %v2279_v29 }
0x1550   :  { %v2287_v3 = vmul.f32 %v2285_v18, %v2278_v63 }
0x1552   :  { %2289 = vrot.lane.b32.xlu1 %v2287_v3, %s3761_s6 }
0x15c4   :  { %v2290_v16 = vpop.permute.xlu1 %2289 }
0x15c5   :  { %v2292_v20 = vadd.f32 %v2290_v16, %v2286_v26 }
0x15c7   :  { %3469 = vtanh.f32 %v2292_v20  ;;  %v2312_v10 = vmul.f32 %v2298_v41, %v2292_v20 }
0x15d1   :  { %v3470_v25 = vpop.eup %3469 }
0x15d2   :  { %v4737_v12 = vmul.f32 %v3470_v25, %v2285_v18 }
0x15d4   :  { %v2300_v15 = vmul.f32 %v2298_v41, %v4737_v12 }
0x15d6   :  { %2308 = vrot.lane.b32.xlu1 %v2300_v15, %s3761_s6 }
0x15da   :  { %2435 = vrot.lane.b32.xlu1 %v2433_v39, %s3761_s6 }
0x1648   :  { %v4741_v21 = vpop.permute.xlu1 %2308 }
0x1649   :  { %3010 = vmatmul.mubr.msk.f32.vlgmr.msra.gmra.mrb[12].mxu1 %vm625_vm4, %v4741_v21 }
0x164a   :  { %3316 = vmatpush1.bf16.msra.mxu1 %v4505_v35  ;;  %2538 = vmatprep.mubr.f32.mxu1 %v3760_v7 }
0x164b   :  { %3318 = vmatprep.subr.bf16.mxu1 %v4510_v8 }
0x164c   :  { %v2436_v45 = vpop.permute.xlu1 %2435 }
0x164e   :  { %3320 = vmatpush1.bf16.msra.mxu1 %v4514_v13 }
0x164f   :  { %3322 = vmatprep.subr.bf16.mxu1 %v4518_v52 }
0x1652   :  { %3324 = vmatpush1.bf16.msra.mxu1 %v4521_v37 }
0x1653   :  { %3326 = vmatprep.subr.bf16.mxu1 %v4525_v59 }
0x1656   :  { %3328 = vmatpush1.bf16.msra.mxu1 %v4527_v62 }
0x171c   :  { %v2403_v27 = vpop.f32.mrb[12].mxu1 }
0x171d   :  { %v2408_v35 = vadd.f32 %v2403_v27, %v2317_v17  ;;  %v2405_v8 = vpop.f32.mrb[13].mxu1 }
0x171e   :  { %v2409_v13 = vadd.f32 %v2405_v8, %v2318_v30 }
0x171f   :  { %v2410_v52 = vmul.f32 0.5, %v2408_v35 }
0x1720   :  { %v2411_v37 = vmul.f32 0.5, %v2409_v13 }
0x1721   :  { %3471 = vtanh.f32 %v2410_v52 }
0x1722   :  { %3473 = vtanh.f32 %v2411_v37 }
0x172b   :  { %v3472_v59 = vpop.eup %3471 }
0x172c   :  { %v3474_v62 = vpop.eup %3473  ;;  %v2414_v28 = vadd.f32 1.0, %v3472_v59 }
0x172d   :  { %v2419_v36 = vmul.f32 %v3474_v62, %v3474_v62  ;;  %v2415_v22 = vadd.f32 1.0, %v3474_v62  ;;  %v2418_v17 = vmul.f32 2.0, %v3474_v62 }
0x172e   :  { %v2416_v0 = vmul.f32 0.5, %v2414_v28  ;;  %v2707_v28 = vld [vmem:[#allocation11] sm:$0xff] }
0x172f   :  { %v2420_v14 = vadd.f32 1.0, %v2419_v36  ;;  %v2417_v11 = vmul.f32 0.5, %v2415_v22 }
0x1730   :  { %v2424_v48 = vmul.f32 %v2416_v0, %v2312_v10 }
0x1731   :  { %3475 = vrcp.f32 %v2420_v14 }
0x173b   :  { %v3476_v61 = vpop.eup %3475 }
0x173c   :  { %v2422_v54 = vmul.f32 %v3476_v61, %v2418_v17 }
0x173e   :  { %v2423_v55 = vsel %vm424_vm2, %v2422_v54, %v2417_v11 }
0x173f   :  { %v2425_v32 = vmul.f32 %v2423_v55, %v2416_v0 }
0x1741   :  { %2427 = vrot.lane.b32.xlu0 %v2425_v32, %s3761_s6 }
0x17b3   :  { %v2428_v30 = vpop.permute.xlu0 %2427 }
0x17b4   :  { %v2430_v53 = vadd.f32 %v2428_v30, %v2424_v48 }
0x17b6   :  { %3477 = vtanh.f32 %v2430_v53  ;;  %v2449_v25 = vmul.f32 %v2436_v45, %v2430_v53 }
0x17c0   :  { %v3478_v50 = vpop.eup %3477 }
0x17c1   :  { %v4767_v43 = vmul.f32 %v3478_v50, %v2423_v55  ;;  %v2745_v50 = vld [vmem:[#allocation20 + $0x8] sm:$0xff] }
0x17c3   :  { %v2438_v51 = vmul.f32 %v2436_v45, %v4767_v43  ;;  %v2746_v45 = vld [vmem:[#allocation20 + $0x10] sm:$0xff] }
0x17c5   :  { %2445 = vrot.lane.b32.xlu0 %v2438_v51, %s3761_s6  ;;  %v3762_v51 = vmov 0.0|0.0  }
0x17c6   :  { %3345 = vmatprep.subr.bf16.mxu1 %v3762_v51 }
0x17c9   :  { %2572 = vrot.lane.b32.xlu0 %v2570_v57, %s3761_s6  ;;  %v2747_v57 = vld [vmem:[#allocation20 + $0x18] sm:$0xff] }
0x1837   :  { %v4771_v63 = vpop.permute.xlu0 %2445 }
0x1838   :  { %3011 = vmatmul.mubr.msk.f32.vlgmr.msra.gmra.mrb[14].mxu1 %vm625_vm4, %v4771_v63 }
0x1839   :  { %3052 = vmatprep.mubr.msk.f32.mxu1 %vm3763_vm6, %v3760_v7 }
0x183b   :  { %v2573_v37 = vpop.permute.xlu0 %2572 }
0x190b   :  { %v2540_v26 = vpop.f32.mrb[14].mxu1 }
0x190c   :  { %v2545_v33 = vadd.f32 %v2540_v26, %v2454_v23  ;;  %v2542_v4 = vpop.f32.mrb[15].mxu1  ;;  %v3349_v26 = vpack.c.bf16 %v2747_v57, %v2746_v45 }
0x190d   :  { %v2546_v5 = vadd.f32 %v2542_v4, %v2455_v9  ;;  %v2749_v4 = vld [vmem:[#allocation20 + $0x28] sm:$0xff] }
0x190e   :  { %v2547_v29 = vmul.f32 0.5, %v2545_v33 }
0x190f   :  { %v2548_v19 = vmul.f32 0.5, %v2546_v5 }
0x1910   :  { %3479 = vtanh.f32 %v2547_v29 }
0x1911   :  { %3481 = vtanh.f32 %v2548_v19  ;;  %v2750_v19 = vld [vmem:[#allocation20 + $0x30] sm:$0xff] }
0x191a   :  { %v3480_v18 = vpop.eup %3479 }
0x191b   :  { %v3482_v3 = vpop.eup %3481  ;;  %v2551_v16 = vadd.f32 1.0, %v3480_v18  ;;  %v2751_v18 = vld [vmem:[#allocation20 + $0x38] sm:$0xff] }
0x191c   :  { %v2556_v20 = vmul.f32 %v3482_v3, %v3482_v3  ;;  %v2552_v47 = vadd.f32 1.0, %v3482_v3  ;;  %v2555_v23 = vmul.f32 2.0, %v3482_v3  ;;  %v3355_v3 = vpack.c.bf16 %v2751_v18, %v2750_v19 }
0x191d   :  { %v2553_v41 = vmul.f32 0.5, %v2551_v16 }
0x191e   :  { %v2557_v15 = vadd.f32 1.0, %v2556_v20  ;;  %v2554_v27 = vmul.f32 0.5, %v2552_v47 }
0x191f   :  { %v2561_v1 = vmul.f32 %v2553_v41, %v2449_v25 }
0x1920   :  { %3483 = vrcp.f32 %v2557_v15 }
0x192a   :  { %v3484_v39 = vpop.eup %3483 }
0x192b   :  { %v2559_v35 = vmul.f32 %v3484_v39, %v2555_v23  ;;  %v2730_v23 = vld [vmem:[#allocation13] sm:$0xff] }
0x192d   :  { %v2560_v6 = vsel %vm424_vm2, %v2559_v35, %v2554_v27 }
0x192e   :  { %v2562_v31 = vmul.f32 %v2560_v6, %v2553_v41 }
0x1930   :  { %2564 = vrot.lane.b32.xlu1 %v2562_v31, %s3761_s6 }
0x19a2   :  { %v2565_v9 = vpop.permute.xlu1 %2564 }
0x19a3   :  { %v2567_v8 = vadd.f32 %v2565_v9, %v2561_v1 }
0x19a5   :  { %3485 = vtanh.f32 %v2567_v8  ;;  %v2586_v44 = vmul.f32 %v2573_v37, %v2567_v8  ;;  %v2732_v8 = vld [vmem:[#allocation13 + $0x10] sm:$0xff] }
0x19af   :  { %v3486_v13 = vpop.eup %3485 }
0x19b0   :  { %v2569_v52 = vmul.f32 %v3486_v13, %v2560_v6  ;;  %v2731_v6 = vld [vmem:[#allocation13 + $0x8] sm:$0xff] }
0x19b2   :  { %v2575_v59 = vmul.f32 %v2573_v37, %v2569_v52 }
0x19b4   :  { %2582 = vrot.lane.b32.xlu1 %v2575_v59, %s3761_s6 }
0x19b8   :  { %2709 = vrot.lane.b32.xlu1 %v2707_v28, %s3761_s6 }
0x1a26   :  { %v2583_v62 = vpop.permute.xlu1 %2582 }
0x1a27   :  { %3012 = vmatmul.mubr.msk.f32.vlgmr.msra.gmra.mrb[34].mxu0 %vm625_vm4, %v2583_v62 }
0x1a2a   :  { %v2710_v25 = vpop.permute.xlu1 %2709 }
0x1afa   :  { %v2677_v36 = vpop.f32.mrb[34].mxu0 }
0x1afb   :  { %v2682_v10 = vadd.f32 %v2677_v36, %v2591_v46  ;;  %v2679_v0 = vpop.f32.mrb[35].mxu0 }
0x1afc   :  { %v2683_v14 = vadd.f32 %v2679_v0, %v2592_v2  ;;  %v2744_v2 = vld [vmem:[#allocation20] sm:$0xff] }
0x1afd   :  { %v2684_v48 = vmul.f32 0.5, %v2682_v10  ;;  %v3346_v38 = vpack.c.bf16 %v2745_v50, %v2744_v2  ;;  %v2735_v10 = vld [vmem:[#allocation13 + $0x28] sm:$0xff] }
0x1afe   :  { %v2685_v22 = vmul.f32 0.5, %v2683_v14 }
0x1aff   :  { %3487 = vtanh.f32 %v2684_v48  ;;  %3347 = vmatpush3.bf16.msra.mxu1 %v3346_v38  ;;  %v2736_v48 = vld [vmem:[#allocation13 + $0x30] sm:$0xff] }
0x1b00   :  { %3489 = vtanh.f32 %v2685_v22  ;;  %3348 = vmatprep.subr.bf16.mxu1 %v3762_v51 }
0x1b03   :  { %3350 = vmatpush3.bf16.msra.mxu1 %v3349_v26 }
0x1b04   :  { %3351 = vmatprep.subr.bf16.mxu1 %v3762_v51 }
0x1b09   :  { %v3488_v17 = vpop.eup %3487 }
0x1b0a   :  { %v3490_v61 = vpop.eup %3489  ;;  %v2688_v11 = vadd.f32 1.0, %v3488_v17  ;;  %v3013_v17 = vld [vmem:[%s4881_s11] ss:$0 sm:$0xff]  ;;  %s3764_s11 = smov [#allocation22]  }
0x1b0b   :  { %v2693_v54 = vmul.f32 %v3490_v61, %v3490_v61  ;;  %v2689_v58 = vadd.f32 1.0, %v3490_v61  ;;  %v2692_v46 = vmul.f32 2.0, %v3490_v61  ;;  %s2962_s4 = sshll.u32 %s3764_s11, 4  ;;  %s2963_s4 = int_to_ptr.vmem [resolvable:$true] %s2962_s4 }
0x1b0c   :  { %v2690_v55 = vmul.f32 0.5, %v2688_v11  ;;  %s3711_s24 = scalar_lea.vmem %s2963_s4, 896  ;;  %p3716_p0 = scmp.lt.s32.totalorder %s2963_s4, %s2963_s4 }
0x1b0d   :  { %v2694_v32 = vadd.f32 1.0, %v2693_v54  ;;  %v2691_v30 = vmul.f32 0.5, %v2689_v58  ;;  %p3712_p13 = scmp.ne.s32.totalorder %s2963_s4, %s3711_s24  ;;  %p3717_p1 = scmp.lt.s32.totalorder %s3711_s24, %s3711_s24 }
0x1b0e   :  { %v2698_v56 = vmul.f32 %v2690_v55, %v2586_v44 }
0x1b0f   :  { %3491 = vrcp.f32 %v2694_v32  ;;  %p3718_p2 = por %p3717_p1, %p3716_p0 }
0x1b11   :  { %p3719_p3 = pnand %p3718_p2, %p3712_p13 }
0x1b19   :  { %v3492_v24 = vpop.eup %3491 }
0x1b1a   :  { %v2696_v53 = vmul.f32 %v3492_v24, %v2692_v46 }
0x1b1c   :  { %v2697_v60 = vsel %vm424_vm2, %v2696_v53, %v2691_v30 }
0x1b1d   :  { %v2699_v42 = vmul.f32 %v2697_v60, %v2690_v55 }
0x1b1f   :  { %2701 = vrot.lane.b32.xlu0 %v2699_v42, %s3761_s6 }
0x1b23   :  { %1890 = vrot.lane.b32.xlu0 %v4669_v49, %s3761_s6 }
0x1b27   :  { %2028 = vrot.lane.b32.xlu0 %v4688_v40, %s3761_s6 }
0x1b2b   :  { %2302 = vrot.lane.b32.xlu0 %v4737_v12, %s3761_s6  ;;  %v2748_v12 = vld [vmem:[#allocation20 + $0x20] sm:$0xff] }
0x1b2c   :  { %v3352_v5 = vpack.c.bf16 %v2749_v4, %v2748_v12 }
0x1b2e   :  { %3353 = vmatpush3.bf16.msra.mxu1 %v3352_v5 }
0x1b2f   :  { %2577 = vrot.lane.b32.xlu0 %v2569_v52, %s3761_s6  ;;  %3354 = vmatprep.subr.bf16.mxu1 %v3762_v51  ;;  %v2733_v52 = vld [vmem:[#allocation13 + $0x18] sm:$0xff] }
0x1b32   :  { %3356 = vmatpush3.bf16.msra.mxu1 %v3355_v3 }
0x1b91   :  { %v2702_v49 = vpop.permute.xlu0 %2701 }
0x1b92   :  { %v2704_v33 = vadd.f32 %v2702_v49, %v2698_v56 }
0x1b94   :  { %3493 = vtanh.f32 %v2704_v33 }
0x1b95   :  { %v1891_v40 = vpop.permute.xlu0 %1890 }
0x1b96   :  { %1893 = vst.msk [vmem:[#allocation5] sm:$0xff] %vm736_vm5, %v1891_v40 }
0x1b99   :  { %v2029_v29 = vpop.permute.xlu0 %2028 }
0x1b9a   :  { %2032 = vst.msk [vmem:[#allocation5 + $0x8] sm:$0xff] %vm736_vm5, %v2029_v29 }
0x1b9b   :  { %2585 = vst.msk [vmem:[#allocation5 + $0x8] sm:$0xff] %vm743_vm3, %v2583_v62  ;;  %v2734_v62 = vld [vmem:[#allocation13 + $0x20] sm:$0xff] }
0x1b9d   :  { %v2303_v16 = vpop.permute.xlu0 %2302 }
0x1b9e   :  { %v3494_v20 = vpop.eup %3493  ;;  %2306 = vst.msk [vmem:[#allocation5 + $0x18] sm:$0xff] %vm736_vm5, %v2303_v16 }
0x1b9f   :  { %2311 = vst.msk [vmem:[#allocation5 + $0x18] sm:$0xff] %vm743_vm3, %v4741_v21  ;;  %v2706_v41 = vmul.f32 %v3494_v20, %v2697_v60 }
0x1ba1   :  { %v2712_v15 = vmul.f32 %v2710_v25, %v2706_v41  ;;  %v2578_v1 = vpop.permute.xlu0 %2577 }
0x1ba2   :  { %2580 = vst.msk [vmem:[#allocation5 + $0x28] sm:$0xff] %vm736_vm5, %v2578_v1  ;;  %v2724_v35 = vld [vmem:[#allocation5 + $0x8] sm:$0xff] }
0x1ba3   :  { %2719 = vrot.lane.b32.xlu1 %v2712_v15, %s3761_s6  ;;  %v2738_v31 = vmul.f32 %v2731_v6, %v2724_v35 }
0x1ba6   :  { %v2726_v13 = vld [vmem:[#allocation5 + $0x18] sm:$0xff] }
0x1ba7   :  { %2167 = vrot.lane.b32.xlu1 %v4717_v34, %s3761_s6  ;;  %v2740_v37 = vmul.f32 %v2733_v52, %v2726_v13 }
0x1ba9   :  { %v2728_v36 = vld [vmem:[#allocation5 + $0x28] sm:$0xff] }
0x1baa   :  { %v2742_v0 = vmul.f32 %v2735_v10, %v2728_v36 }
0x1bab   :  { %2440 = vrot.lane.b32.xlu1 %v4767_v43, %s3761_s6 }
0x1baf   :  { %2714 = vrot.lane.b32.xlu1 %v2706_v41, %s3761_s6 }
0x1c15   :  { %v2720_v21 = vpop.permute.xlu1 %2719 }
0x1c16   :  { %2722 = vst.msk [vmem:[#allocation5] sm:$0xff] %vm743_vm3, %v2720_v21 }
0x1c19   :  { %v2168_v47 = vpop.permute.xlu1 %2167 }
0x1c1a   :  { %2171 = vst.msk [vmem:[#allocation5 + $0x10] sm:$0xff] %vm736_vm5, %v2168_v47 }
0x1c1b   :  { %2448 = vst.msk [vmem:[#allocation5 + $0x10] sm:$0xff] %vm743_vm3, %v4771_v63 }
0x1c1d   :  { %v2441_v39 = vpop.permute.xlu1 %2440  ;;  %v2723_v27 = vld [vmem:[#allocation5] sm:$0xff] }
0x1c1e   :  { %2443 = vst.msk [vmem:[#allocation5 + $0x20] sm:$0xff] %vm736_vm5, %v2441_v39  ;;  %v2737_v34 = vmul.f32 %v2730_v23, %v2723_v27 }
0x1c20   :  { %3053 = vmatmul.mubr.msk.f32.vlgmr.msra.gmra.mrb[16].mxu1 %vm625_vm4, %v2737_v34 }
0x1c21   :  { %v2715_v43 = vpop.permute.xlu1 %2714  ;;  %3055 = vmatprep.mubr.msk.f32.mxu1 %vm3763_vm6, %v3760_v7 }
0x1c22   :  { %2717 = vst.msk [vmem:[#allocation5 + $0x30] sm:$0xff] %vm736_vm5, %v2715_v43  ;;  %v2725_v9 = vld [vmem:[#allocation5 + $0x10] sm:$0xff] }
0x1c23   :  { %v2739_v63 = vmul.f32 %v2732_v8, %v2725_v9 }
0x1c24   :  { %3056 = vmatmul.mubr.msk.f32.gmra.mrb[18].mxu1 %vm625_vm4, %v2738_v31 }
0x1c25   :  { %3058 = vmatprep.mubr.msk.f32.mxu1 %vm3763_vm6, %v3760_v7  ;;  %v2727_v59 = vld [vmem:[#allocation5 + $0x20] sm:$0xff] }
0x1c26   :  { %v2741_v28 = vmul.f32 %v2734_v62, %v2727_v59 }
0x1c28   :  { %3059 = vmatmul.mubr.msk.f32.gmra.mrb[20].mxu1 %vm625_vm4, %v2739_v63 }
0x1c29   :  { %3061 = vmatprep.mubr.msk.f32.mxu1 %vm3763_vm6, %v3760_v7  ;;  %v2729_v14 = vld [vmem:[#allocation5 + $0x30] sm:$0xff] }
0x1c2a   :  { %v2743_v22 = vmul.f32 %v2736_v48, %v2729_v14 }
0x1c2c   :  { %3062 = vmatmul.mubr.msk.f32.gmra.mrb[22].mxu1 %vm625_vm4, %v2740_v37 }
0x1c2d   :  { %3064 = vmatprep.mubr.msk.f32.mxu1 %vm3763_vm6, %v3760_v7 }
0x1c30   :  { %3065 = vmatmul.mubr.msk.f32.gmra.mrb[24].mxu1 %vm625_vm4, %v2741_v28 }
0x1c31   :  { %3067 = vmatprep.mubr.msk.f32.mxu1 %vm3763_vm6, %v3760_v7 }
0x1c34   :  { %3068 = vmatmul.mubr.msk.f32.gmra.mrb[26].mxu1 %vm625_vm4, %v2742_v0 }
0x1c35   :  { %3070 = vmatprep.mubr.msk.f32.mxu1 %vm3763_vm6, %v3760_v7 }
0x1c38   :  { %3071 = vmatmul.mubr.msk.f32.gmra.mrb[28].mxu1 %vm625_vm4, %v2743_v22 }
0x1cf3   :  { %v2846_v61 = vpop.f32.mrb[16].mxu1 }
0x1cf4   :  { %v2847_v11 = vadd.f32 %v3013_v17, %v2846_v61  ;;  %v3054_v54 = vpop.f32.mrb[17].mxu1 }
0x1cf6   :  { %2880 = vmax.xlane.f32.xlu0 %v2847_v11 }
0x1cf7   :  { %v2851_v44 = vpop.f32.mrb[18].mxu1 }
0x1cf8   :  { %v2852_v55 = vadd.f32 %v3013_v17, %v2851_v44  ;;  %v3057_v32 = vpop.f32.mrb[19].mxu1 }
0x1cfa   :  { %2882 = vmax.xlane.f32.xlu1 %v2852_v55 }
0x1cfb   :  { %v2856_v56 = vpop.f32.mrb[20].mxu1 }
0x1cfc   :  { %v2857_v58 = vadd.f32 %v3013_v17, %v2856_v56  ;;  %v3060_v46 = vpop.f32.mrb[21].mxu1 }
0x1cfe   :  { %2884 = vmax.xlane.f32.xlu0 %v2857_v58 }
0x1cff   :  { %v2861_v7 = vpop.f32.mrb[22].mxu1 }
0x1d00   :  { %v2862_v24 = vadd.f32 %v3013_v17, %v2861_v7  ;;  %v3063_v30 = vpop.f32.mrb[23].mxu1 }
0x1d02   :  { %2886 = vmax.xlane.f32.xlu0 %v2862_v24 }
0x1d03   :  { %v2866_v53 = vpop.f32.mrb[24].mxu1 }
0x1d04   :  { %v2867_v60 = vadd.f32 %v3013_v17, %v2866_v53  ;;  %v3066_v42 = vpop.f32.mrb[25].mxu1 }
0x1d06   :  { %2888 = vmax.xlane.f32.xlu1 %v2867_v60 }
0x1d07   :  { %v2871_v2 = vpop.f32.mrb[26].mxu1 }
0x1d08   :  { %v2872_v50 = vadd.f32 %v3013_v17, %v2871_v2  ;;  %v3069_v45 = vpop.f32.mrb[27].mxu1 }
0x1d0a   :  { %2890 = vmax.xlane.f32.xlu0 %v2872_v50 }
0x1d0b   :  { %v2876_v51 = vpop.f32.mrb[28].mxu1 }
0x1d0c   :  { %v2877_v38 = vadd.f32 %v3013_v17, %v2876_v51  ;;  %v3072_v57 = vpop.f32.mrb[29].mxu1 }
0x1d0e   :  { %2892 = vmax.xlane.f32.xlu1 %v2877_v38 }
0x1d83   :  { %v2881_v26 = vpop.xlane.xlu0 %2880 }
0x1d84   :  { %v2894_v49 = vsub.f32 %v2847_v11, %v2881_v26 }
0x1d86   :  { %v2901_v33 = vmul.f32 1.442695, %v2894_v49 }
0x1d87   :  { %v2883_v40 = vpop.xlane.xlu1 %2882 }
0x1d88   :  { %3495 = vpow2.f32 %v2901_v33  ;;  %v2895_v12 = vsub.f32 %v2852_v55, %v2883_v40 }
0x1d8a   :  { %v2903_v4 = vmul.f32 1.442695, %v2895_v12 }
0x1d8b   :  { %v2885_v5 = vpop.xlane.xlu0 %2884 }
0x1d8c   :  { %3497 = vpow2.f32 %v2903_v4  ;;  %v2896_v29 = vsub.f32 %v2857_v58, %v2885_v5 }
0x1d8e   :  { %v2905_v19 = vmul.f32 1.442695, %v2896_v29 }
0x1d8f   :  { %v2887_v18 = vpop.xlane.xlu0 %2886 }
0x1d90   :  { %3499 = vpow2.f32 %v2905_v19  ;;  %v2897_v3 = vsub.f32 %v2862_v24, %v2887_v18 }
0x1d92   :  { %v3496_v16 = vpop.eup %3495  ;;  %v2907_v20 = vmul.f32 1.442695, %v2897_v3 }
0x1d93   :  { %2915 = vadd.xlane.f32.xlu0 %v3496_v16  ;;  %v2889_v25 = vpop.xlane.xlu1 %2888 }
0x1d94   :  { %3501 = vpow2.f32 %v2907_v20  ;;  %v2898_v41 = vsub.f32 %v2867_v60, %v2889_v25 }
0x1d96   :  { %v3498_v15 = vpop.eup %3497  ;;  %v2909_v1 = vmul.f32 1.442695, %v2898_v41 }
0x1d97   :  { %v2891_v21 = vpop.xlane.xlu0 %2890  ;;  %2917 = vadd.xlane.f32.xlu1 %v3498_v15 }
0x1d98   :  { %3503 = vpow2.f32 %v2909_v1  ;;  %v2899_v47 = vsub.f32 %v2872_v50, %v2891_v21 }
0x1d9a   :  { %v3500_v23 = vpop.eup %3499  ;;  %v2911_v39 = vmul.f32 1.442695, %v2899_v47 }
0x1d9b   :  { %2919 = vadd.xlane.f32.xlu0 %v3500_v23  ;;  %v2893_v27 = vpop.xlane.xlu1 %2892 }
0x1d9c   :  { %3505 = vpow2.f32 %v2911_v39  ;;  %v2900_v34 = vsub.f32 %v2877_v38, %v2893_v27 }
0x1d9e   :  { %v3502_v35 = vpop.eup %3501  ;;  %v2913_v6 = vmul.f32 1.442695, %v2900_v34 }
0x1d9f   :  { %2921 = vadd.xlane.f32.xlu1 %v3502_v35 }
0x1da0   :  { %3507 = vpow2.f32 %v2913_v6 }
0x1da2   :  { %v3504_v43 = vpop.eup %3503 }
0x1da3   :  { %2923 = vadd.xlane.f32.xlu0 %v3504_v43 }
0x1da6   :  { %v3506_v31 = vpop.eup %3505 }
0x1da7   :  { %2925 = vadd.xlane.f32.xlu1 %v3506_v31 }
0x1daa   :  { %v3508_v9 = vpop.eup %3507 }
0x1dab   :  { %2927 = vadd.xlane.f32.xlu0 %v3508_v9 }
0x1e20   :  { %v2916_v8 = vpop.xlane.xlu0 %2915 }
0x1e21   :  { %3509 = vlog2.f32 %v2916_v8 }
0x1e24   :  { %v2918_v63 = vpop.xlane.xlu1 %2917 }
0x1e25   :  { %3511 = vlog2.f32 %v2918_v63 }
0x1e28   :  { %v2920_v13 = vpop.xlane.xlu0 %2919 }
0x1e29   :  { %3513 = vlog2.f32 %v2920_v13 }
0x1e2b   :  { %v3510_v52 = vpop.eup %3509 }
0x1e2c   :  { %v2930_v37 = vmul.f32 0.6931472, %v3510_v52  ;;  %v2922_v59 = vpop.xlane.xlu1 %2921 }
0x1e2d   :  { %3515 = vlog2.f32 %v2922_v59 }
0x1e2e   :  { %v2943_v62 = vsub.f32 %v2894_v49, %v2930_v37 }
0x1e2f   :  { %v3512_v28 = vpop.eup %3511 }
0x1e30   :  { %2950 = vst [vmem:[#allocation22] sm:$0xff] %v2943_v62  ;;  %v2932_v36 = vmul.f32 0.6931472, %v3512_v28  ;;  %v2924_v10 = vpop.xlane.xlu0 %2923 }
0x1e31   :  { %3517 = vlog2.f32 %v2924_v10 }
0x1e32   :  { %v2944_v0 = vsub.f32 %v2895_v12, %v2932_v36 }
0x1e33   :  { %v3514_v14 = vpop.eup %3513 }
0x1e34   :  { %2951 = vst [vmem:[#allocation22 + $0x8] sm:$0xff] %v2944_v0  ;;  %v2934_v48 = vmul.f32 0.6931472, %v3514_v14  ;;  %v2926_v22 = vpop.xlane.xlu1 %2925 }
0x1e35   :  { %3519 = vlog2.f32 %v2926_v22 }
0x1e36   :  { %v2945_v17 = vsub.f32 %v2896_v29, %v2934_v48 }
0x1e37   :  { %v3516_v61 = vpop.eup %3515 }
0x1e38   :  { %2952 = vst [vmem:[#allocation22 + $0x10] sm:$0xff] %v2945_v17  ;;  %v2936_v11 = vmul.f32 0.6931472, %v3516_v61  ;;  %v2928_v54 = vpop.xlane.xlu0 %2927 }
0x1e39   :  { %3521 = vlog2.f32 %v2928_v54 }
0x1e3a   :  { %v2946_v44 = vsub.f32 %v2897_v3, %v2936_v11 }
0x1e3b   :  { %v3518_v55 = vpop.eup %3517 }
0x1e3c   :  { %2953 = vst [vmem:[#allocation22 + $0x18] sm:$0xff] %v2946_v44  ;;  %v2938_v32 = vmul.f32 0.6931472, %v3518_v55 }
0x1e3e   :  { %v2947_v56 = vsub.f32 %v2898_v41, %v2938_v32 }
0x1e3f   :  { %v3520_v58 = vpop.eup %3519 }
0x1e40   :  { %2954 = vst [vmem:[#allocation22 + $0x20] sm:$0xff] %v2947_v56  ;;  %v2940_v46 = vmul.f32 0.6931472, %v3520_v58 }
0x1e42   :  { %v2948_v7 = vsub.f32 %v2899_v47, %v2940_v46 }
0x1e43   :  { %v3522_v24 = vpop.eup %3521 }
0x1e44   :  { %2955 = vst [vmem:[#allocation22 + $0x28] sm:$0xff] %v2948_v7  ;;  %v2942_v30 = vmul.f32 0.6931472, %v3522_v24 }
0x1e46   :  { %v2949_v53 = vsub.f32 %v2900_v34, %v2942_v30 }
0x1e48   :  { %2956 = vst [vmem:[#allocation22 + $0x30] sm:$0xff] %v2949_v53 }
0x1e49   :  { %3722 = shalt.err (!%p3719_p3)
}
0x1e4a   :  { %s3723_s0 = scalar_lea.hbm %s4882_s12, 896 }
0x1e4b   :  { %p3724_p4 = scmp.ne.s32.totalorder %s4882_s12, %s3723_s0  ;;  %p3727_p5 = scmp.lt.u32.totalorder %s3723_s0, %s4882_s12 }
0x1e4d   :  { %p3729_p6 = pnand %p3727_p5, %p3724_p4 }
0x1e4f   :  { %3732 = shalt.err (!%p3729_p6)
}
0x1e50   :  { %2968 = dma.vmem_to_hbm [thread:$0]  %s2963_s4, 896, %s4882_s12, [#allocation8], %s3749_s15, %s3749_s15, %s3750_s16  }
0x1e51   :  { %3745 = dma.done.wait [#allocation8], 896  }
0x1e52   :  { %3746 = vsyncadd [#allocation8], 4294966400 }
0x1e53   :  { %2972 = vsyncpa [#allocation7], 1 }
0x1e54   :  { %2973 = vsyncpa [#allocation12], 1 }
0x1e55   :  { %2974 = vsyncpa [#allocation15], 1 }
0x1e56   :  { %2975 = vsyncpa [#allocation18], 1 }
0x1e57   :  { %2976 = vsyncpa [#allocation21], 1 }
0x1e58   :  { %2977 = vsyncpa [#allocation8], 1 }
0x1e59   :  { %2978 = vsyncpa [#allocation9], 1 }

</bundles_post_ra>
